<compile_context>
chip_gen: v5e
topology: v5e:2x2
jax: 0.10.0
libtpu: 0.0.40
codegen_flags: <defaults>
</compile_context>

<pallas_src>
import functools

import jax
import jax.numpy as jnp
from jax.experimental import pallas as pl
from jax.experimental.pallas import tpu as pltpu

LANE = 128  # TPU lane width; internal channel padding target


def _round_up(x, m):
    return (x + m - 1) // m * m


def _device_kind():
    try:
        return jax.devices()[0].device_kind.lower()
    except Exception:
        return ""


_KIND = _device_kind()
_IS_V7 = ("v7" in _KIND) or ("tpu7" in _KIND)
# v5e / v6e have 128 MiB physical VMEM per core -> larger tiles + scoped limit;
# v7x has 64 MiB per TensorCore -> keep the double-buffered working set small.
VMEM_LIMIT_BYTES = (48 if _IS_V7 else 64) * 1024 * 1024
DEFAULT_TILE_M = 512 if _IS_V7 else 1024


# ----------------------------- Pallas kernels ------------------------------ #

def _conv_bn_kernel(patches_ref, w_ref, scale_ref, shift_ref, out_ref, *, relu):
    # bf16 x bf16 GEMM on the MXU, f32 accumulation, f32 folded-BN epilogue.
    acc = jnp.dot(patches_ref[...], w_ref[...], preferred_element_type=jnp.float32)
    y = acc * scale_ref[...] + shift_ref[...]
    if relu:
        y = jnp.maximum(y, 0.0)
    out_ref[...] = y.astype(out_ref.dtype)


def _conv_bn_add_relu_kernel(patches_ref, w_ref, scale_ref, shift_ref, res_ref, out_ref):
    # conv2 of a BasicBlock: GEMM + folded BN + residual add + ReLU in one epilogue.
    acc = jnp.dot(patches_ref[...], w_ref[...], preferred_element_type=jnp.float32)
    y = acc * scale_ref[...] + shift_ref[...] + res_ref[...].astype(jnp.float32)
    out_ref[...] = jnp.maximum(y, 0.0).astype(out_ref.dtype)


def _maxpool_kernel(ee_ref, eo_ref, oe_ref, oo_ref, o_ref):
    # 3x3 / stride-2 max-pool over 4 even/odd de-interleaved planes of the
    # -inf padded input.  Only static contiguous slices + jnp.maximum.
    Ho, Wo = o_ref.shape[1], o_ref.shape[2]
    taps = (
        ee_ref[0, 0:Ho, 0:Wo, :],         # (2oh,   2ow)
        eo_ref[0, 0:Ho, 0:Wo, :],         # (2oh,   2ow+1)
        ee_ref[0, 0:Ho, 1:Wo + 1, :],     # (2oh,   2ow+2)
        oe_ref[0, 0:Ho, 0:Wo, :],         # (2oh+1, 2ow)
        oo_ref[0, 0:Ho, 0:Wo, :],         # (2oh+1, 2ow+1)
        oe_ref[0, 0:Ho, 1:Wo + 1, :],     # (2oh+1, 2ow+2)
        ee_ref[0, 1:Ho + 1, 0:Wo, :],     # (2oh+2, 2ow)
        eo_ref[0, 1:Ho + 1, 0:Wo, :],     # (2oh+2, 2ow+1)
        ee_ref[0, 1:Ho + 1, 1:Wo + 1, :], # (2oh+2, 2ow+2)
    )
    acc = taps[0]
    for t in taps[1:]:
        acc = jnp.maximum(acc, t)
    o_ref[0] = acc


# ------------------------------- JAX glue ---------------------------------- #

def _im2col(x, kh, kw, stride, pad, k_pad):
    """x: NHWC (bf16) -> patches [N*Ho*Wo, k_pad] (K zero-padded to k_pad), Ho, Wo."""
    N, H, W, C = x.shape
    xp = jnp.pad(x, ((0, 0), (pad, pad), (pad, pad), (0, 0)))
    Hp, Wp = H + 2 * pad, W + 2 * pad
    Ho = (Hp - kh) // stride + 1
    Wo = (Wp - kw) // stride + 1
    cols = [xp[:, i:i + stride * Ho:stride, j:j + stride * Wo:stride, :]
            for i in range(kh) for j in range(kw)]
    K = kh * kw * C
    if k_pad > K:
        cols.append(jnp.zeros((N, Ho, Wo, k_pad - K), x.dtype))
    patches = jnp.concatenate(cols, axis=-1)            # [N, Ho, Wo, k_pad]
    return patches.reshape(N * Ho * Wo, k_pad), Ho, Wo


def _pick_tile_m(M, K, tile_n, has_res):
    tile_m = min(DEFAULT_TILE_M, _round_up(M, 16))
    budget = int(VMEM_LIMIT_BYTES * 0.6)

    def working_set(tm):
        b = 2 * (tm * K + K * tile_n + tm * tile_n) * 2   # double-buffered bf16
        if has_res:
            b += 2 * tm * tile_n * 2
        b += 2 * tm * tile_n * 4                          # f32 epilogue temporaries
        return b

    while tile_m >= 256 and working_set(tile_m) > budget:
        tile_m //= 2
    return tile_m


def conv_bn(x, p, *, stride, relu, residual=None):
    """Tiled conv + folded-BN (+ fused residual-add) (+ ReLU) as a Pallas GEMM.

    x:            [N, H, W, Cin_x] bf16 (lane-padded, except the raw RGB stem input)
    p["w"]:       [kh, kw, cin_real, cout_pad] bf16 (cout_pad multiple of 128)
    p["scale"],
    p["shift"]:   [1, cout_pad] f32 (folded BN; zero on padded channels)
    residual:     optional [N, Ho, Wo, cout_pad] bf16 -> out = relu(conv_bn + residual)
    """
    w = p["w"]
    kh, kw, cin_real, cout = w.shape
    pad = (kh - 1) // 2                    # 7x7 -> 3, 3x3 -> 1, 1x1 -> 0 (torch ResNet)
    N, _, _, cin_x = x.shape

    # Build the GEMM K dimension over the REAL channel count when that shrinks
    # the (lane-padded-to-128) K; otherwise keep the already padded channels.
    k_pad_real = _round_up(kh * kw * cin_real, LANE)
    if cin_real < cin_x and k_pad_real < kh * kw * cin_x:
        x_in = x[..., :cin_real]
        cin_used = cin_real
    else:
        x_in = x
        cin_used = cin_x
    K_used = kh * kw * cin_used
    K_pad = _round_up(K_used, LANE)

    # Matching weight matrix [K_pad, cout].
    w_used = w
    if cin_used > cin_real:
        w_used = jnp.pad(w, ((0, 0), (0, 0), (0, cin_used - cin_real), (0, 0)))
    w_mat = w_used.reshape(K_used, cout)
    if K_pad > K_used:
        w_mat = jnp.pad(w_mat, ((0, K_pad - K_used), (0, 0)))

    patches, Ho, Wo = _im2col(x_in, kh, kw, stride, pad, K_pad)
    M = N * Ho * Wo

    # Keep the whole cout in one N-tile when it fits so the weight / scale /
    # shift blocks are constant across the grid (fetched once).
    if cout <= 512:
        tile_n = cout
    elif cout % 256 == 0:
        tile_n = 256
    else:
        tile_n = 128

    tile_m = _pick_tile_m(M, K_pad, tile_n, residual is not None)
    m_pad = _round_up(M, tile_m)
    if m_pad != M:
        patches = jnp.pad(patches, ((0, m_pad - M), (0, 0)))

    grid = (m_pad // tile_m, cout // tile_n)

    in_specs = [
        pl.BlockSpec((tile_m, K_pad), lambda i, j: (i, 0)),   # patches tile (streamed)
        pl.BlockSpec((K_pad, tile_n), lambda i, j: (0, j)),   # weights: constant over M
        pl.BlockSpec((1, tile_n), lambda i, j: (0, j)),       # scale:   constant over M
        pl.BlockSpec((1, tile_n), lambda i, j: (0, j)),       # shift:   constant over M
    ]
    args = [patches, w_mat, p["scale"], p["shift"]]

    if residual is None:
        kernel = functools.partial(_conv_bn_kernel, relu=relu)
    else:
        kernel = _conv_bn_add_relu_kernel
        res = residual.reshape(M, cout)
        if m_pad != M:
            res = jnp.pad(res, ((0, m_pad - M), (0, 0)))
        in_specs.append(pl.BlockSpec((tile_m, tile_n), lambda i, j: (i, j)))
        args.append(res)

    out = pl.pallas_call(
        kernel,
        out_shape=jax.ShapeDtypeStruct((m_pad, cout), jnp.bfloat16),
        grid=grid,
        in_specs=in_specs,
        out_specs=pl.BlockSpec((tile_m, tile_n), lambda i, j: (i, j)),
        compiler_params=pltpu.CompilerParams(
            dimension_semantics=("parallel", "parallel"),
            vmem_limit_bytes=VMEM_LIMIT_BYTES,
        ),
    )(*args)
    if m_pad != M:
        out = out[:M]
    return out.reshape(N, Ho, Wo, cout)


def maxpool_3x3_s2(x):
    """PyTorch MaxPool2d(kernel_size=3, stride=2, padding=1), NHWC, lane-padded C.

    The -inf padded input is de-interleaved into 4 even/odd (row, col) planes
    in plain JAX (~1x the activation, vs the old 9x stacked tensor); the Pallas
    kernel then takes the 9-tap max with static contiguous slices only.
    """
    N, H, W, C = x.shape
    pad = 1
    Ho = (H + 2 * pad - 3) // 2 + 1
    Wo = (W + 2 * pad - 3) // 2 + 1
    xp = jnp.pad(x, ((0, 0), (pad, pad), (pad, pad), (0, 0)),
                 constant_values=-jnp.inf)
    ee = xp[:, 0::2, 0::2, :]
    eo = xp[:, 0::2, 1::2, :]
    oe = xp[:, 1::2, 0::2, :]
    oo = xp[:, 1::2, 1::2, :]

    def plane_spec(p):
        shp = (1,) + p.shape[1:]
        return pl.BlockSpec(shp, lambda n: (n, 0, 0, 0))

    out = pl.pallas_call(
        _maxpool_kernel,
        out_shape=jax.ShapeDtypeStruct((N, Ho, Wo, C), x.dtype),
        grid=(N,),
        in_specs=[plane_spec(ee), plane_spec(eo), plane_spec(oe), plane_spec(oo)],
        out_specs=pl.BlockSpec((1, Ho, Wo, C), lambda n: (n, 0, 0, 0)),
        compiler_params=pltpu.CompilerParams(
            dimension_semantics=("parallel",),
            vmem_limit_bytes=VMEM_LIMIT_BYTES,
        ),
    )(ee, eo, oe, oo)
    return out


# ------------------------- parameter initialization ------------------------ #

def init_conv_bn(key, kh, kw, cin, cout, cout_pad):
    k1, k2, k3, k4 = jax.random.split(key, 4)
    fan_in = kh * kw * cin
    w = jax.random.normal(k1, (kh, kw, cin, cout), jnp.float32) * (2.0 / fan_in) ** 0.5
    gamma = 1.0 + 0.1 * jax.random.normal(k2, (cout,), jnp.float32)
    beta = 0.1 * jax.random.normal(k3, (cout,), jnp.float32)
    running_mean = 0.1 * jax.random.normal(k4, (cout,), jnp.float32)
    running_var = jnp.ones((cout,), jnp.float32)
    eps = 1e-5
    scale = gamma / jnp.sqrt(running_var + eps)
    shift = beta - running_mean * scale
    # Weights keep the REAL cin (K is built over real channels); cout is
    # lane-padded with zero scale/shift so padded channels stay exactly zero.
    w = jnp.pad(w, ((0, 0), (0, 0), (0, 0), (0, cout_pad - cout)))
    scale = jnp.pad(scale, (0, cout_pad - cout)).reshape(1, cout_pad)
    shift = jnp.pad(shift, (0, cout_pad - cout)).reshape(1, cout_pad)
    return {"w": w.astype(jnp.bfloat16), "scale": scale, "shift": shift}


def init_layer(key, cin, cout, num_blocks, stride):
    blocks = []
    keys = jax.random.split(key, num_blocks)
    for b in range(num_blocks):
        kk = jax.random.split(keys[b], 3)
        s = stride if b == 0 else 1
        ci = cin if b == 0 else cout
        co_pad = _round_up(cout, LANE)
        blk = {
            "conv1": init_conv_bn(kk[0], 3, 3, ci, cout, co_pad),
            "conv2": init_conv_bn(kk[1], 3, 3, cout, cout, co_pad),
        }
        if s != 1 or ci != cout:
            blk["down"] = init_conv_bn(kk[2], 1, 1, ci, cout, co_pad)
        blocks.append(blk)
    return blocks


def init_resnet_backbone(key, in_ch=3, width=8):
    ks = jax.random.split(key, 5)
    return {
        "stem": init_conv_bn(ks[0], 7, 7, in_ch, width, _round_up(width, LANE)),
        "layer1": init_layer(ks[1], width, width, 2, 1),
        "layer2": init_layer(ks[2], width, 2 * width, 2, 2),
        "layer3": init_layer(ks[3], 2 * width, 4 * width, 2, 2),
        "layer4": init_layer(ks[4], 4 * width, 8 * width, 2, 2),
    }


# --------------------------------- forward --------------------------------- #

def basic_block(x, p, stride):
    out = conv_bn(x, p["conv1"], stride=stride, relu=True)
    if "down" in p:
        identity = conv_bn(x, p["down"], stride=stride, relu=False)
    else:
        identity = x
    # conv2 + BN + residual add + ReLU fused into one GEMM epilogue.
    return conv_bn(out, p["conv2"], stride=1, relu=True, residual=identity)


def run_layer(x, blocks, stride):
    for b, blk in enumerate(blocks):
        x = basic_block(x, blk, stride if b == 0 else 1)
    return x


@functools.partial(jax.jit, static_argnames=("width",))
def resnet_backbone_forward(x_nchw, params, *, width=8):
    # input: NCHW (PyTorch convention) -> internal NHWC bf16, channels lane-padded.
    x = jnp.transpose(x_nchw, (0, 2, 3, 1)).astype(jnp.bfloat16)
    # stem = conv7x7/s2 + BN + ReLU + maxpool3x3/s2
    x = conv_bn(x, params["stem"], stride=2, relu=True)
    x = maxpool_3x3_s2(x)
    c2 = run_layer(x, params["layer1"], 1)
    c3 = run_layer(c2, params["layer2"], 2)
    c4 = run_layer(c3, params["layer3"], 2)
    c5 = run_layer(c4, params["layer4"], 2)

    def to_nchw(t, c_true):
        return jnp.transpose(t[..., :c_true], (0, 3, 1, 2)).astype(jnp.float32)

    return to_nchw(c3, 2 * width), to_nchw(c4, 4 * width), to_nchw(c5, 8 * width)


if __name__ == "__main__":
    key = jax.random.PRNGKey(0)
    k_param, k_x = jax.random.split(key)
    width = 8
    params = init_resnet_backbone(k_param, in_ch=3, width=width)

    x = jax.random.normal(k_x, (2, 3, 32, 32), jnp.float32)  # NCHW, like PyTorch

    c3, c4, c5 = resnet_backbone_forward(x, params, width=width)
    jax.block_until_ready((c3, c4, c5))

    assert c3.shape == (2, 16, 4, 4), c3.shape   # stride 8
    assert c4.shape == (2, 32, 2, 2), c4.shape   # stride 16
    assert c5.shape == (2, 64, 1, 1), c5.shape   # stride 32
    assert all(bool(jnp.isfinite(t).all()) for t in (c3, c4, c5))

    print("KERNEL_OK")
</pallas_src>

<mosaic_0001>
module attributes {stable_mosaic.version = 11 : i64} {
  func.func @_conv_bn_kernel(%arg0: i32, %arg1: i32, %arg2: memref<512x256xbf16, #tpu.memory_space<vmem>>, %arg3: memref<256x128xbf16, #tpu.memory_space<vmem>>, %arg4: memref<1x128xf32, #tpu.memory_space<vmem>>, %arg5: memref<1x128xf32, #tpu.memory_space<vmem>>, %arg6: memref<512x128xbf16, #tpu.memory_space<vmem>>) attributes {dimension_semantics = [#tpu.dimension_semantics<parallel>, #tpu.dimension_semantics<parallel>], iteration_bounds = array<i64: 1, 1>, scalar_prefetch = 0 : i64, scratch_operands = 0 : i64, tpu.core_type = #tpu.core_type<tc>, window_params = [{transform_indices = @transform_0, window_bounds = array<i64: 512, 256>}, {transform_indices = @transform_1, window_bounds = array<i64: 256, 128>}, {transform_indices = @transform_2, window_bounds = array<i64: 1, 128>}, {transform_indices = @transform_3, window_bounds = array<i64: 1, 128>}, {transform_indices = @transform_4, window_bounds = array<i64: 512, 128>}]} {
    %c0 = arith.constant 0 : index
    %c0_0 = arith.constant 0 : index
    %0 = vector.load %arg2[%c0, %c0_0] : memref<512x256xbf16, #tpu.memory_space<vmem>>, vector<512x256xbf16>
    %c0_1 = arith.constant 0 : index
    %c0_2 = arith.constant 0 : index
    %1 = vector.load %arg3[%c0_1, %c0_2] : memref<256x128xbf16, #tpu.memory_space<vmem>>, vector<256x128xbf16>
    %cst = arith.constant dense<0.000000e+00> : vector<512x128xf32>
    %2 = tpu.matmul %0, %1, %cst {dimension_numbers = #tpu.dot_dimension_numbers<[1], [0], [0], [1], [0, 0, 1, 1], [], []>} : vector<512x256xbf16>, vector<256x128xbf16>, vector<512x128xf32> -> vector<512x128xf32>
    %c0_3 = arith.constant 0 : index
    %c0_4 = arith.constant 0 : index
    %3 = vector.load %arg4[%c0_3, %c0_4] : memref<1x128xf32, #tpu.memory_space<vmem>>, vector<1x128xf32>
    %4 = vector.broadcast %3 : vector<1x128xf32> to vector<512x128xf32>
    %5 = arith.mulf %2, %4 : vector<512x128xf32>
    %c0_5 = arith.constant 0 : index
    %c0_6 = arith.constant 0 : index
    %6 = vector.load %arg5[%c0_5, %c0_6] : memref<1x128xf32, #tpu.memory_space<vmem>>, vector<1x128xf32>
    %7 = vector.broadcast %6 : vector<1x128xf32> to vector<512x128xf32>
    %8 = arith.addf %5, %7 : vector<512x128xf32>
    %cst_7 = arith.constant 0.000000e+00 : f32
    %9 = vector.broadcast %cst_7 : f32 to vector<512x128xf32>
    %10 = arith.maximumf %8, %9 : vector<512x128xf32>
    %11 = arith.truncf %10 : vector<512x128xf32> to vector<512x128xbf16>
    %c0_8 = arith.constant 0 : index
    %c0_9 = arith.constant 0 : index
    %12 = vector.load %arg6[%c0_8, %c0_9] : memref<512x128xbf16, #tpu.memory_space<vmem>>, vector<512x128xbf16>
    tpu.vector_store %arg6[%c0_8, %c0_9], %11 {strides = array<i32>} : memref<512x128xbf16, #tpu.memory_space<vmem>>, vector<512x128xbf16>,
    return
  }
  func.func @transform_0(%arg0: i32, %arg1: i32) -> (i32, i32) {
    %c0_i32 = arith.constant 0 : i32
    %c0_i32_0 = arith.constant 0 : i32
    return %arg0, %c0_i32 : i32, i32
  }
  func.func @transform_1(%arg0: i32, %arg1: i32) -> (i32, i32) {
    %c0_i32 = arith.constant 0 : i32
    %c0_i32_0 = arith.constant 0 : i32
    return %c0_i32, %arg1 : i32, i32
  }
  func.func @transform_2(%arg0: i32, %arg1: i32) -> (i32, i32) {
    %c0_i32 = arith.constant 0 : i32
    %c0_i32_0 = arith.constant 0 : i32
    return %c0_i32, %arg1 : i32, i32
  }
  func.func @transform_3(%arg0: i32, %arg1: i32) -> (i32, i32) {
    %c0_i32 = arith.constant 0 : i32
    %c0_i32_0 = arith.constant 0 : i32
    return %c0_i32, %arg1 : i32, i32
  }
  func.func @transform_4(%arg0: i32, %arg1: i32) -> (i32, i32) {
    %c0_i32 = arith.constant 0 : i32
    return %arg0, %arg1 : i32, i32
  }
}

module attributes {stable_mosaic.version = 11 : i64} {
  func.func @_maxpool_kernel(%arg0: i32, %arg1: memref<1x9x9x128xbf16, #tpu.memory_space<vmem>>, %arg2: memref<1x9x9x128xbf16, #tpu.memory_space<vmem>>, %arg3: memref<1x9x9x128xbf16, #tpu.memory_space<vmem>>, %arg4: memref<1x9x9x128xbf16, #tpu.memory_space<vmem>>, %arg5: memref<1x8x8x128xbf16, #tpu.memory_space<vmem>>) attributes {dimension_semantics = [#tpu.dimension_semantics<parallel>], iteration_bounds = array<i64: 2>, scalar_prefetch = 0 : i64, scratch_operands = 0 : i64, tpu.core_type = #tpu.core_type<tc>, window_params = [{transform_indices = @transform_0, window_bounds = array<i64: 1, 9, 9, 128>}, {transform_indices = @transform_1, window_bounds = array<i64: 1, 9, 9, 128>}, {transform_indices = @transform_2, window_bounds = array<i64: 1, 9, 9, 128>}, {transform_indices = @transform_3, window_bounds = array<i64: 1, 9, 9, 128>}, {transform_indices = @transform_4, window_bounds = array<i64: 1, 8, 8, 128>}]} {
    %c0 = arith.constant 0 : index
    %c0_0 = arith.constant 0 : index
    %c0_1 = arith.constant 0 : index
    %c0_2 = arith.constant 0 : index
    %0 = vector.load %arg1[%c0, %c0_0, %c0_1, %c0_2] : memref<1x9x9x128xbf16, #tpu.memory_space<vmem>>, vector<1x8x8x128xbf16>
    %1 = vector.shape_cast %0 : vector<1x8x8x128xbf16> to vector<8x8x128xbf16>
    %c0_3 = arith.constant 0 : index
    %c0_4 = arith.constant 0 : index
    %c0_5 = arith.constant 0 : index
    %c0_6 = arith.constant 0 : index
    %2 = vector.load %arg2[%c0_3, %c0_4, %c0_5, %c0_6] : memref<1x9x9x128xbf16, #tpu.memory_space<vmem>>, vector<1x8x8x128xbf16>
    %3 = vector.shape_cast %2 : vector<1x8x8x128xbf16> to vector<8x8x128xbf16>
    %c0_7 = arith.constant 0 : index
    %c0_8 = arith.constant 0 : index
    %c1 = arith.constant 1 : index
    %c0_9 = arith.constant 0 : index
    %4 = vector.load %arg1[%c0_7, %c0_8, %c1, %c0_9] : memref<1x9x9x128xbf16, #tpu.memory_space<vmem>>, vector<1x8x8x128xbf16>
    %5 = vector.shape_cast %4 : vector<1x8x8x128xbf16> to vector<8x8x128xbf16>
    %c0_10 = arith.constant 0 : index
    %c0_11 = arith.constant 0 : index
    %c0_12 = arith.constant 0 : index
    %c0_13 = arith.constant 0 : index
    %6 = vector.load %arg3[%c0_10, %c0_11, %c0_12, %c0_13] : memref<1x9x9x128xbf16, #tpu.memory_space<vmem>>, vector<1x8x8x128xbf16>
    %7 = vector.shape_cast %6 : vector<1x8x8x128xbf16> to vector<8x8x128xbf16>
    %c0_14 = arith.constant 0 : index
    %c0_15 = arith.constant 0 : index
    %c0_16 = arith.constant 0 : index
    %c0_17 = arith.constant 0 : index
    %8 = vector.load %arg4[%c0_14, %c0_15, %c0_16, %c0_17] : memref<1x9x9x128xbf16, #tpu.memory_space<vmem>>, vector<1x8x8x128xbf16>
    %9 = vector.shape_cast %8 : vector<1x8x8x128xbf16> to vector<8x8x128xbf16>
    %c0_18 = arith.constant 0 : index
    %c0_19 = arith.constant 0 : index
    %c1_20 = arith.constant 1 : index
    %c0_21 = arith.constant 0 : index
    %10 = vector.load %arg3[%c0_18, %c0_19, %c1_20, %c0_21] : memref<1x9x9x128xbf16, #tpu.memory_space<vmem>>, vector<1x8x8x128xbf16>
    %11 = vector.shape_cast %10 : vector<1x8x8x128xbf16> to vector<8x8x128xbf16>
    %c0_22 = arith.constant 0 : index
    %c1_23 = arith.constant 1 : index
    %c0_24 = arith.constant 0 : index
    %c0_25 = arith.constant 0 : index
    %12 = vector.load %arg1[%c0_22, %c1_23, %c0_24, %c0_25] : memref<1x9x9x128xbf16, #tpu.memory_space<vmem>>, vector<1x8x8x128xbf16>
    %13 = vector.shape_cast %12 : vector<1x8x8x128xbf16> to vector<8x8x128xbf16>
    %c0_26 = arith.constant 0 : index
    %c1_27 = arith.constant 1 : index
    %c0_28 = arith.constant 0 : index
    %c0_29 = arith.constant 0 : index
    %14 = vector.load %arg2[%c0_26, %c1_27, %c0_28, %c0_29] : memref<1x9x9x128xbf16, #tpu.memory_space<vmem>>, vector<1x8x8x128xbf16>
    %15 = vector.shape_cast %14 : vector<1x8x8x128xbf16> to vector<8x8x128xbf16>
    %c0_30 = arith.constant 0 : index
    %c1_31 = arith.constant 1 : index
    %c1_32 = arith.constant 1 : index
    %c0_33 = arith.constant 0 : index
    %16 = vector.load %arg1[%c0_30, %c1_31, %c1_32, %c0_33] : memref<1x9x9x128xbf16, #tpu.memory_space<vmem>>, vector<1x8x8x128xbf16>
    %17 = vector.shape_cast %16 : vector<1x8x8x128xbf16> to vector<8x8x128xbf16>
    %18 = arith.maximumf %1, %3 : vector<8x8x128xbf16>
    %19 = arith.maximumf %18, %5 : vector<8x8x128xbf16>
    %20 = arith.maximumf %19, %7 : vector<8x8x128xbf16>
    %21 = arith.maximumf %20, %9 : vector<8x8x128xbf16>
    %22 = arith.maximumf %21, %11 : vector<8x8x128xbf16>
    %23 = arith.maximumf %22, %13 : vector<8x8x128xbf16>
    %24 = arith.maximumf %23, %15 : vector<8x8x128xbf16>
    %25 = arith.maximumf %24, %17 : vector<8x8x128xbf16>
    %c0_34 = arith.constant 0 : index
    %c0_35 = arith.constant 0 : index
    %c0_36 = arith.constant 0 : index
    %c0_37 = arith.constant 0 : index
    %26 = vector.load %arg5[%c0_34, %c0_35, %c0_36, %c0_37] : memref<1x8x8x128xbf16, #tpu.memory_space<vmem>>, vector<1x8x8x128xbf16>
    %27 = vector.shape_cast %26 : vector<1x8x8x128xbf16> to vector<8x8x128xbf16>
    %28 = vector.shape_cast %25 : vector<8x8x128xbf16> to vector<1x8x8x128xbf16>
    tpu.vector_store %arg5[%c0_34, %c0_35, %c0_36, %c0_37], %28 {strides = array<i32>} : memref<1x8x8x128xbf16, #tpu.memory_space<vmem>>, vector<1x8x8x128xbf16>,
    return
  }
  func.func @transform_0(%arg0: i32) -> (i32, i32, i32, i32) {
    %c0_i32 = arith.constant 0 : i32
    %c0_i32_0 = arith.constant 0 : i32
    %c0_i32_1 = arith.constant 0 : i32
    %c0_i32_2 = arith.constant 0 : i32
    return %arg0, %c0_i32, %c0_i32_0, %c0_i32_1 : i32, i32, i32, i32
  }
  func.func @transform_1(%arg0: i32) -> (i32, i32, i32, i32) {
    %c0_i32 = arith.constant 0 : i32
    %c0_i32_0 = arith.constant 0 : i32
    %c0_i32_1 = arith.constant 0 : i32
    %c0_i32_2 = arith.constant 0 : i32
    return %arg0, %c0_i32, %c0_i32_0, %c0_i32_1 : i32, i32, i32, i32
  }
  func.func @transform_2(%arg0: i32) -> (i32, i32, i32, i32) {
    %c0_i32 = arith.constant 0 : i32
    %c0_i32_0 = arith.constant 0 : i32
    %c0_i32_1 = arith.constant 0 : i32
    %c0_i32_2 = arith.constant 0 : i32
    return %arg0, %c0_i32, %c0_i32_0, %c0_i32_1 : i32, i32, i32, i32
  }
  func.func @transform_3(%arg0: i32) -> (i32, i32, i32, i32) {
    %c0_i32 = arith.constant 0 : i32
    %c0_i32_0 = arith.constant 0 : i32
    %c0_i32_1 = arith.constant 0 : i32
    %c0_i32_2 = arith.constant 0 : i32
    return %arg0, %c0_i32, %c0_i32_0, %c0_i32_1 : i32, i32, i32, i32
  }
  func.func @transform_4(%arg0: i32) -> (i32, i32, i32, i32) {
    %c0_i32 = arith.constant 0 : i32
    %c0_i32_0 = arith.constant 0 : i32
    %c0_i32_1 = arith.constant 0 : i32
    %c0_i32_2 = arith.constant 0 : i32
    return %arg0, %c0_i32, %c0_i32_0, %c0_i32_1 : i32, i32, i32, i32
  }
}

module attributes {stable_mosaic.version = 11 : i64} {
  func.func @_conv_bn_kernel(%arg0: i32, %arg1: i32, %arg2: memref<128x128xbf16, #tpu.memory_space<vmem>>, %arg3: memref<128x128xbf16, #tpu.memory_space<vmem>>, %arg4: memref<1x128xf32, #tpu.memory_space<vmem>>, %arg5: memref<1x128xf32, #tpu.memory_space<vmem>>, %arg6: memref<128x128xbf16, #tpu.memory_space<vmem>>) attributes {dimension_semantics = [#tpu.dimension_semantics<parallel>, #tpu.dimension_semantics<parallel>], iteration_bounds = array<i64: 1, 1>, scalar_prefetch = 0 : i64, scratch_operands = 0 : i64, tpu.core_type = #tpu.core_type<tc>, window_params = [{transform_indices = @transform_0, window_bounds = array<i64: 128, 128>}, {transform_indices = @transform_1, window_bounds = array<i64: 128, 128>}, {transform_indices = @transform_2, window_bounds = array<i64: 1, 128>}, {transform_indices = @transform_3, window_bounds = array<i64: 1, 128>}, {transform_indices = @transform_4, window_bounds = array<i64: 128, 128>}]} {
    %c0 = arith.constant 0 : index
    %c0_0 = arith.constant 0 : index
    %0 = vector.load %arg2[%c0, %c0_0] : memref<128x128xbf16, #tpu.memory_space<vmem>>, vector<128x128xbf16>
    %c0_1 = arith.constant 0 : index
    %c0_2 = arith.constant 0 : index
    %1 = vector.load %arg3[%c0_1, %c0_2] : memref<128x128xbf16, #tpu.memory_space<vmem>>, vector<128x128xbf16>
    %cst = arith.constant dense<0.000000e+00> : vector<128x128xf32>
    %2 = tpu.matmul %0, %1, %cst {dimension_numbers = #tpu.dot_dimension_numbers<[1], [0], [0], [1], [0, 0, 1, 1], [], []>} : vector<128x128xbf16>, vector<128x128xbf16>, vector<128x128xf32> -> vector<128x128xf32>
    %c0_3 = arith.constant 0 : index
    %c0_4 = arith.constant 0 : index
    %3 = vector.load %arg4[%c0_3, %c0_4] : memref<1x128xf32, #tpu.memory_space<vmem>>, vector<1x128xf32>
    %4 = vector.broadcast %3 : vector<1x128xf32> to vector<128x128xf32>
    %5 = arith.mulf %2, %4 : vector<128x128xf32>
    %c0_5 = arith.constant 0 : index
    %c0_6 = arith.constant 0 : index
    %6 = vector.load %arg5[%c0_5, %c0_6] : memref<1x128xf32, #tpu.memory_space<vmem>>, vector<1x128xf32>
    %7 = vector.broadcast %6 : vector<1x128xf32> to vector<128x128xf32>
    %8 = arith.addf %5, %7 : vector<128x128xf32>
    %cst_7 = arith.constant 0.000000e+00 : f32
    %9 = vector.broadcast %cst_7 : f32 to vector<128x128xf32>
    %10 = arith.maximumf %8, %9 : vector<128x128xf32>
    %11 = arith.truncf %10 : vector<128x128xf32> to vector<128x128xbf16>
    %c0_8 = arith.constant 0 : index
    %c0_9 = arith.constant 0 : index
    %12 = vector.load %arg6[%c0_8, %c0_9] : memref<128x128xbf16, #tpu.memory_space<vmem>>, vector<128x128xbf16>
    tpu.vector_store %arg6[%c0_8, %c0_9], %11 {strides = array<i32>} : memref<128x128xbf16, #tpu.memory_space<vmem>>, vector<128x128xbf16>,
    return
  }
  func.func @transform_0(%arg0: i32, %arg1: i32) -> (i32, i32) {
    %c0_i32 = arith.constant 0 : i32
    %c0_i32_0 = arith.constant 0 : i32
    return %arg0, %c0_i32 : i32, i32
  }
  func.func @transform_1(%arg0: i32, %arg1: i32) -> (i32, i32) {
    %c0_i32 = arith.constant 0 : i32
    %c0_i32_0 = arith.constant 0 : i32
    return %c0_i32, %arg1 : i32, i32
  }
  func.func @transform_2(%arg0: i32, %arg1: i32) -> (i32, i32) {
    %c0_i32 = arith.constant 0 : i32
    %c0_i32_0 = arith.constant 0 : i32
    return %c0_i32, %arg1 : i32, i32
  }
  func.func @transform_3(%arg0: i32, %arg1: i32) -> (i32, i32) {
    %c0_i32 = arith.constant 0 : i32
    %c0_i32_0 = arith.constant 0 : i32
    return %c0_i32, %arg1 : i32, i32
  }
  func.func @transform_4(%arg0: i32, %arg1: i32) -> (i32, i32) {
    %c0_i32 = arith.constant 0 : i32
    return %arg0, %arg1 : i32, i32
  }
}

module attributes {stable_mosaic.version = 11 : i64} {
  func.func @_conv_bn_add_relu_kernel(%arg0: i32, %arg1: i32, %arg2: memref<128x128xbf16, #tpu.memory_space<vmem>>, %arg3: memref<128x128xbf16, #tpu.memory_space<vmem>>, %arg4: memref<1x128xf32, #tpu.memory_space<vmem>>, %arg5: memref<1x128xf32, #tpu.memory_space<vmem>>, %arg6: memref<128x128xbf16, #tpu.memory_space<vmem>>, %arg7: memref<128x128xbf16, #tpu.memory_space<vmem>>) attributes {dimension_semantics = [#tpu.dimension_semantics<parallel>, #tpu.dimension_semantics<parallel>], iteration_bounds = array<i64: 1, 1>, scalar_prefetch = 0 : i64, scratch_operands = 0 : i64, tpu.core_type = #tpu.core_type<tc>, window_params = [{transform_indices = @transform_0, window_bounds = array<i64: 128, 128>}, {transform_indices = @transform_1, window_bounds = array<i64: 128, 128>}, {transform_indices = @transform_2, window_bounds = array<i64: 1, 128>}, {transform_indices = @transform_3, window_bounds = array<i64: 1, 128>}, {transform_indices = @transform_4, window_bounds = array<i64: 128, 128>}, {transform_indices = @transform_5, window_bounds = array<i64: 128, 128>}]} {
    %c0 = arith.constant 0 : index
    %c0_0 = arith.constant 0 : index
    %0 = vector.load %arg2[%c0, %c0_0] : memref<128x128xbf16, #tpu.memory_space<vmem>>, vector<128x128xbf16>
    %c0_1 = arith.constant 0 : index
    %c0_2 = arith.constant 0 : index
    %1 = vector.load %arg3[%c0_1, %c0_2] : memref<128x128xbf16, #tpu.memory_space<vmem>>, vector<128x128xbf16>
    %cst = arith.constant dense<0.000000e+00> : vector<128x128xf32>
    %2 = tpu.matmul %0, %1, %cst {dimension_numbers = #tpu.dot_dimension_numbers<[1], [0], [0], [1], [0, 0, 1, 1], [], []>} : vector<128x128xbf16>, vector<128x128xbf16>, vector<128x128xf32> -> vector<128x128xf32>
    %c0_3 = arith.constant 0 : index
    %c0_4 = arith.constant 0 : index
    %3 = vector.load %arg4[%c0_3, %c0_4] : memref<1x128xf32, #tpu.memory_space<vmem>>, vector<1x128xf32>
    %4 = vector.broadcast %3 : vector<1x128xf32> to vector<128x128xf32>
    %5 = arith.mulf %2, %4 : vector<128x128xf32>
    %c0_5 = arith.constant 0 : index
    %c0_6 = arith.constant 0 : index
    %6 = vector.load %arg5[%c0_5, %c0_6] : memref<1x128xf32, #tpu.memory_space<vmem>>, vector<1x128xf32>
    %7 = vector.broadcast %6 : vector<1x128xf32> to vector<128x128xf32>
    %8 = arith.addf %5, %7 : vector<128x128xf32>
    %c0_7 = arith.constant 0 : index
    %c0_8 = arith.constant 0 : index
    %9 = vector.load %arg6[%c0_7, %c0_8] : memref<128x128xbf16, #tpu.memory_space<vmem>>, vector<128x128xbf16>
    %10 = arith.extf %9 : vector<128x128xbf16> to vector<128x128xf32>
    %11 = arith.addf %8, %10 : vector<128x128xf32>
    %cst_9 = arith.constant 0.000000e+00 : f32
    %12 = vector.broadcast %cst_9 : f32 to vector<128x128xf32>
    %13 = arith.maximumf %11, %12 : vector<128x128xf32>
    %14 = arith.truncf %13 : vector<128x128xf32> to vector<128x128xbf16>
    %c0_10 = arith.constant 0 : index
    %c0_11 = arith.constant 0 : index
    %15 = vector.load %arg7[%c0_10, %c0_11] : memref<128x128xbf16, #tpu.memory_space<vmem>>, vector<128x128xbf16>
    tpu.vector_store %arg7[%c0_10, %c0_11], %14 {strides = array<i32>} : memref<128x128xbf16, #tpu.memory_space<vmem>>, vector<128x128xbf16>,
    return
  }
  func.func @transform_0(%arg0: i32, %arg1: i32) -> (i32, i32) {
    %c0_i32 = arith.constant 0 : i32
    %c0_i32_0 = arith.constant 0 : i32
    return %arg0, %c0_i32 : i32, i32
  }
  func.func @transform_1(%arg0: i32, %arg1: i32) -> (i32, i32) {
    %c0_i32 = arith.constant 0 : i32
    %c0_i32_0 = arith.constant 0 : i32
    return %c0_i32, %arg1 : i32, i32
  }
  func.func @transform_2(%arg0: i32, %arg1: i32) -> (i32, i32) {
    %c0_i32 = arith.constant 0 : i32
    %c0_i32_0 = arith.constant 0 : i32
    return %c0_i32, %arg1 : i32, i32
  }
  func.func @transform_3(%arg0: i32, %arg1: i32) -> (i32, i32) {
    %c0_i32 = arith.constant 0 : i32
    %c0_i32_0 = arith.constant 0 : i32
    return %c0_i32, %arg1 : i32, i32
  }
  func.func @transform_4(%arg0: i32, %arg1: i32) -> (i32, i32) {
    %c0_i32 = arith.constant 0 : i32
    return %arg0, %arg1 : i32, i32
  }
  func.func @transform_5(%arg0: i32, %arg1: i32) -> (i32, i32) {
    %c0_i32 = arith.constant 0 : i32
    return %arg0, %arg1 : i32, i32
  }
}

module attributes {stable_mosaic.version = 11 : i64} {
  func.func @_conv_bn_kernel(%arg0: i32, %arg1: i32, %arg2: memref<32x128xbf16, #tpu.memory_space<vmem>>, %arg3: memref<128x128xbf16, #tpu.memory_space<vmem>>, %arg4: memref<1x128xf32, #tpu.memory_space<vmem>>, %arg5: memref<1x128xf32, #tpu.memory_space<vmem>>, %arg6: memref<32x128xbf16, #tpu.memory_space<vmem>>) attributes {dimension_semantics = [#tpu.dimension_semantics<parallel>, #tpu.dimension_semantics<parallel>], iteration_bounds = array<i64: 1, 1>, scalar_prefetch = 0 : i64, scratch_operands = 0 : i64, tpu.core_type = #tpu.core_type<tc>, window_params = [{transform_indices = @transform_0, window_bounds = array<i64: 32, 128>}, {transform_indices = @transform_1, window_bounds = array<i64: 128, 128>}, {transform_indices = @transform_2, window_bounds = array<i64: 1, 128>}, {transform_indices = @transform_3, window_bounds = array<i64: 1, 128>}, {transform_indices = @transform_4, window_bounds = array<i64: 32, 128>}]} {
    %c0 = arith.constant 0 : index
    %c0_0 = arith.constant 0 : index
    %0 = vector.load %arg2[%c0, %c0_0] : memref<32x128xbf16, #tpu.memory_space<vmem>>, vector<32x128xbf16>
    %c0_1 = arith.constant 0 : index
    %c0_2 = arith.constant 0 : index
    %1 = vector.load %arg3[%c0_1, %c0_2] : memref<128x128xbf16, #tpu.memory_space<vmem>>, vector<128x128xbf16>
    %cst = arith.constant dense<0.000000e+00> : vector<32x128xf32>
    %2 = tpu.matmul %0, %1, %cst {dimension_numbers = #tpu.dot_dimension_numbers<[1], [0], [0], [1], [0, 0, 1, 1], [], []>} : vector<32x128xbf16>, vector<128x128xbf16>, vector<32x128xf32> -> vector<32x128xf32>
    %c0_3 = arith.constant 0 : index
    %c0_4 = arith.constant 0 : index
    %3 = vector.load %arg4[%c0_3, %c0_4] : memref<1x128xf32, #tpu.memory_space<vmem>>, vector<1x128xf32>
    %4 = vector.broadcast %3 : vector<1x128xf32> to vector<32x128xf32>
    %5 = arith.mulf %2, %4 : vector<32x128xf32>
    %c0_5 = arith.constant 0 : index
    %c0_6 = arith.constant 0 : index
    %6 = vector.load %arg5[%c0_5, %c0_6] : memref<1x128xf32, #tpu.memory_space<vmem>>, vector<1x128xf32>
    %7 = vector.broadcast %6 : vector<1x128xf32> to vector<32x128xf32>
    %8 = arith.addf %5, %7 : vector<32x128xf32>
    %cst_7 = arith.constant 0.000000e+00 : f32
    %9 = vector.broadcast %cst_7 : f32 to vector<32x128xf32>
    %10 = arith.maximumf %8, %9 : vector<32x128xf32>
    %11 = arith.truncf %10 : vector<32x128xf32> to vector<32x128xbf16>
    %c0_8 = arith.constant 0 : index
    %c0_9 = arith.constant 0 : index
    %12 = vector.load %arg6[%c0_8, %c0_9] : memref<32x128xbf16, #tpu.memory_space<vmem>>, vector<32x128xbf16>
    tpu.vector_store %arg6[%c0_8, %c0_9], %11 {strides = array<i32>} : memref<32x128xbf16, #tpu.memory_space<vmem>>, vector<32x128xbf16>,
    return
  }
  func.func @transform_0(%arg0: i32, %arg1: i32) -> (i32, i32) {
    %c0_i32 = arith.constant 0 : i32
    %c0_i32_0 = arith.constant 0 : i32
    return %arg0, %c0_i32 : i32, i32
  }
  func.func @transform_1(%arg0: i32, %arg1: i32) -> (i32, i32) {
    %c0_i32 = arith.constant 0 : i32
    %c0_i32_0 = arith.constant 0 : i32
    return %c0_i32, %arg1 : i32, i32
  }
  func.func @transform_2(%arg0: i32, %arg1: i32) -> (i32, i32) {
    %c0_i32 = arith.constant 0 : i32
    %c0_i32_0 = arith.constant 0 : i32
    return %c0_i32, %arg1 : i32, i32
  }
  func.func @transform_3(%arg0: i32, %arg1: i32) -> (i32, i32) {
    %c0_i32 = arith.constant 0 : i32
    %c0_i32_0 = arith.constant 0 : i32
    return %c0_i32, %arg1 : i32, i32
  }
  func.func @transform_4(%arg0: i32, %arg1: i32) -> (i32, i32) {
    %c0_i32 = arith.constant 0 : i32
    return %arg0, %arg1 : i32, i32
  }
}

module attributes {stable_mosaic.version = 11 : i64} {
  func.func @_conv_bn_kernel(%arg0: i32, %arg1: i32, %arg2: memref<32x256xbf16, #tpu.memory_space<vmem>>, %arg3: memref<256x128xbf16, #tpu.memory_space<vmem>>, %arg4: memref<1x128xf32, #tpu.memory_space<vmem>>, %arg5: memref<1x128xf32, #tpu.memory_space<vmem>>, %arg6: memref<32x128xbf16, #tpu.memory_space<vmem>>) attributes {dimension_semantics = [#tpu.dimension_semantics<parallel>, #tpu.dimension_semantics<parallel>], iteration_bounds = array<i64: 1, 1>, scalar_prefetch = 0 : i64, scratch_operands = 0 : i64, tpu.core_type = #tpu.core_type<tc>, window_params = [{transform_indices = @transform_0, window_bounds = array<i64: 32, 256>}, {transform_indices = @transform_1, window_bounds = array<i64: 256, 128>}, {transform_indices = @transform_2, window_bounds = array<i64: 1, 128>}, {transform_indices = @transform_3, window_bounds = array<i64: 1, 128>}, {transform_indices = @transform_4, window_bounds = array<i64: 32, 128>}]} {
    %c0 = arith.constant 0 : index
    %c0_0 = arith.constant 0 : index
    %0 = vector.load %arg2[%c0, %c0_0] : memref<32x256xbf16, #tpu.memory_space<vmem>>, vector<32x256xbf16>
    %c0_1 = arith.constant 0 : index
    %c0_2 = arith.constant 0 : index
    %1 = vector.load %arg3[%c0_1, %c0_2] : memref<256x128xbf16, #tpu.memory_space<vmem>>, vector<256x128xbf16>
    %cst = arith.constant dense<0.000000e+00> : vector<32x128xf32>
    %2 = tpu.matmul %0, %1, %cst {dimension_numbers = #tpu.dot_dimension_numbers<[1], [0], [0], [1], [0, 0, 1, 1], [], []>} : vector<32x256xbf16>, vector<256x128xbf16>, vector<32x128xf32> -> vector<32x128xf32>
    %c0_3 = arith.constant 0 : index
    %c0_4 = arith.constant 0 : index
    %3 = vector.load %arg4[%c0_3, %c0_4] : memref<1x128xf32, #tpu.memory_space<vmem>>, vector<1x128xf32>
    %4 = vector.broadcast %3 : vector<1x128xf32> to vector<32x128xf32>
    %5 = arith.mulf %2, %4 : vector<32x128xf32>
    %c0_5 = arith.constant 0 : index
    %c0_6 = arith.constant 0 : index
    %6 = vector.load %arg5[%c0_5, %c0_6] : memref<1x128xf32, #tpu.memory_space<vmem>>, vector<1x128xf32>
    %7 = vector.broadcast %6 : vector<1x128xf32> to vector<32x128xf32>
    %8 = arith.addf %5, %7 : vector<32x128xf32>
    %cst_7 = arith.constant 0.000000e+00 : f32
    %9 = vector.broadcast %cst_7 : f32 to vector<32x128xf32>
    %10 = arith.maximumf %8, %9 : vector<32x128xf32>
    %11 = arith.truncf %10 : vector<32x128xf32> to vector<32x128xbf16>
    %c0_8 = arith.constant 0 : index
    %c0_9 = arith.constant 0 : index
    %12 = vector.load %arg6[%c0_8, %c0_9] : memref<32x128xbf16, #tpu.memory_space<vmem>>, vector<32x128xbf16>
    tpu.vector_store %arg6[%c0_8, %c0_9], %11 {strides = array<i32>} : memref<32x128xbf16, #tpu.memory_space<vmem>>, vector<32x128xbf16>,
    return
  }
  func.func @transform_0(%arg0: i32, %arg1: i32) -> (i32, i32) {
    %c0_i32 = arith.constant 0 : i32
    %c0_i32_0 = arith.constant 0 : i32
    return %arg0, %c0_i32 : i32, i32
  }
  func.func @transform_1(%arg0: i32, %arg1: i32) -> (i32, i32) {
    %c0_i32 = arith.constant 0 : i32
    %c0_i32_0 = arith.constant 0 : i32
    return %c0_i32, %arg1 : i32, i32
  }
  func.func @transform_2(%arg0: i32, %arg1: i32) -> (i32, i32) {
    %c0_i32 = arith.constant 0 : i32
    %c0_i32_0 = arith.constant 0 : i32
    return %c0_i32, %arg1 : i32, i32
  }
  func.func @transform_3(%arg0: i32, %arg1: i32) -> (i32, i32) {
    %c0_i32 = arith.constant 0 : i32
    %c0_i32_0 = arith.constant 0 : i32
    return %c0_i32, %arg1 : i32, i32
  }
  func.func @transform_4(%arg0: i32, %arg1: i32) -> (i32, i32) {
    %c0_i32 = arith.constant 0 : i32
    return %arg0, %arg1 : i32, i32
  }
}

module attributes {stable_mosaic.version = 11 : i64} {
  func.func @_conv_bn_kernel(%arg0: i32, %arg1: i32, %arg2: memref<32x128xbf16, #tpu.memory_space<vmem>>, %arg3: memref<128x128xbf16, #tpu.memory_space<vmem>>, %arg4: memref<1x128xf32, #tpu.memory_space<vmem>>, %arg5: memref<1x128xf32, #tpu.memory_space<vmem>>, %arg6: memref<32x128xbf16, #tpu.memory_space<vmem>>) attributes {dimension_semantics = [#tpu.dimension_semantics<parallel>, #tpu.dimension_semantics<parallel>], iteration_bounds = array<i64: 1, 1>, scalar_prefetch = 0 : i64, scratch_operands = 0 : i64, tpu.core_type = #tpu.core_type<tc>, window_params = [{transform_indices = @transform_0, window_bounds = array<i64: 32, 128>}, {transform_indices = @transform_1, window_bounds = array<i64: 128, 128>}, {transform_indices = @transform_2, window_bounds = array<i64: 1, 128>}, {transform_indices = @transform_3, window_bounds = array<i64: 1, 128>}, {transform_indices = @transform_4, window_bounds = array<i64: 32, 128>}]} {
    %c0 = arith.constant 0 : index
    %c0_0 = arith.constant 0 : index
    %0 = vector.load %arg2[%c0, %c0_0] : memref<32x128xbf16, #tpu.memory_space<vmem>>, vector<32x128xbf16>
    %c0_1 = arith.constant 0 : index
    %c0_2 = arith.constant 0 : index
    %1 = vector.load %arg3[%c0_1, %c0_2] : memref<128x128xbf16, #tpu.memory_space<vmem>>, vector<128x128xbf16>
    %cst = arith.constant dense<0.000000e+00> : vector<32x128xf32>
    %2 = tpu.matmul %0, %1, %cst {dimension_numbers = #tpu.dot_dimension_numbers<[1], [0], [0], [1], [0, 0, 1, 1], [], []>} : vector<32x128xbf16>, vector<128x128xbf16>, vector<32x128xf32> -> vector<32x128xf32>
    %c0_3 = arith.constant 0 : index
    %c0_4 = arith.constant 0 : index
    %3 = vector.load %arg4[%c0_3, %c0_4] : memref<1x128xf32, #tpu.memory_space<vmem>>, vector<1x128xf32>
    %4 = vector.broadcast %3 : vector<1x128xf32> to vector<32x128xf32>
    %5 = arith.mulf %2, %4 : vector<32x128xf32>
    %c0_5 = arith.constant 0 : index
    %c0_6 = arith.constant 0 : index
    %6 = vector.load %arg5[%c0_5, %c0_6] : memref<1x128xf32, #tpu.memory_space<vmem>>, vector<1x128xf32>
    %7 = vector.broadcast %6 : vector<1x128xf32> to vector<32x128xf32>
    %8 = arith.addf %5, %7 : vector<32x128xf32>
    %9 = arith.truncf %8 : vector<32x128xf32> to vector<32x128xbf16>
    %c0_7 = arith.constant 0 : index
    %c0_8 = arith.constant 0 : index
    %10 = vector.load %arg6[%c0_7, %c0_8] : memref<32x128xbf16, #tpu.memory_space<vmem>>, vector<32x128xbf16>
    tpu.vector_store %arg6[%c0_7, %c0_8], %9 {strides = array<i32>} : memref<32x128xbf16, #tpu.memory_space<vmem>>, vector<32x128xbf16>,
    return
  }
  func.func @transform_0(%arg0: i32, %arg1: i32) -> (i32, i32) {
    %c0_i32 = arith.constant 0 : i32
    %c0_i32_0 = arith.constant 0 : i32
    return %arg0, %c0_i32 : i32, i32
  }
  func.func @transform_1(%arg0: i32, %arg1: i32) -> (i32, i32) {
    %c0_i32 = arith.constant 0 : i32
    %c0_i32_0 = arith.constant 0 : i32
    return %c0_i32, %arg1 : i32, i32
  }
  func.func @transform_2(%arg0: i32, %arg1: i32) -> (i32, i32) {
    %c0_i32 = arith.constant 0 : i32
    %c0_i32_0 = arith.constant 0 : i32
    return %c0_i32, %arg1 : i32, i32
  }
  func.func @transform_3(%arg0: i32, %arg1: i32) -> (i32, i32) {
    %c0_i32 = arith.constant 0 : i32
    %c0_i32_0 = arith.constant 0 : i32
    return %c0_i32, %arg1 : i32, i32
  }
  func.func @transform_4(%arg0: i32, %arg1: i32) -> (i32, i32) {
    %c0_i32 = arith.constant 0 : i32
    return %arg0, %arg1 : i32, i32
  }
}

module attributes {stable_mosaic.version = 11 : i64} {
  func.func @_conv_bn_add_relu_kernel(%arg0: i32, %arg1: i32, %arg2: memref<32x256xbf16, #tpu.memory_space<vmem>>, %arg3: memref<256x128xbf16, #tpu.memory_space<vmem>>, %arg4: memref<1x128xf32, #tpu.memory_space<vmem>>, %arg5: memref<1x128xf32, #tpu.memory_space<vmem>>, %arg6: memref<32x128xbf16, #tpu.memory_space<vmem>>, %arg7: memref<32x128xbf16, #tpu.memory_space<vmem>>) attributes {dimension_semantics = [#tpu.dimension_semantics<parallel>, #tpu.dimension_semantics<parallel>], iteration_bounds = array<i64: 1, 1>, scalar_prefetch = 0 : i64, scratch_operands = 0 : i64, tpu.core_type = #tpu.core_type<tc>, window_params = [{transform_indices = @transform_0, window_bounds = array<i64: 32, 256>}, {transform_indices = @transform_1, window_bounds = array<i64: 256, 128>}, {transform_indices = @transform_2, window_bounds = array<i64: 1, 128>}, {transform_indices = @transform_3, window_bounds = array<i64: 1, 128>}, {transform_indices = @transform_4, window_bounds = array<i64: 32, 128>}, {transform_indices = @transform_5, window_bounds = array<i64: 32, 128>}]} {
    %c0 = arith.constant 0 : index
    %c0_0 = arith.constant 0 : index
    %0 = vector.load %arg2[%c0, %c0_0] : memref<32x256xbf16, #tpu.memory_space<vmem>>, vector<32x256xbf16>
    %c0_1 = arith.constant 0 : index
    %c0_2 = arith.constant 0 : index
    %1 = vector.load %arg3[%c0_1, %c0_2] : memref<256x128xbf16, #tpu.memory_space<vmem>>, vector<256x128xbf16>
    %cst = arith.constant dense<0.000000e+00> : vector<32x128xf32>
    %2 = tpu.matmul %0, %1, %cst {dimension_numbers = #tpu.dot_dimension_numbers<[1], [0], [0], [1], [0, 0, 1, 1], [], []>} : vector<32x256xbf16>, vector<256x128xbf16>, vector<32x128xf32> -> vector<32x128xf32>
    %c0_3 = arith.constant 0 : index
    %c0_4 = arith.constant 0 : index
    %3 = vector.load %arg4[%c0_3, %c0_4] : memref<1x128xf32, #tpu.memory_space<vmem>>, vector<1x128xf32>
    %4 = vector.broadcast %3 : vector<1x128xf32> to vector<32x128xf32>
    %5 = arith.mulf %2, %4 : vector<32x128xf32>
    %c0_5 = arith.constant 0 : index
    %c0_6 = arith.constant 0 : index
    %6 = vector.load %arg5[%c0_5, %c0_6] : memref<1x128xf32, #tpu.memory_space<vmem>>, vector<1x128xf32>
    %7 = vector.broadcast %6 : vector<1x128xf32> to vector<32x128xf32>
    %8 = arith.addf %5, %7 : vector<32x128xf32>
    %c0_7 = arith.constant 0 : index
    %c0_8 = arith.constant 0 : index
    %9 = vector.load %arg6[%c0_7, %c0_8] : memref<32x128xbf16, #tpu.memory_space<vmem>>, vector<32x128xbf16>
    %10 = arith.extf %9 : vector<32x128xbf16> to vector<32x128xf32>
    %11 = arith.addf %8, %10 : vector<32x128xf32>
    %cst_9 = arith.constant 0.000000e+00 : f32
    %12 = vector.broadcast %cst_9 : f32 to vector<32x128xf32>
    %13 = arith.maximumf %11, %12 : vector<32x128xf32>
    %14 = arith.truncf %13 : vector<32x128xf32> to vector<32x128xbf16>
    %c0_10 = arith.constant 0 : index
    %c0_11 = arith.constant 0 : index
    %15 = vector.load %arg7[%c0_10, %c0_11] : memref<32x128xbf16, #tpu.memory_space<vmem>>, vector<32x128xbf16>
    tpu.vector_store %arg7[%c0_10, %c0_11], %14 {strides = array<i32>} : memref<32x128xbf16, #tpu.memory_space<vmem>>, vector<32x128xbf16>,
    return
  }
  func.func @transform_0(%arg0: i32, %arg1: i32) -> (i32, i32) {
    %c0_i32 = arith.constant 0 : i32
    %c0_i32_0 = arith.constant 0 : i32
    return %arg0, %c0_i32 : i32, i32
  }
  func.func @transform_1(%arg0: i32, %arg1: i32) -> (i32, i32) {
    %c0_i32 = arith.constant 0 : i32
    %c0_i32_0 = arith.constant 0 : i32
    return %c0_i32, %arg1 : i32, i32
  }
  func.func @transform_2(%arg0: i32, %arg1: i32) -> (i32, i32) {
    %c0_i32 = arith.constant 0 : i32
    %c0_i32_0 = arith.constant 0 : i32
    return %c0_i32, %arg1 : i32, i32
  }
  func.func @transform_3(%arg0: i32, %arg1: i32) -> (i32, i32) {
    %c0_i32 = arith.constant 0 : i32
    %c0_i32_0 = arith.constant 0 : i32
    return %c0_i32, %arg1 : i32, i32
  }
  func.func @transform_4(%arg0: i32, %arg1: i32) -> (i32, i32) {
    %c0_i32 = arith.constant 0 : i32
    return %arg0, %arg1 : i32, i32
  }
  func.func @transform_5(%arg0: i32, %arg1: i32) -> (i32, i32) {
    %c0_i32 = arith.constant 0 : i32
    return %arg0, %arg1 : i32, i32
  }
}

module attributes {stable_mosaic.version = 11 : i64} {
  func.func @_conv_bn_kernel(%arg0: i32, %arg1: i32, %arg2: memref<16x256xbf16, #tpu.memory_space<vmem>>, %arg3: memref<256x128xbf16, #tpu.memory_space<vmem>>, %arg4: memref<1x128xf32, #tpu.memory_space<vmem>>, %arg5: memref<1x128xf32, #tpu.memory_space<vmem>>, %arg6: memref<16x128xbf16, #tpu.memory_space<vmem>>) attributes {dimension_semantics = [#tpu.dimension_semantics<parallel>, #tpu.dimension_semantics<parallel>], iteration_bounds = array<i64: 1, 1>, scalar_prefetch = 0 : i64, scratch_operands = 0 : i64, tpu.core_type = #tpu.core_type<tc>, window_params = [{transform_indices = @transform_0, window_bounds = array<i64: 16, 256>}, {transform_indices = @transform_1, window_bounds = array<i64: 256, 128>}, {transform_indices = @transform_2, window_bounds = array<i64: 1, 128>}, {transform_indices = @transform_3, window_bounds = array<i64: 1, 128>}, {transform_indices = @transform_4, window_bounds = array<i64: 16, 128>}]} {
    %c0 = arith.constant 0 : index
    %c0_0 = arith.constant 0 : index
    %0 = vector.load %arg2[%c0, %c0_0] : memref<16x256xbf16, #tpu.memory_space<vmem>>, vector<16x256xbf16>
    %c0_1 = arith.constant 0 : index
    %c0_2 = arith.constant 0 : index
    %1 = vector.load %arg3[%c0_1, %c0_2] : memref<256x128xbf16, #tpu.memory_space<vmem>>, vector<256x128xbf16>
    %cst = arith.constant dense<0.000000e+00> : vector<16x128xf32>
    %2 = tpu.matmul %0, %1, %cst {dimension_numbers = #tpu.dot_dimension_numbers<[1], [0], [0], [1], [0, 0, 1, 1], [], []>} : vector<16x256xbf16>, vector<256x128xbf16>, vector<16x128xf32> -> vector<16x128xf32>
    %c0_3 = arith.constant 0 : index
    %c0_4 = arith.constant 0 : index
    %3 = vector.load %arg4[%c0_3, %c0_4] : memref<1x128xf32, #tpu.memory_space<vmem>>, vector<1x128xf32>
    %4 = vector.broadcast %3 : vector<1x128xf32> to vector<16x128xf32>
    %5 = arith.mulf %2, %4 : vector<16x128xf32>
    %c0_5 = arith.constant 0 : index
    %c0_6 = arith.constant 0 : index
    %6 = vector.load %arg5[%c0_5, %c0_6] : memref<1x128xf32, #tpu.memory_space<vmem>>, vector<1x128xf32>
    %7 = vector.broadcast %6 : vector<1x128xf32> to vector<16x128xf32>
    %8 = arith.addf %5, %7 : vector<16x128xf32>
    %cst_7 = arith.constant 0.000000e+00 : f32
    %9 = vector.broadcast %cst_7 : f32 to vector<16x128xf32>
    %10 = arith.maximumf %8, %9 : vector<16x128xf32>
    %11 = arith.truncf %10 : vector<16x128xf32> to vector<16x128xbf16>
    %c0_8 = arith.constant 0 : index
    %c0_9 = arith.constant 0 : index
    %12 = vector.load %arg6[%c0_8, %c0_9] : memref<16x128xbf16, #tpu.memory_space<vmem>>, vector<16x128xbf16>
    tpu.vector_store %arg6[%c0_8, %c0_9], %11 {strides = array<i32>} : memref<16x128xbf16, #tpu.memory_space<vmem>>, vector<16x128xbf16>,
    return
  }
  func.func @transform_0(%arg0: i32, %arg1: i32) -> (i32, i32) {
    %c0_i32 = arith.constant 0 : i32
    %c0_i32_0 = arith.constant 0 : i32
    return %arg0, %c0_i32 : i32, i32
  }
  func.func @transform_1(%arg0: i32, %arg1: i32) -> (i32, i32) {
    %c0_i32 = arith.constant 0 : i32
    %c0_i32_0 = arith.constant 0 : i32
    return %c0_i32, %arg1 : i32, i32
  }
  func.func @transform_2(%arg0: i32, %arg1: i32) -> (i32, i32) {
    %c0_i32 = arith.constant 0 : i32
    %c0_i32_0 = arith.constant 0 : i32
    return %c0_i32, %arg1 : i32, i32
  }
  func.func @transform_3(%arg0: i32, %arg1: i32) -> (i32, i32) {
    %c0_i32 = arith.constant 0 : i32
    %c0_i32_0 = arith.constant 0 : i32
    return %c0_i32, %arg1 : i32, i32
  }
  func.func @transform_4(%arg0: i32, %arg1: i32) -> (i32, i32) {
    %c0_i32 = arith.constant 0 : i32
    return %arg0, %arg1 : i32, i32
  }
}

module attributes {stable_mosaic.version = 11 : i64} {
  func.func @_conv_bn_kernel(%arg0: i32, %arg1: i32, %arg2: memref<16x128xbf16, #tpu.memory_space<vmem>>, %arg3: memref<128x128xbf16, #tpu.memory_space<vmem>>, %arg4: memref<1x128xf32, #tpu.memory_space<vmem>>, %arg5: memref<1x128xf32, #tpu.memory_space<vmem>>, %arg6: memref<16x128xbf16, #tpu.memory_space<vmem>>) attributes {dimension_semantics = [#tpu.dimension_semantics<parallel>, #tpu.dimension_semantics<parallel>], iteration_bounds = array<i64: 1, 1>, scalar_prefetch = 0 : i64, scratch_operands = 0 : i64, tpu.core_type = #tpu.core_type<tc>, window_params = [{transform_indices = @transform_0, window_bounds = array<i64: 16, 128>}, {transform_indices = @transform_1, window_bounds = array<i64: 128, 128>}, {transform_indices = @transform_2, window_bounds = array<i64: 1, 128>}, {transform_indices = @transform_3, window_bounds = array<i64: 1, 128>}, {transform_indices = @transform_4, window_bounds = array<i64: 16, 128>}]} {
    %c0 = arith.constant 0 : index
    %c0_0 = arith.constant 0 : index
    %0 = vector.load %arg2[%c0, %c0_0] : memref<16x128xbf16, #tpu.memory_space<vmem>>, vector<16x128xbf16>
    %c0_1 = arith.constant 0 : index
    %c0_2 = arith.constant 0 : index
    %1 = vector.load %arg3[%c0_1, %c0_2] : memref<128x128xbf16, #tpu.memory_space<vmem>>, vector<128x128xbf16>
    %cst = arith.constant dense<0.000000e+00> : vector<16x128xf32>
    %2 = tpu.matmul %0, %1, %cst {dimension_numbers = #tpu.dot_dimension_numbers<[1], [0], [0], [1], [0, 0, 1, 1], [], []>} : vector<16x128xbf16>, vector<128x128xbf16>, vector<16x128xf32> -> vector<16x128xf32>
    %c0_3 = arith.constant 0 : index
    %c0_4 = arith.constant 0 : index
    %3 = vector.load %arg4[%c0_3, %c0_4] : memref<1x128xf32, #tpu.memory_space<vmem>>, vector<1x128xf32>
    %4 = vector.broadcast %3 : vector<1x128xf32> to vector<16x128xf32>
    %5 = arith.mulf %2, %4 : vector<16x128xf32>
    %c0_5 = arith.constant 0 : index
    %c0_6 = arith.constant 0 : index
    %6 = vector.load %arg5[%c0_5, %c0_6] : memref<1x128xf32, #tpu.memory_space<vmem>>, vector<1x128xf32>
    %7 = vector.broadcast %6 : vector<1x128xf32> to vector<16x128xf32>
    %8 = arith.addf %5, %7 : vector<16x128xf32>
    %9 = arith.truncf %8 : vector<16x128xf32> to vector<16x128xbf16>
    %c0_7 = arith.constant 0 : index
    %c0_8 = arith.constant 0 : index
    %10 = vector.load %arg6[%c0_7, %c0_8] : memref<16x128xbf16, #tpu.memory_space<vmem>>, vector<16x128xbf16>
    tpu.vector_store %arg6[%c0_7, %c0_8], %9 {strides = array<i32>} : memref<16x128xbf16, #tpu.memory_space<vmem>>, vector<16x128xbf16>,
    return
  }
  func.func @transform_0(%arg0: i32, %arg1: i32) -> (i32, i32) {
    %c0_i32 = arith.constant 0 : i32
    %c0_i32_0 = arith.constant 0 : i32
    return %arg0, %c0_i32 : i32, i32
  }
  func.func @transform_1(%arg0: i32, %arg1: i32) -> (i32, i32) {
    %c0_i32 = arith.constant 0 : i32
    %c0_i32_0 = arith.constant 0 : i32
    return %c0_i32, %arg1 : i32, i32
  }
  func.func @transform_2(%arg0: i32, %arg1: i32) -> (i32, i32) {
    %c0_i32 = arith.constant 0 : i32
    %c0_i32_0 = arith.constant 0 : i32
    return %c0_i32, %arg1 : i32, i32
  }
  func.func @transform_3(%arg0: i32, %arg1: i32) -> (i32, i32) {
    %c0_i32 = arith.constant 0 : i32
    %c0_i32_0 = arith.constant 0 : i32
    return %c0_i32, %arg1 : i32, i32
  }
  func.func @transform_4(%arg0: i32, %arg1: i32) -> (i32, i32) {
    %c0_i32 = arith.constant 0 : i32
    return %arg0, %arg1 : i32, i32
  }
}

module attributes {stable_mosaic.version = 11 : i64} {
  func.func @_conv_bn_add_relu_kernel(%arg0: i32, %arg1: i32, %arg2: memref<16x384xbf16, #tpu.memory_space<vmem>>, %arg3: memref<384x128xbf16, #tpu.memory_space<vmem>>, %arg4: memref<1x128xf32, #tpu.memory_space<vmem>>, %arg5: memref<1x128xf32, #tpu.memory_space<vmem>>, %arg6: memref<16x128xbf16, #tpu.memory_space<vmem>>, %arg7: memref<16x128xbf16, #tpu.memory_space<vmem>>) attributes {dimension_semantics = [#tpu.dimension_semantics<parallel>, #tpu.dimension_semantics<parallel>], iteration_bounds = array<i64: 1, 1>, scalar_prefetch = 0 : i64, scratch_operands = 0 : i64, tpu.core_type = #tpu.core_type<tc>, window_params = [{transform_indices = @transform_0, window_bounds = array<i64: 16, 384>}, {transform_indices = @transform_1, window_bounds = array<i64: 384, 128>}, {transform_indices = @transform_2, window_bounds = array<i64: 1, 128>}, {transform_indices = @transform_3, window_bounds = array<i64: 1, 128>}, {transform_indices = @transform_4, window_bounds = array<i64: 16, 128>}, {transform_indices = @transform_5, window_bounds = array<i64: 16, 128>}]} {
    %c0 = arith.constant 0 : index
    %c0_0 = arith.constant 0 : index
    %0 = vector.load %arg2[%c0, %c0_0] : memref<16x384xbf16, #tpu.memory_space<vmem>>, vector<16x384xbf16>
    %c0_1 = arith.constant 0 : index
    %c0_2 = arith.constant 0 : index
    %1 = vector.load %arg3[%c0_1, %c0_2] : memref<384x128xbf16, #tpu.memory_space<vmem>>, vector<384x128xbf16>
    %cst = arith.constant dense<0.000000e+00> : vector<16x128xf32>
    %2 = tpu.matmul %0, %1, %cst {dimension_numbers = #tpu.dot_dimension_numbers<[1], [0], [0], [1], [0, 0, 1, 1], [], []>} : vector<16x384xbf16>, vector<384x128xbf16>, vector<16x128xf32> -> vector<16x128xf32>
    %c0_3 = arith.constant 0 : index
    %c0_4 = arith.constant 0 : index
    %3 = vector.load %arg4[%c0_3, %c0_4] : memref<1x128xf32, #tpu.memory_space<vmem>>, vector<1x128xf32>
    %4 = vector.broadcast %3 : vector<1x128xf32> to vector<16x128xf32>
    %5 = arith.mulf %2, %4 : vector<16x128xf32>
    %c0_5 = arith.constant 0 : index
    %c0_6 = arith.constant 0 : index
    %6 = vector.load %arg5[%c0_5, %c0_6] : memref<1x128xf32, #tpu.memory_space<vmem>>, vector<1x128xf32>
    %7 = vector.broadcast %6 : vector<1x128xf32> to vector<16x128xf32>
    %8 = arith.addf %5, %7 : vector<16x128xf32>
    %c0_7 = arith.constant 0 : index
    %c0_8 = arith.constant 0 : index
    %9 = vector.load %arg6[%c0_7, %c0_8] : memref<16x128xbf16, #tpu.memory_space<vmem>>, vector<16x128xbf16>
    %10 = arith.extf %9 : vector<16x128xbf16> to vector<16x128xf32>
    %11 = arith.addf %8, %10 : vector<16x128xf32>
    %cst_9 = arith.constant 0.000000e+00 : f32
    %12 = vector.broadcast %cst_9 : f32 to vector<16x128xf32>
    %13 = arith.maximumf %11, %12 : vector<16x128xf32>
    %14 = arith.truncf %13 : vector<16x128xf32> to vector<16x128xbf16>
    %c0_10 = arith.constant 0 : index
    %c0_11 = arith.constant 0 : index
    %15 = vector.load %arg7[%c0_10, %c0_11] : memref<16x128xbf16, #tpu.memory_space<vmem>>, vector<16x128xbf16>
    tpu.vector_store %arg7[%c0_10, %c0_11], %14 {strides = array<i32>} : memref<16x128xbf16, #tpu.memory_space<vmem>>, vector<16x128xbf16>,
    return
  }
  func.func @transform_0(%arg0: i32, %arg1: i32) -> (i32, i32) {
    %c0_i32 = arith.constant 0 : i32
    %c0_i32_0 = arith.constant 0 : i32
    return %arg0, %c0_i32 : i32, i32
  }
  func.func @transform_1(%arg0: i32, %arg1: i32) -> (i32, i32) {
    %c0_i32 = arith.constant 0 : i32
    %c0_i32_0 = arith.constant 0 : i32
    return %c0_i32, %arg1 : i32, i32
  }
  func.func @transform_2(%arg0: i32, %arg1: i32) -> (i32, i32) {
    %c0_i32 = arith.constant 0 : i32
    %c0_i32_0 = arith.constant 0 : i32
    return %c0_i32, %arg1 : i32, i32
  }
  func.func @transform_3(%arg0: i32, %arg1: i32) -> (i32, i32) {
    %c0_i32 = arith.constant 0 : i32
    %c0_i32_0 = arith.constant 0 : i32
    return %c0_i32, %arg1 : i32, i32
  }
  func.func @transform_4(%arg0: i32, %arg1: i32) -> (i32, i32) {
    %c0_i32 = arith.constant 0 : i32
    return %arg0, %arg1 : i32, i32
  }
  func.func @transform_5(%arg0: i32, %arg1: i32) -> (i32, i32) {
    %c0_i32 = arith.constant 0 : i32
    return %arg0, %arg1 : i32, i32
  }
}

module attributes {stable_mosaic.version = 11 : i64} {
  func.func @_conv_bn_kernel(%arg0: i32, %arg1: i32, %arg2: memref<16x384xbf16, #tpu.memory_space<vmem>>, %arg3: memref<384x128xbf16, #tpu.memory_space<vmem>>, %arg4: memref<1x128xf32, #tpu.memory_space<vmem>>, %arg5: memref<1x128xf32, #tpu.memory_space<vmem>>, %arg6: memref<16x128xbf16, #tpu.memory_space<vmem>>) attributes {dimension_semantics = [#tpu.dimension_semantics<parallel>, #tpu.dimension_semantics<parallel>], iteration_bounds = array<i64: 1, 1>, scalar_prefetch = 0 : i64, scratch_operands = 0 : i64, tpu.core_type = #tpu.core_type<tc>, window_params = [{transform_indices = @transform_0, window_bounds = array<i64: 16, 384>}, {transform_indices = @transform_1, window_bounds = array<i64: 384, 128>}, {transform_indices = @transform_2, window_bounds = array<i64: 1, 128>}, {transform_indices = @transform_3, window_bounds = array<i64: 1, 128>}, {transform_indices = @transform_4, window_bounds = array<i64: 16, 128>}]} {
    %c0 = arith.constant 0 : index
    %c0_0 = arith.constant 0 : index
    %0 = vector.load %arg2[%c0, %c0_0] : memref<16x384xbf16, #tpu.memory_space<vmem>>, vector<16x384xbf16>
    %c0_1 = arith.constant 0 : index
    %c0_2 = arith.constant 0 : index
    %1 = vector.load %arg3[%c0_1, %c0_2] : memref<384x128xbf16, #tpu.memory_space<vmem>>, vector<384x128xbf16>
    %cst = arith.constant dense<0.000000e+00> : vector<16x128xf32>
    %2 = tpu.matmul %0, %1, %cst {dimension_numbers = #tpu.dot_dimension_numbers<[1], [0], [0], [1], [0, 0, 1, 1], [], []>} : vector<16x384xbf16>, vector<384x128xbf16>, vector<16x128xf32> -> vector<16x128xf32>
    %c0_3 = arith.constant 0 : index
    %c0_4 = arith.constant 0 : index
    %3 = vector.load %arg4[%c0_3, %c0_4] : memref<1x128xf32, #tpu.memory_space<vmem>>, vector<1x128xf32>
    %4 = vector.broadcast %3 : vector<1x128xf32> to vector<16x128xf32>
    %5 = arith.mulf %2, %4 : vector<16x128xf32>
    %c0_5 = arith.constant 0 : index
    %c0_6 = arith.constant 0 : index
    %6 = vector.load %arg5[%c0_5, %c0_6] : memref<1x128xf32, #tpu.memory_space<vmem>>, vector<1x128xf32>
    %7 = vector.broadcast %6 : vector<1x128xf32> to vector<16x128xf32>
    %8 = arith.addf %5, %7 : vector<16x128xf32>
    %cst_7 = arith.constant 0.000000e+00 : f32
    %9 = vector.broadcast %cst_7 : f32 to vector<16x128xf32>
    %10 = arith.maximumf %8, %9 : vector<16x128xf32>
    %11 = arith.truncf %10 : vector<16x128xf32> to vector<16x128xbf16>
    %c0_8 = arith.constant 0 : index
    %c0_9 = arith.constant 0 : index
    %12 = vector.load %arg6[%c0_8, %c0_9] : memref<16x128xbf16, #tpu.memory_space<vmem>>, vector<16x128xbf16>
    tpu.vector_store %arg6[%c0_8, %c0_9], %11 {strides = array<i32>} : memref<16x128xbf16, #tpu.memory_space<vmem>>, vector<16x128xbf16>,
    return
  }
  func.func @transform_0(%arg0: i32, %arg1: i32) -> (i32, i32) {
    %c0_i32 = arith.constant 0 : i32
    %c0_i32_0 = arith.constant 0 : i32
    return %arg0, %c0_i32 : i32, i32
  }
  func.func @transform_1(%arg0: i32, %arg1: i32) -> (i32, i32) {
    %c0_i32 = arith.constant 0 : i32
    %c0_i32_0 = arith.constant 0 : i32
    return %c0_i32, %arg1 : i32, i32
  }
  func.func @transform_2(%arg0: i32, %arg1: i32) -> (i32, i32) {
    %c0_i32 = arith.constant 0 : i32
    %c0_i32_0 = arith.constant 0 : i32
    return %c0_i32, %arg1 : i32, i32
  }
  func.func @transform_3(%arg0: i32, %arg1: i32) -> (i32, i32) {
    %c0_i32 = arith.constant 0 : i32
    %c0_i32_0 = arith.constant 0 : i32
    return %c0_i32, %arg1 : i32, i32
  }
  func.func @transform_4(%arg0: i32, %arg1: i32) -> (i32, i32) {
    %c0_i32 = arith.constant 0 : i32
    return %arg0, %arg1 : i32, i32
  }
}

module attributes {stable_mosaic.version = 11 : i64} {
  func.func @_conv_bn_add_relu_kernel(%arg0: i32, %arg1: i32, %arg2: memref<16x640xbf16, #tpu.memory_space<vmem>>, %arg3: memref<640x128xbf16, #tpu.memory_space<vmem>>, %arg4: memref<1x128xf32, #tpu.memory_space<vmem>>, %arg5: memref<1x128xf32, #tpu.memory_space<vmem>>, %arg6: memref<16x128xbf16, #tpu.memory_space<vmem>>, %arg7: memref<16x128xbf16, #tpu.memory_space<vmem>>) attributes {dimension_semantics = [#tpu.dimension_semantics<parallel>, #tpu.dimension_semantics<parallel>], iteration_bounds = array<i64: 1, 1>, scalar_prefetch = 0 : i64, scratch_operands = 0 : i64, tpu.core_type = #tpu.core_type<tc>, window_params = [{transform_indices = @transform_0, window_bounds = array<i64: 16, 640>}, {transform_indices = @transform_1, window_bounds = array<i64: 640, 128>}, {transform_indices = @transform_2, window_bounds = array<i64: 1, 128>}, {transform_indices = @transform_3, window_bounds = array<i64: 1, 128>}, {transform_indices = @transform_4, window_bounds = array<i64: 16, 128>}, {transform_indices = @transform_5, window_bounds = array<i64: 16, 128>}]} {
    %c0 = arith.constant 0 : index
    %c0_0 = arith.constant 0 : index
    %0 = vector.load %arg2[%c0, %c0_0] : memref<16x640xbf16, #tpu.memory_space<vmem>>, vector<16x640xbf16>
    %c0_1 = arith.constant 0 : index
    %c0_2 = arith.constant 0 : index
    %1 = vector.load %arg3[%c0_1, %c0_2] : memref<640x128xbf16, #tpu.memory_space<vmem>>, vector<640x128xbf16>
    %cst = arith.constant dense<0.000000e+00> : vector<16x128xf32>
    %2 = tpu.matmul %0, %1, %cst {dimension_numbers = #tpu.dot_dimension_numbers<[1], [0], [0], [1], [0, 0, 1, 1], [], []>} : vector<16x640xbf16>, vector<640x128xbf16>, vector<16x128xf32> -> vector<16x128xf32>
    %c0_3 = arith.constant 0 : index
    %c0_4 = arith.constant 0 : index
    %3 = vector.load %arg4[%c0_3, %c0_4] : memref<1x128xf32, #tpu.memory_space<vmem>>, vector<1x128xf32>
    %4 = vector.broadcast %3 : vector<1x128xf32> to vector<16x128xf32>
    %5 = arith.mulf %2, %4 : vector<16x128xf32>
    %c0_5 = arith.constant 0 : index
    %c0_6 = arith.constant 0 : index
    %6 = vector.load %arg5[%c0_5, %c0_6] : memref<1x128xf32, #tpu.memory_space<vmem>>, vector<1x128xf32>
    %7 = vector.broadcast %6 : vector<1x128xf32> to vector<16x128xf32>
    %8 = arith.addf %5, %7 : vector<16x128xf32>
    %c0_7 = arith.constant 0 : index
    %c0_8 = arith.constant 0 : index
    %9 = vector.load %arg6[%c0_7, %c0_8] : memref<16x128xbf16, #tpu.memory_space<vmem>>, vector<16x128xbf16>
    %10 = arith.extf %9 : vector<16x128xbf16> to vector<16x128xf32>
    %11 = arith.addf %8, %10 : vector<16x128xf32>
    %cst_9 = arith.constant 0.000000e+00 : f32
    %12 = vector.broadcast %cst_9 : f32 to vector<16x128xf32>
    %13 = arith.maximumf %11, %12 : vector<16x128xf32>
    %14 = arith.truncf %13 : vector<16x128xf32> to vector<16x128xbf16>
    %c0_10 = arith.constant 0 : index
    %c0_11 = arith.constant 0 : index
    %15 = vector.load %arg7[%c0_10, %c0_11] : memref<16x128xbf16, #tpu.memory_space<vmem>>, vector<16x128xbf16>
    tpu.vector_store %arg7[%c0_10, %c0_11], %14 {strides = array<i32>} : memref<16x128xbf16, #tpu.memory_space<vmem>>, vector<16x128xbf16>,
    return
  }
  func.func @transform_0(%arg0: i32, %arg1: i32) -> (i32, i32) {
    %c0_i32 = arith.constant 0 : i32
    %c0_i32_0 = arith.constant 0 : i32
    return %arg0, %c0_i32 : i32, i32
  }
  func.func @transform_1(%arg0: i32, %arg1: i32) -> (i32, i32) {
    %c0_i32 = arith.constant 0 : i32
    %c0_i32_0 = arith.constant 0 : i32
    return %c0_i32, %arg1 : i32, i32
  }
  func.func @transform_2(%arg0: i32, %arg1: i32) -> (i32, i32) {
    %c0_i32 = arith.constant 0 : i32
    %c0_i32_0 = arith.constant 0 : i32
    return %c0_i32, %arg1 : i32, i32
  }
  func.func @transform_3(%arg0: i32, %arg1: i32) -> (i32, i32) {
    %c0_i32 = arith.constant 0 : i32
    %c0_i32_0 = arith.constant 0 : i32
    return %c0_i32, %arg1 : i32, i32
  }
  func.func @transform_4(%arg0: i32, %arg1: i32) -> (i32, i32) {
    %c0_i32 = arith.constant 0 : i32
    return %arg0, %arg1 : i32, i32
  }
  func.func @transform_5(%arg0: i32, %arg1: i32) -> (i32, i32) {
    %c0_i32 = arith.constant 0 : i32
    return %arg0, %arg1 : i32, i32
  }
}

module attributes {stable_mosaic.version = 11 : i64} {
  func.func @_conv_bn_kernel(%arg0: i32, %arg1: i32, %arg2: memref<16x640xbf16, #tpu.memory_space<vmem>>, %arg3: memref<640x128xbf16, #tpu.memory_space<vmem>>, %arg4: memref<1x128xf32, #tpu.memory_space<vmem>>, %arg5: memref<1x128xf32, #tpu.memory_space<vmem>>, %arg6: memref<16x128xbf16, #tpu.memory_space<vmem>>) attributes {dimension_semantics = [#tpu.dimension_semantics<parallel>, #tpu.dimension_semantics<parallel>], iteration_bounds = array<i64: 1, 1>, scalar_prefetch = 0 : i64, scratch_operands = 0 : i64, tpu.core_type = #tpu.core_type<tc>, window_params = [{transform_indices = @transform_0, window_bounds = array<i64: 16, 640>}, {transform_indices = @transform_1, window_bounds = array<i64: 640, 128>}, {transform_indices = @transform_2, window_bounds = array<i64: 1, 128>}, {transform_indices = @transform_3, window_bounds = array<i64: 1, 128>}, {transform_indices = @transform_4, window_bounds = array<i64: 16, 128>}]} {
    %c0 = arith.constant 0 : index
    %c0_0 = arith.constant 0 : index
    %0 = vector.load %arg2[%c0, %c0_0] : memref<16x640xbf16, #tpu.memory_space<vmem>>, vector<16x640xbf16>
    %c0_1 = arith.constant 0 : index
    %c0_2 = arith.constant 0 : index
    %1 = vector.load %arg3[%c0_1, %c0_2] : memref<640x128xbf16, #tpu.memory_space<vmem>>, vector<640x128xbf16>
    %cst = arith.constant dense<0.000000e+00> : vector<16x128xf32>
    %2 = tpu.matmul %0, %1, %cst {dimension_numbers = #tpu.dot_dimension_numbers<[1], [0], [0], [1], [0, 0, 1, 1], [], []>} : vector<16x640xbf16>, vector<640x128xbf16>, vector<16x128xf32> -> vector<16x128xf32>
    %c0_3 = arith.constant 0 : index
    %c0_4 = arith.constant 0 : index
    %3 = vector.load %arg4[%c0_3, %c0_4] : memref<1x128xf32, #tpu.memory_space<vmem>>, vector<1x128xf32>
    %4 = vector.broadcast %3 : vector<1x128xf32> to vector<16x128xf32>
    %5 = arith.mulf %2, %4 : vector<16x128xf32>
    %c0_5 = arith.constant 0 : index
    %c0_6 = arith.constant 0 : index
    %6 = vector.load %arg5[%c0_5, %c0_6] : memref<1x128xf32, #tpu.memory_space<vmem>>, vector<1x128xf32>
    %7 = vector.broadcast %6 : vector<1x128xf32> to vector<16x128xf32>
    %8 = arith.addf %5, %7 : vector<16x128xf32>
    %cst_7 = arith.constant 0.000000e+00 : f32
    %9 = vector.broadcast %cst_7 : f32 to vector<16x128xf32>
    %10 = arith.maximumf %8, %9 : vector<16x128xf32>
    %11 = arith.truncf %10 : vector<16x128xf32> to vector<16x128xbf16>
    %c0_8 = arith.constant 0 : index
    %c0_9 = arith.constant 0 : index
    %12 = vector.load %arg6[%c0_8, %c0_9] : memref<16x128xbf16, #tpu.memory_space<vmem>>, vector<16x128xbf16>
    tpu.vector_store %arg6[%c0_8, %c0_9], %11 {strides = array<i32>} : memref<16x128xbf16, #tpu.memory_space<vmem>>, vector<16x128xbf16>,
    return
  }
  func.func @transform_0(%arg0: i32, %arg1: i32) -> (i32, i32) {
    %c0_i32 = arith.constant 0 : i32
    %c0_i32_0 = arith.constant 0 : i32
    return %arg0, %c0_i32 : i32, i32
  }
  func.func @transform_1(%arg0: i32, %arg1: i32) -> (i32, i32) {
    %c0_i32 = arith.constant 0 : i32
    %c0_i32_0 = arith.constant 0 : i32
    return %c0_i32, %arg1 : i32, i32
  }
  func.func @transform_2(%arg0: i32, %arg1: i32) -> (i32, i32) {
    %c0_i32 = arith.constant 0 : i32
    %c0_i32_0 = arith.constant 0 : i32
    return %c0_i32, %arg1 : i32, i32
  }
  func.func @transform_3(%arg0: i32, %arg1: i32) -> (i32, i32) {
    %c0_i32 = arith.constant 0 : i32
    %c0_i32_0 = arith.constant 0 : i32
    return %c0_i32, %arg1 : i32, i32
  }
  func.func @transform_4(%arg0: i32, %arg1: i32) -> (i32, i32) {
    %c0_i32 = arith.constant 0 : i32
    return %arg0, %arg1 : i32, i32
  }
}

</mosaic_0001>

<bundles_post_ra>
// kernel: resnet_backbone_forward.22
= control target key start
LH: loop header
LB: loop body
LE: loop exit
PB: predicated region body
PF: predicated region fallthrough
CT: control target
= control target key end

     0   :  { %s935_s15 = smov 0   ;;  %s1452_s0 = inlined_call_operand.vmem [shape: bf16[2,9,9,128], index: 0, kind: input, shape index: {}]   ;;  %s1453_s1 = inlined_call_operand.vmem [shape: bf16[2,9,9,128], index: 1, kind: input, shape index: {}]   ;;  %s1454_s2 = inlined_call_operand.vmem [shape: bf16[2,9,9,128], index: 2, kind: input, shape index: {}]   ;;  %s1455_s3 = inlined_call_operand.vmem [shape: bf16[2,9,9,128], index: 3, kind: input, shape index: {}]   ;;  %s1456_s4 = inlined_call_operand.vmem [shape: bf16[2,8,8,128], index: 4, kind: output, shape index: {}]  }
   0x1 LB: > { %s832_s16 = sadd.s32 4294967295, %s908_s15   ;;  %p836_p0 = scmp.ge.s32.totalorder %s908_s15, 1  ;;  %s908_s15 = sphi %s935_s15, %s14_s15  }
   0x2   : > { %p192_p1 = scmp.lt.s32.totalorder %s908_s15, 3 }
   0x4   : > { %p193_p2 = pnand %p836_p0, %p192_p1 }
   0x6   : > { %196 = sbr.rel (%p193_p2) target bundleno = 101 (0x65), region = 36 }
   0xb   : > { %p233_p3 = scmp.lt.s32.totalorder %s832_s16, 1  ;;  %vm396_vm0 = vcmask 1046528  }
   0xd   : > { %s1607_s16 = smov (!%p233_p3, %s832_s16), 1 }
   0xe   : > { %s946_s17 = smul.u32 72, %s1607_s16  ;;  %s869_s30 = sshll.u32 %s1607_s16, 5 }
   0xf   : > { %s257_s7 = scalar_lea.vmem %s1456_s4, %s869_s30 }
  0x10   : > { %s952_s20 = scalar_lea.vmem %s1452_s0, %s946_s17  ;;  %s958_s23 = scalar_lea.vmem %s1453_s1, %s946_s17 }
  0x11   : > { %v961_v0 = vld [vmem:[%s952_s20] sm:$0xf]  ;;  %v964_v1 = vld [vmem:[%s952_s20 + $0x8] sm:$0xf]  ;;  %v967_v2 = vld [vmem:[%s952_s20 + $0x10] sm:$0xf]  ;;  %s1002_s26 = scalar_lea.vmem %s1454_s2, %s946_s17  ;;  %s1025_s29 = scalar_lea.vmem %s1455_s3, %s946_s17 }
  0x12   : > { %v970_v3 = vld [vmem:[%s952_s20 + $0x18] sm:$0xf]  ;;  %v973_v4 = vld [vmem:[%s952_s20 + $0x20] sm:$0xf]  ;;  %v976_v5 = vld [vmem:[%s952_s20 + $0x28] sm:$0xf]  ;;  %v1464_v12 = vunpack.c.l.bf16 %v961_v0  ;;  %v1463_v13 = vunpack.c.l.bf16 %v964_v1  ;;  %v1462_v14 = vunpack.c.l.bf16 %v967_v2 }
  0x13   : > { %v979_v6 = vld [vmem:[%s952_s20 + $0x30] sm:$0xf]  ;;  %v982_v7 = vld [vmem:[%s952_s20 + $0x38] sm:$0xf]  ;;  %v266_v8 = vld [vmem:[%s958_s23] sm:$0xf]  ;;  %v1461_v15 = vunpack.c.l.bf16 %v970_v3  ;;  %v1460_v19 = vunpack.c.l.bf16 %v973_v4  ;;  %v1459_v20 = vunpack.c.l.bf16 %v976_v5 }
  0x14   : > { %v267_v9 = vld [vmem:[%s958_s23 + $0x8] sm:$0xf]  ;;  %v268_v10 = vld [vmem:[%s958_s23 + $0x10] sm:$0xf]  ;;  %v269_v11 = vld [vmem:[%s958_s23 + $0x18] sm:$0xf]  ;;  %v1458_v21 = vunpack.c.l.bf16 %v979_v6  ;;  %v340_v22 = vunpack.c.l.bf16 %v266_v8  ;;  %v1457_v33 = vunpack.c.l.bf16 %v982_v7 }
  0x15   : > { %v270_v16 = vld [vmem:[%s958_s23 + $0x20] sm:$0xf]  ;;  %v271_v17 = vld [vmem:[%s958_s23 + $0x28] sm:$0xf]  ;;  %v272_v18 = vld [vmem:[%s958_s23 + $0x30] sm:$0xf]  ;;  %v341_v25 = vunpack.c.l.bf16 %v267_v9  ;;  %v342_v26 = vunpack.c.l.bf16 %v268_v10  ;;  %v343_v27 = vunpack.c.l.bf16 %v269_v11 }
  0x16   : > { %v273_v23 = vld [vmem:[%s958_s23 + $0x38] sm:$0xf]  ;;  %v1006_v24 = vld [vmem:[%s952_s20 + $0x4] sm:$0x1]  ;;  %v344_v28 = vunpack.c.l.bf16 %v270_v16  ;;  %v1009_v29 = vld [vmem:[%s952_s20 + $0xc] sm:$0x1]  ;;  %v345_v34 = vunpack.c.l.bf16 %v271_v17  ;;  %v346_v35 = vunpack.c.l.bf16 %v272_v18  ;;  %v1047_v43 = vmax.f32 %v1464_v12, %v340_v22 }
  0x17   : > { %v1012_v30 = vld [vmem:[%s952_s20 + $0x14] sm:$0x1]  ;;  %v1015_v31 = vld [vmem:[%s952_s20 + $0x1c] sm:$0x1]  ;;  %v1018_v32 = vld [vmem:[%s952_s20 + $0x24] sm:$0x1]  ;;  %v347_v36 = vunpack.c.l.bf16 %v273_v23  ;;  %v1060_v47 = vmax.f32 %v1463_v13, %v341_v25  ;;  %v1064_v48 = vmax.f32 %v1462_v14, %v342_v26  ;;  %v1068_v49 = vmax.f32 %v1461_v15, %v343_v27 }
  0x18   : > { %v1028_v37 = vld [vmem:[%s952_s20 + $0x2c] sm:$0x1]  ;;  %v1031_v38 = vld [vmem:[%s952_s20 + $0x34] sm:$0x1]  ;;  %v1034_v39 = vld [vmem:[%s952_s20 + $0x3c] sm:$0x1]  ;;  %v1072_v50 = vmax.f32 %v1460_v19, %v344_v28  ;;  %v1085_v54 = vmax.f32 %v1459_v20, %v345_v34  ;;  %v1089_v55 = vmax.f32 %v1458_v21, %v346_v35 }
  0x19   : > { %v1037_v40 = vld [vmem:[%s1002_s26] sm:$0xf]  ;;  %v1040_v41 = vld [vmem:[%s1002_s26 + $0x8] sm:$0xf]  ;;  %v1043_v42 = vld [vmem:[%s1002_s26 + $0x10] sm:$0xf]  ;;  %v1093_v56 = vmax.f32 %v1457_v33, %v347_v36 }
  0x1a   : > { %v1050_v44 = vld [vmem:[%s1002_s26 + $0x18] sm:$0xf]  ;;  %v1053_v45 = vld [vmem:[%s1002_s26 + $0x20] sm:$0xf]  ;;  %v1056_v46 = vld [vmem:[%s1002_s26 + $0x28] sm:$0xf] }
  0x1b   : > { %v1075_v51 = vld [vmem:[%s1002_s26 + $0x30] sm:$0xf]  ;;  %v1078_v52 = vld [vmem:[%s1002_s26 + $0x38] sm:$0xf]  ;;  %v1081_v53 = vld [vmem:[%s1025_s29] sm:$0xf] }
  0x1c   : > { %v1097_v58 = vld [vmem:[%s1025_s29 + $0x8] sm:$0xf]  ;;  %v1100_v59 = vld [vmem:[%s1025_s29 + $0x10] sm:$0xf]  ;;  %v1103_v60 = vld [vmem:[%s1025_s29 + $0x18] sm:$0xf] }
  0x1d   : > { %v1110_v9 = vld [vmem:[%s1025_s29 + $0x20] sm:$0xf]  ;;  %v1113_v10 = vld [vmem:[%s1025_s29 + $0x28] sm:$0xf]  ;;  %v1116_v11 = vld [vmem:[%s1025_s29 + $0x30] sm:$0xf] }
  0x1e   : > { %v1123_v23 = vld [vmem:[%s1025_s29 + $0x38] sm:$0xf]  ;;  %v1126_v25 = vld [vmem:[%s1002_s26 + $0x4] sm:$0x1]  ;;  %v1129_v26 = vld [vmem:[%s1002_s26 + $0xc] sm:$0x1] }
  0x1f   : > { %v1136_v36 = vld [vmem:[%s1002_s26 + $0x14] sm:$0x1]  ;;  %v1139_v22 = vld [vmem:[%s1002_s26 + $0x1c] sm:$0x1]  ;;  %v1142_v18 = vld [vmem:[%s1002_s26 + $0x24] sm:$0x1] }
  0x20   : > { %1491 = vst [vmem:[#allocation2_spill] sm:$0xff] %v1139_v22  ;;  %v1149_v34 = vld [vmem:[%s1002_s26 + $0x2c] sm:$0x1]  ;;  %v1152_v35 = vld [vmem:[%s1002_s26 + $0x34] sm:$0x1] }
  0x21   : > { %1492 = vst [vmem:[#allocation3_spill] sm:$0xff] %v1142_v18  ;;  %v1155_v21 = vld [vmem:[%s1002_s26 + $0x3c] sm:$0x1]  ;;  %v1162_v28 = vld [vmem:[%s952_s20 + $0x8] sm:$0xf] }
  0x22   : > { %1493 = vst [vmem:[#allocation4_spill] sm:$0xff] %v1152_v35  ;;  %v1165_v20 = vld [vmem:[%s952_s20 + $0x10] sm:$0xf]  ;;  %v1168_v8 = vld [vmem:[%s952_s20 + $0x18] sm:$0xf] }
  0x23   : > { %1494 = vst [vmem:[#allocation5_spill] sm:$0xff] %v1155_v21  ;;  %v1175_v33 = vld [vmem:[%s952_s20 + $0x20] sm:$0xf]  ;;  %v1178_v27 = vld [vmem:[%s952_s20 + $0x28] sm:$0xf] }
  0x24   : > { %1495 = vst [vmem:[#allocation6_spill] sm:$0xff] %v1162_v28  ;;  %v1181_v15 = vld [vmem:[%s952_s20 + $0x30] sm:$0xf]  ;;  %v1188_v63 = vld [vmem:[%s952_s20 + $0x38] sm:$0xf] }
  0x25   : > { %1496 = vst [vmem:[#allocation7_spill] sm:$0xff] %v1165_v20  ;;  %v1191_v17 = vld [vmem:[%s952_s20 + $0x40] sm:$0xf]  ;;  %v1194_v61 = vld [vmem:[%s958_s23 + $0x8] sm:$0xf]  ;;  %v1515_v20 = vunpack.c.l.bf16 %v1012_v30 }
  0x26   : > { %1497 = vst [vmem:[#allocation8_spill] sm:$0xff] %v1168_v8  ;;  %v1201_v14 = vld [vmem:[%s958_s23 + $0x10] sm:$0xf]  ;;  %v1204_v16 = vld [vmem:[%s958_s23 + $0x18] sm:$0xf]  ;;  %v1514_v8 = vunpack.c.l.bf16 %v967_v2 }
  0x27   : > { %1498 = vst [vmem:[#allocation9_spill] sm:$0xff] %v1175_v33  ;;  %v1207_v12 = vld [vmem:[%s958_s23 + $0x20] sm:$0xf]  ;;  %v1214_v57 = vld [vmem:[%s958_s23 + $0x28] sm:$0xf]  ;;  %v404_v21 = vrot.slane %v1515_v20, 1 }
  0x28   : > { %1499 = vst [vmem:[#allocation10_spill] sm:$0xff] %v1178_v27  ;;  %v1217_v19 = vld [vmem:[%s958_s23 + $0x30] sm:$0xf]  ;;  %v1220_v28 = vld [vmem:[%s958_s23 + $0x38] sm:$0xf] }
  0x29   : > { %1500 = vst [vmem:[#allocation11_spill] sm:$0xff] %v1181_v15  ;;  %v1227_v13 = vld [vmem:[%s958_s23 + $0x40] sm:$0xf]  ;;  %v1230_v33 = vld [vmem:[%s952_s20 + $0xc] sm:$0x1] }
  0x2a   : > { %1501 = vst [vmem:[#allocation12_spill] sm:$0xff] %v1191_v17  ;;  %v1233_v62 = vld [vmem:[%s952_s20 + $0x14] sm:$0x1]  ;;  %v1240_v15 = vld [vmem:[%s952_s20 + $0x1c] sm:$0x1]  ;;  %v1512_v17 = vunpack.c.l.bf16 %v964_v1 }
  0x2b   : > { %1502 = vst [vmem:[#allocation13_spill] sm:$0xff] %v1194_v61  ;;  %v1243_v35 = vld [vmem:[%s952_s20 + $0x24] sm:$0x1]  ;;  %v1246_v18 = vld [vmem:[%s952_s20 + $0x2c] sm:$0x1]  ;;  %v1513_v61 = vunpack.c.l.bf16 %v1009_v29 }
  0x2c   : > { %1503 = vst [vmem:[#allocation14_spill] sm:$0xff] %v1201_v14  ;;  %v1511_v14 = vunpack.c.l.bf16 %v1006_v24  ;;  %v1518_v24 = vunpack.c.l.bf16 %v973_v4  ;;  %v1523_v4 = vunpack.c.l.bf16 %v1031_v38 }
  0x2d   : > { %1504 = vst [vmem:[#allocation15_spill] sm:$0xff] %v1204_v16  ;;  %v401_v27 = vrot.slane %v1513_v61, 1  ;;  %v1519_v61 = vunpack.c.l.bf16 %v1018_v32  ;;  %v1524_v32 = vunpack.c.l.bf16 %v982_v7 }
  0x2e   : > { %1505 = vst [vmem:[#allocation16_spill] sm:$0xff] %v1207_v12  ;;  %v1510_v12 = vunpack.c.l.bf16 %v961_v0  ;;  %v398_v22 = vrot.slane %v1511_v14, 1  ;;  %v1517_v0 = vunpack.c.l.bf16 %v1015_v31  ;;  %v409_v29 = vrot.slane %v1518_v24, 1 }
  0x2f   : > { %1506 = vst [vmem:[#allocation17_spill] sm:$0xff] %v1214_v57  ;;  %v1516_v57 = vunpack.c.l.bf16 %v970_v3  ;;  %v410_v2 = vrot.slane %v1519_v61, 1  ;;  %v1520_v3 = vunpack.c.l.bf16 %v976_v5  ;;  %v1521_v31 = vunpack.c.l.bf16 %v1028_v37 }
  0x30   : > { %1507 = vst [vmem:[#allocation18_spill] sm:$0xff] %v1220_v28  ;;  %v397_v16 = vrot.slane %v1510_v12, 1  ;;  %v400_v28 = vrot.slane %v1512_v17, 1  ;;  %v407_v12 = vrot.slane %v1517_v0, 1  ;;  %v1522_v17 = vunpack.c.l.bf16 %v979_v6 }
  0x31   : > { %1508 = vst [vmem:[#allocation19_spill] sm:$0xff] %v1233_v62  ;;  %v403_v62 = vrot.slane %v1514_v8, 1  ;;  %v412_v30 = vrot.slane %v1520_v3, 1 }
  0x32   : > { %1509 = vst [vmem:[#allocation20_spill] sm:$0xff] %v1246_v18  ;;  %v406_v18 = vrot.slane %v1516_v57, 1  ;;  %v399_v14 = vsel %vm396_vm0, %v397_v16, %v398_v22  ;;  %v402_v1 = vsel %vm396_vm0, %v400_v28, %v401_v27  ;;  %v413_v57 = vrot.slane %v1521_v31, 1 }
  0x33   : > { %v405_v8 = vsel %vm396_vm0, %v403_v62, %v404_v21  ;;  %v411_v16 = vsel %vm396_vm0, %v409_v29, %v410_v2  ;;  %v415_v22 = vrot.slane %v1522_v17, 1  ;;  %v416_v27 = vrot.slane %v1523_v4, 1 }
  0x34   : > { %v408_v20 = vsel %vm396_vm0, %v406_v18, %v407_v12  ;;  %v418_v28 = vrot.slane %v1524_v32, 1  ;;  %v414_v21 = vsel %vm396_vm0, %v412_v30, %v413_v57  ;;  %v1525_v62 = vunpack.c.l.bf16 %v1034_v39 }
  0x35   : > { %v429_v18 = vmax.f32 %v1047_v43, %v399_v14  ;;  %v430_v37 = vmax.f32 %v1060_v47, %v402_v1  ;;  %v417_v0 = vsel %vm396_vm0, %v415_v22, %v416_v27  ;;  %v431_v6 = vmax.f32 %v1064_v48, %v405_v8 }
  0x36   : > { %v419_v5 = vrot.slane %v1525_v62, 1  ;;  %v432_v12 = vmax.f32 %v1068_v49, %v408_v20  ;;  %v433_v38 = vmax.f32 %v1072_v50, %v411_v16  ;;  %v434_v24 = vmax.f32 %v1085_v54, %v414_v21 }
  0x37   : > { %v435_v29 = vmax.f32 %v1089_v55, %v417_v0  ;;  %v1526_v39 = vunpack.c.l.bf16 %v1037_v40  ;;  %v1527_v47 = vunpack.c.l.bf16 %v1040_v41  ;;  %v1528_v48 = vunpack.c.l.bf16 %v1043_v42 }
  0x38   : > { %v420_v7 = vsel %vm396_vm0, %v418_v28, %v419_v5  ;;  %v1529_v49 = vunpack.c.l.bf16 %v1050_v44  ;;  %v1530_v2 = vunpack.c.l.bf16 %v1053_v45  ;;  %v1531_v54 = vunpack.c.l.bf16 %v1056_v46 }
  0x39   : > { %v461_v61 = vmax.f32 %v429_v18, %v1526_v39  ;;  %v436_v43 = vmax.f32 %v1093_v56, %v420_v7  ;;  %v462_v14 = vmax.f32 %v430_v37, %v1527_v47  ;;  %v463_v1 = vmax.f32 %v431_v6, %v1528_v48 }
  0x3a   : > { %v464_v50 = vmax.f32 %v432_v12, %v1529_v49  ;;  %v465_v8 = vmax.f32 %v433_v38, %v1530_v2  ;;  %v466_v55 = vmax.f32 %v434_v24, %v1531_v54  ;;  %v1532_v20 = vunpack.c.l.bf16 %v1075_v51 }
  0x3b   : > { %v1533_v56 = vunpack.c.l.bf16 %v1081_v53  ;;  %v1534_v31 = vunpack.c.l.bf16 %v1078_v52  ;;  %v1535_v16 = vunpack.c.l.bf16 %v1097_v58  ;;  %v1536_v22 = vunpack.c.l.bf16 %v1100_v59  ;;  %v1562_v52 = vld [vmem:[#allocation6_spill] sm:$0xff] }
  0x3c   : > { %v467_v3 = vmax.f32 %v435_v29, %v1532_v20  ;;  %v1537_v27 = vunpack.c.l.bf16 %v1103_v60  ;;  %v1538_v28 = vunpack.c.l.bf16 %v1110_v9  ;;  %v1539_v62 = vunpack.c.l.bf16 %v1113_v10 }
  0x3d   : > { %v493_v30 = vmax.f32 %v461_v61, %v1533_v56  ;;  %v468_v57 = vmax.f32 %v436_v43, %v1534_v31  ;;  %v494_v17 = vmax.f32 %v462_v14, %v1535_v16  ;;  %v495_v4 = vmax.f32 %v463_v1, %v1536_v22  ;;  %v1552_v14 = vld [vmem:[#allocation3_spill] sm:$0xff]  ;;  %v1560_v16 = vld [vmem:[#allocation5_spill] sm:$0xff] }
  0x3e   : > { %v496_v32 = vmax.f32 %v464_v50, %v1537_v27  ;;  %v497_v21 = vmax.f32 %v465_v8, %v1538_v28  ;;  %v498_v5 = vmax.f32 %v466_v55, %v1539_v62  ;;  %v1540_v53 = vunpack.c.l.bf16 %v1116_v11  ;;  %v1557_v55 = vld [vmem:[#allocation4_spill] sm:$0xff] }
  0x3f   : > { %v1541_v37 = vmov %v1526_v39  ;;  %v1542_v58 = vunpack.c.l.bf16 %v1123_v23  ;;  %v1543_v59 = vunpack.c.l.bf16 %v1126_v25  ;;  %v1544_v60 = vmov %v1527_v47  ;;  %v1549_v23 = vld [vmem:[#allocation2_spill] sm:$0xff] }
  0x40   : > { %v499_v18 = vmax.f32 %v467_v3, %v1540_v53  ;;  %v541_v0 = vrot.slane %v1541_v37, 1  ;;  %v544_v38 = vrot.slane %v1544_v60, 1  ;;  %v1545_v9 = vunpack.c.l.bf16 %v1129_v26  ;;  %v864_v60 = vld [vmem:[%s952_s20 + $0x34] sm:$0x1] }
  0x41   : > { %v500_v6 = vmax.f32 %v468_v57, %v1542_v58  ;;  %v542_v12 = vrot.slane %v1543_v59, 1  ;;  %v1546_v10 = vmov %v1528_v48  ;;  %v1547_v11 = vunpack.c.l.bf16 %v1136_v36 }
  0x42   : > { %v545_v7 = vrot.slane %v1545_v9, 1  ;;  %v547_v24 = vrot.slane %v1546_v10, 1  ;;  %v1548_v40 = vmov %v1529_v49  ;;  %v1550_v61 = vunpack.c.l.bf16 %v1549_v23  ;;  %v1564_v9 = vld [vmem:[#allocation7_spill] sm:$0xff] }
  0x43   : > { %v548_v29 = vrot.slane %v1547_v11, 1  ;;  %v550_v39 = vrot.slane %v1548_v40, 1  ;;  %v543_v25 = vsel %vm396_vm0, %v541_v0, %v542_v12  ;;  %v1551_v47 = vmov %v1530_v2  ;;  %v1568_v11 = vld [vmem:[#allocation9_spill] sm:$0xff]  ;;  %v1570_v40 = vld [vmem:[#allocation10_spill] sm:$0xff] }
  0x44   : > { %v551_v43 = vrot.slane %v1550_v61, 1  ;;  %v546_v41 = vsel %vm396_vm0, %v544_v38, %v545_v7  ;;  %v553_v26 = vrot.slane %v1551_v47, 1  ;;  %v1553_v48 = vunpack.c.l.bf16 %v1552_v14 }
  0x45   : > { %v549_v1 = vsel %vm396_vm0, %v547_v24, %v548_v29  ;;  %v1554_v44 = vmov %v1531_v54  ;;  %v1555_v50 = vunpack.c.l.bf16 %v1149_v34  ;;  %v1556_v54 = vmov %v1532_v20 }
  0x46   : > { %v554_v42 = vrot.slane %v1553_v48, 1  ;;  %v552_v36 = vsel %vm396_vm0, %v550_v39, %v551_v43  ;;  %v556_v49 = vrot.slane %v1554_v44, 1  ;;  %v559_v45 = vrot.slane %v1556_v54, 1  ;;  %v1581_v44 = vld [vmem:[#allocation15_spill] sm:$0xff] }
  0x47   : > { %v557_v2 = vrot.slane %v1555_v50, 1  ;;  %v1558_v20 = vunpack.c.l.bf16 %v1557_v55  ;;  %v1559_v56 = vmov %v1534_v31  ;;  %v1561_v46 = vunpack.c.l.bf16 %v1560_v16 }
  0x48   : > { %v555_v8 = vsel %vm396_vm0, %v553_v26, %v554_v42  ;;  %v562_v31 = vrot.slane %v1559_v56, 1  ;;  %v573_v34 = vmax.f32 %v493_v30, %v543_v25  ;;  %v574_v27 = vmax.f32 %v494_v17, %v546_v41  ;;  %v1566_v30 = vld [vmem:[#allocation8_spill] sm:$0xff]  ;;  %v1575_v25 = vld [vmem:[#allocation13_spill] sm:$0xff]  ;;  %v1579_v42 = vld [vmem:[#allocation14_spill] sm:$0xff] }
  0x49   : > { %v560_v3 = vrot.slane %v1558_v20, 1  ;;  %v558_v57 = vsel %vm396_vm0, %v556_v49, %v557_v2  ;;  %v563_v22 = vrot.slane %v1561_v46, 1  ;;  %v575_v51 = vmax.f32 %v495_v4, %v549_v1  ;;  %v1577_v26 = vld [vmem:[#allocation12_spill] sm:$0xff] }
  0x4a   : > { %v576_v62 = vmax.f32 %v496_v32, %v552_v36  ;;  %v577_v53 = vmax.f32 %v497_v21, %v555_v8  ;;  %v578_v0 = vmax.f32 %v498_v5, %v558_v57  ;;  %v1563_v59 = vunpack.c.l.bf16 %v1562_v52  ;;  %v865_v32 = vld [vmem:[%s952_s20 + $0x3c] sm:$0x1]  ;;  %v866_v21 = vld [vmem:[%s952_s20 + $0x44] sm:$0x1]  ;;  %v1583_v2 = vld [vmem:[#allocation16_spill] sm:$0xff] }
  0x4b   : > { %v561_v28 = vsel %vm396_vm0, %v559_v45, %v560_v3  ;;  %v564_v37 = vsel %vm396_vm0, %v562_v31, %v563_v22  ;;  %v1565_v7 = vunpack.c.l.bf16 %v1564_v9  ;;  %v1567_v24 = vunpack.c.l.bf16 %v1566_v30  ;;  %v1585_v45 = vld [vmem:[#allocation17_spill] sm:$0xff]  ;;  %v1588_v31 = vld [vmem:[#allocation18_spill] sm:$0xff] }
  0x4c   : > { %v579_v58 = vmax.f32 %v499_v18, %v561_v28  ;;  %v605_v12 = vmax.f32 %v573_v34, %v1563_v59  ;;  %v580_v38 = vmax.f32 %v500_v6, %v564_v37  ;;  %v1569_v29 = vunpack.c.l.bf16 %v1568_v11  ;;  %v1572_v18 = vld [vmem:[#allocation11_spill] sm:$0xff] }
  0x4d   : > { %v606_v10 = vmax.f32 %v574_v27, %v1565_v7  ;;  %v607_v17 = vmax.f32 %v575_v51, %v1567_v24  ;;  %v1571_v39 = vunpack.c.l.bf16 %v1570_v40  ;;  %v1573_v23 = vunpack.c.l.bf16 %v1572_v18 }
  0x4e   : > { %v608_v4 = vmax.f32 %v576_v62, %v1569_v29  ;;  %v1574_v43 = vunpack.c.l.bf16 %v1188_v63  ;;  %v1576_v41 = vunpack.c.l.bf16 %v1575_v25  ;;  %v1578_v14 = vunpack.c.l.bf16 %v1577_v26 }
  0x4f   : > { %v609_v5 = vmax.f32 %v577_v53, %v1571_v39  ;;  %v610_v61 = vmax.f32 %v578_v0, %v1573_v23  ;;  %v1580_v1 = vunpack.c.l.bf16 %v1579_v42  ;;  %v1582_v49 = vunpack.c.l.bf16 %v1581_v44 }
  0x50   : > { %v611_v6 = vmax.f32 %v579_v58, %v1574_v43  ;;  %v637_v47 = vmax.f32 %v605_v12, %v1576_v41  ;;  %v612_v48 = vmax.f32 %v580_v38, %v1578_v14  ;;  %v1584_v8 = vunpack.c.l.bf16 %v1583_v2  ;;  %v1594_v58 = vld [vmem:[#allocation19_spill] sm:$0xff] }
  0x51   : > { %v638_v36 = vmax.f32 %v606_v10, %v1580_v1  ;;  %v639_v50 = vmax.f32 %v607_v17, %v1582_v49  ;;  %v1586_v55 = vunpack.c.l.bf16 %v1585_v45  ;;  %v1587_v3 = vunpack.c.l.bf16 %v1217_v19 }
  0x52   : > { %v640_v54 = vmax.f32 %v608_v4, %v1584_v8  ;;  %v1589_v57 = vunpack.c.l.bf16 %v1588_v31  ;;  %v666_v46 = vunpack.c.l.bf16 %v864_v60  ;;  %v1590_v22 = vunpack.c.l.bf16 %v1227_v13 }
  0x53   : > { %v641_v20 = vmax.f32 %v609_v5, %v1586_v55  ;;  %v642_v56 = vmax.f32 %v610_v61, %v1587_v3  ;;  %v667_v27 = vunpack.c.l.bf16 %v865_v32  ;;  %v668_v28 = vunpack.c.l.bf16 %v866_v21  ;;  %v1601_v32 = vld [vmem:[#allocation20_spill] sm:$0xff] }
  0x54   : > { %v643_v16 = vmax.f32 %v611_v6, %v1589_v57  ;;  %v644_v34 = vmax.f32 %v612_v48, %v1590_v22  ;;  %v1591_v51 = vmov %v1563_v59  ;;  %v1592_v53 = vunpack.c.l.bf16 %v1230_v33 }
  0x55   : > { %v685_v62 = vrot.slane %v1591_v51, 1  ;;  %v1593_v0 = vmov %v1565_v7  ;;  %v1595_v59 = vunpack.c.l.bf16 %v1594_v58  ;;  %v1596_v60 = vmov %v1567_v24 }
  0x56   : > { %v686_v37 = vrot.slane %v1592_v53, 1  ;;  %v688_v19 = vrot.slane %v1593_v0, 1  ;;  %v691_v38 = vrot.slane %v1596_v60, 1  ;;  %v1597_v13 = vunpack.c.l.bf16 %v1240_v15 }
  0x57   : > { %v689_v12 = vrot.slane %v1595_v59, 1  ;;  %v1598_v10 = vmov %v1569_v29  ;;  %v1599_v52 = vunpack.c.l.bf16 %v1243_v35  ;;  %v1600_v33 = vmov %v1571_v39 }
  0x58   : > { %v692_v7 = vrot.slane %v1597_v13, 1  ;;  %v694_v24 = vrot.slane %v1598_v10, 1  ;;  %v697_v29 = vrot.slane %v1600_v33, 1  ;;  %v687_v9 = vsel %vm396_vm0, %v685_v62, %v686_v37 }
  0x59   : > { %v695_v17 = vrot.slane %v1599_v52, 1  ;;  %v690_v4 = vsel %vm396_vm0, %v688_v19, %v689_v12  ;;  %v1602_v21 = vunpack.c.l.bf16 %v1601_v32  ;;  %v1603_v39 = vmov %v1573_v23 }
  0x5a   : > { %v700_v15 = vrot.slane %v1603_v39, 1  ;;  %v693_v11 = vsel %vm396_vm0, %v691_v38, %v692_v7  ;;  %v701_v35 = vrot.slane %v666_v46, 1  ;;  %v1604_v23 = vmov %v1574_v43 }
  0x5b   : > { %v698_v30 = vrot.slane %v1602_v21, 1  ;;  %v696_v5 = vsel %vm396_vm0, %v694_v24, %v695_v17  ;;  %v703_v40 = vrot.slane %v1604_v23, 1  ;;  %v704_v43 = vrot.slane %v667_v27, 1 }
  0x5c   : > { %v1605_v6 = vmov %v1578_v14  ;;  %v707_v41 = vrot.slane %v668_v28, 1  ;;  %v702_v14 = vsel %vm396_vm0, %v700_v15, %v701_v35  ;;  %v717_v18 = vmax.f32 %v637_v47, %v687_v9 }
  0x5d   : > { %v699_v61 = vsel %vm396_vm0, %v697_v29, %v698_v30  ;;  %v706_v25 = vrot.slane %v1605_v6, 1  ;;  %v718_v48 = vmax.f32 %v638_v36, %v690_v4  ;;  %v719_v42 = vmax.f32 %v639_v50, %v693_v11 }
  0x5e   : > { %v705_v1 = vsel %vm396_vm0, %v703_v40, %v704_v43  ;;  %v720_v44 = vmax.f32 %v640_v54, %v696_v5  ;;  %v721_v49 = vmax.f32 %v641_v20, %v699_v61  ;;  %v722_v2 = vmax.f32 %v642_v56, %v702_v14 }
  0x5f   : > { %v708_v63 = vsel %vm396_vm0, %v706_v25, %v707_v41  ;;  %v723_v8 = vmax.f32 %v643_v16, %v705_v1  ;;  %v873_v45 = vpack.c.bf16 %v718_v48, %v717_v18 }
  0x60   : > { %v724_v26 = vmax.f32 %v644_v34, %v708_v63  ;;  %v878_v55 = vpack.c.bf16 %v720_v44, %v719_v42  ;;  %v883_v3 = vpack.c.bf16 %v722_v2, %v721_v49 }
  0x61   : > { %874 = vst [vmem:[%s257_s7] sm:$0xff] %v873_v45  }
  0x62   : > { %v888_v47 = vpack.c.bf16 %v724_v26, %v723_v8  ;;  %890 = vst [vmem:[%s257_s7 + $0x8] sm:$0xff] %v878_v55  }
  0x63   : > { %891 = vst [vmem:[%s257_s7 + $0x10] sm:$0xff] %v883_v3  }
  0x64   : > { %892 = vst [vmem:[%s257_s7 + $0x18] sm:$0xff] %v888_v47  }
  0x65 PF: > { %s14_s15 = sadd.s32 1, %s908_s15  }
  0x66   : > { %p11_p4 = scmp.ge.s32.totalorder %s14_s15, 4  }
  0x68   :  { %13 = sbr.rel (!%p11_p4) target bundleno = 1 (0x1), region = 77 }

// kernel: resnet_backbone_forward.21
= control target key start
LH: loop header
LB: loop body
LE: loop exit
PB: predicated region body
PF: predicated region fallthrough
CT: control target
= control target key end

     0   :  { %s2493_s1 = inlined_call_operand.vmem [shape: bf16[256,128], index: 1, kind: input, shape index: {}]   ;;  %s2494_s0 = inlined_call_operand.vmem [shape: bf16[512,256], index: 0, kind: input, shape index: {}]   ;;  %s2495_s2 = inlined_call_operand.vmem [shape: f32[1,128], index: 2, kind: input, shape index: {}]   ;;  %s2496_s3 = inlined_call_operand.vmem [shape: f32[1,128], index: 3, kind: input, shape index: {}]   ;;  %s2497_s4 = inlined_call_operand.vmem [shape: bf16[512,128], index: 4, kind: output, shape index: {}]  }
   0x1   :  { %v1590_v0 = vld [vmem:[%s2493_s1 + $0x38] sm:$0xff]  ;;  %v1589_v2 = vld [vmem:[%s2493_s1 + $0x30] sm:$0xff]  ;;  %v1588_v4 = vld [vmem:[%s2493_s1 + $0x28] sm:$0xff] }
   0x2   :  { %v1598_v1 = vld [vmem:[%s2493_s1 + $0x78] sm:$0xff]  ;;  %529 = vmatpush.bf16.msra.mxu0 %v1590_v0  ;;  %1790 = vmatpush.bf16.msra.mxu2 %v1590_v0  ;;  %v1597_v3 = vld [vmem:[%s2493_s1 + $0x70] sm:$0xff]  ;;  %v1596_v5 = vld [vmem:[%s2493_s1 + $0x68] sm:$0xff] }
   0x3   :  { %698 = vmatpush.bf16.msra.mxu1 %v1598_v1  ;;  %1798 = vmatpush.bf16.msra.mxu3 %v1598_v1  ;;  %v1587_v6 = vld [vmem:[%s2493_s1 + $0x20] sm:$0xff]  ;;  %v1586_v8 = vld [vmem:[%s2493_s1 + $0x18] sm:$0xff]  ;;  %v1585_v10 = vld [vmem:[%s2493_s1 + $0x10] sm:$0xff] }
   0x4   :  { %v1595_v7 = vld [vmem:[%s2493_s1 + $0x60] sm:$0xff]  ;;  %v1594_v9 = vld [vmem:[%s2493_s1 + $0x58] sm:$0xff]  ;;  %v1593_v11 = vld [vmem:[%s2493_s1 + $0x50] sm:$0xff] }
   0x5   :  { %v1584_v12 = vld [vmem:[%s2493_s1 + $0x8] sm:$0xff]  ;;  %v1583_v14 = vld [vmem:[%s2493_s1] sm:$0xff]  ;;  %v1209_v28 = vld [vmem:[%s2494_s0 + $0x10] sm:$0xf] }
   0x6   :  { %530 = vmatpush.bf16.msra.mxu0 %v1589_v2  ;;  %1791 = vmatpush.bf16.msra.mxu2 %v1589_v2  ;;  %v1592_v13 = vld [vmem:[%s2493_s1 + $0x48] sm:$0xff]  ;;  %v1591_v15 = vld [vmem:[%s2493_s1 + $0x40] sm:$0xff]  ;;  %v1522_v29 = vld [vmem:[%s2494_s0 + $0x14] sm:$0xf0] }
   0x7   :  { %699 = vmatpush.bf16.msra.mxu1 %v1597_v3  ;;  %1799 = vmatpush.bf16.msra.mxu3 %v1597_v3  ;;  %v1201_v16 = vld [vmem:[%s2494_s0] sm:$0xf]  ;;  %v1520_v17 = vld [vmem:[%s2494_s0 + $0x4] sm:$0xf0]  ;;  %v1519_v20 = vld [vmem:[%s2494_s0 + $0x4] sm:$0xf]  ;;  %v1210_v36 = vor.u32 %v1522_v29, %v1209_v28 }
   0x8   :  { %v1329_v18 = vld [vmem:[%s2494_s0 + $0x100] sm:$0xf]  ;;  %v1552_v19 = vld [vmem:[%s2494_s0 + $0x104] sm:$0xf0]  ;;  %v1203_v21 = vld [vmem:[%s2494_s0 + $0x8] sm:$0xf0]  ;;  %v1202_v24 = vor.u32 %v1520_v17, %v1201_v16 }
   0x9   :  { %v1551_v22 = vld [vmem:[%s2494_s0 + $0x104] sm:$0xf]  ;;  %v1331_v23 = vld [vmem:[%s2494_s0 + $0x108] sm:$0xf0]  ;;  %v1330_v25 = vor.u32 %v1552_v19, %v1329_v18  ;;  %v1206_v26 = vor.u32 %v1519_v20, %v1203_v21  ;;  %v1337_v30 = vld [vmem:[%s2494_s0 + $0x110] sm:$0xf] }
   0xa   :  { %531 = vmatpush.bf16.msra.mxu0 %v1588_v4  ;;  %1792 = vmatpush.bf16.msra.mxu2 %v1588_v4  ;;  %v1334_v27 = vor.u32 %v1551_v22, %v1331_v23  ;;  %v1554_v31 = vld [vmem:[%s2494_s0 + $0x114] sm:$0xf0]  ;;  %v1521_v32 = vld [vmem:[%s2494_s0 + $0x14] sm:$0xf]  ;;  %v1211_v33 = vld [vmem:[%s2494_s0 + $0x18] sm:$0xf0] }
   0xb   :  { %700 = vmatpush.bf16.msra.mxu1 %v1596_v5  ;;  %1800 = vmatpush.bf16.msra.mxu3 %v1596_v5  ;;  %v1553_v34 = vld [vmem:[%s2494_s0 + $0x114] sm:$0xf]  ;;  %v1339_v35 = vld [vmem:[%s2494_s0 + $0x118] sm:$0xf0]  ;;  %v1338_v37 = vor.u32 %v1554_v31, %v1337_v30  ;;  %v1214_v38 = vor.u32 %v1521_v32, %v1211_v33  ;;  %v1217_v40 = vld [vmem:[%s2494_s0 + $0x20] sm:$0xf] }
   0xc   :  { %v1342_v39 = vor.u32 %v1553_v34, %v1339_v35  ;;  %v1524_v41 = vld [vmem:[%s2494_s0 + $0x24] sm:$0xf0]  ;;  %v1345_v42 = vld [vmem:[%s2494_s0 + $0x120] sm:$0xf]  ;;  %v1523_v44 = vld [vmem:[%s2494_s0 + $0x24] sm:$0xf] }
   0xd   :  { %v1556_v43 = vld [vmem:[%s2494_s0 + $0x124] sm:$0xf0]  ;;  %v1219_v45 = vld [vmem:[%s2494_s0 + $0x28] sm:$0xf0]  ;;  %v1555_v46 = vld [vmem:[%s2494_s0 + $0x124] sm:$0xf]  ;;  %v1218_v48 = vor.u32 %v1524_v41, %v1217_v40 }
   0xe   :  { %532 = vmatpush.bf16.msra.mxu0 %v1587_v6  ;;  %1793 = vmatpush.bf16.msra.mxu2 %v1587_v6  ;;  %v1347_v47 = vld [vmem:[%s2494_s0 + $0x128] sm:$0xf0]  ;;  %v1346_v49 = vor.u32 %v1556_v43, %v1345_v42  ;;  %v1222_v50 = vor.u32 %v1523_v44, %v1219_v45  ;;  %v1225_v52 = vld [vmem:[%s2494_s0 + $0x30] sm:$0xf]  ;;  %v1526_v53 = vld [vmem:[%s2494_s0 + $0x34] sm:$0xf0] }
   0xf   :  { %701 = vmatpush.bf16.msra.mxu1 %v1595_v7  ;;  %1801 = vmatpush.bf16.msra.mxu3 %v1595_v7  ;;  %v1350_v51 = vor.u32 %v1555_v46, %v1347_v47  ;;  %v1353_v54 = vld [vmem:[%s2494_s0 + $0x130] sm:$0xf]  ;;  %v1558_v55 = vld [vmem:[%s2494_s0 + $0x134] sm:$0xf0]  ;;  %v1525_v56 = vld [vmem:[%s2494_s0 + $0x34] sm:$0xf]  ;;  %v1226_v60 = vor.u32 %v1526_v53, %v1225_v52 }
  0x10   :  { %v1227_v57 = vld [vmem:[%s2494_s0 + $0x38] sm:$0xf0]  ;;  %v1557_v58 = vld [vmem:[%s2494_s0 + $0x134] sm:$0xf]  ;;  %v1354_v61 = vor.u32 %v1558_v55, %v1353_v54  ;;  %v1233_v0 = vld [vmem:[%s2494_s0 + $0x40] sm:$0xf] }
  0x11   :  { %v1355_v59 = vld [vmem:[%s2494_s0 + $0x138] sm:$0xf0]  ;;  %v1230_v62 = vor.u32 %v1525_v56, %v1227_v57  ;;  %v1528_v1 = vld [vmem:[%s2494_s0 + $0x44] sm:$0xf0]  ;;  %v1361_v2 = vld [vmem:[%s2494_s0 + $0x140] sm:$0xf] }
  0x12   :  { %533 = vmatpush.bf16.msra.mxu0 %v1586_v8  ;;  %1794 = vmatpush.bf16.msra.mxu2 %v1586_v8  ;;  %v1358_v63 = vor.u32 %v1557_v58, %v1355_v59  ;;  %v1560_v3 = vld [vmem:[%s2494_s0 + $0x144] sm:$0xf0]  ;;  %v1527_v4 = vld [vmem:[%s2494_s0 + $0x44] sm:$0xf]  ;;  %v1235_v5 = vld [vmem:[%s2494_s0 + $0x48] sm:$0xf0]  ;;  %v1234_v8 = vor.u32 %v1528_v1, %v1233_v0 }
  0x13   :  { %702 = vmatpush.bf16.msra.mxu1 %v1594_v9  ;;  %1802 = vmatpush.bf16.msra.mxu3 %v1594_v9  ;;  %v1559_v6 = vld [vmem:[%s2494_s0 + $0x144] sm:$0xf]  ;;  %v1363_v7 = vld [vmem:[%s2494_s0 + $0x148] sm:$0xf0]  ;;  %v1362_v9 = vor.u32 %v1560_v3, %v1361_v2  ;;  %v1529_v16 = vld [vmem:[%s2494_s0 + $0x54] sm:$0xf] }
  0x14   :  { %v1243_v17 = vld [vmem:[%s2494_s0 + $0x58] sm:$0xf0]  ;;  %v1561_v18 = vld [vmem:[%s2494_s0 + $0x154] sm:$0xf]  ;;  %v1531_v28 = vld [vmem:[%s2494_s0 + $0x64] sm:$0xf] }
  0x15   :  { %v1371_v19 = vld [vmem:[%s2494_s0 + $0x158] sm:$0xf0]  ;;  %v1246_v22 = vor.u32 %v1529_v16, %v1243_v17  ;;  %v1251_v29 = vld [vmem:[%s2494_s0 + $0x68] sm:$0xf0]  ;;  %v1563_v30 = vld [vmem:[%s2494_s0 + $0x164] sm:$0xf] }
  0x16   :  { %534 = vmatpush.bf16.msra.mxu0 %v1585_v10  ;;  %1795 = vmatpush.bf16.msra.mxu2 %v1585_v10  ;;  %v1238_v10 = vor.u32 %v1527_v4, %v1235_v5  ;;  %v1374_v23 = vor.u32 %v1561_v18, %v1371_v19  ;;  %v1379_v31 = vld [vmem:[%s2494_s0 + $0x168] sm:$0xf0]  ;;  %v1254_v34 = vor.u32 %v1531_v28, %v1251_v29  ;;  %v1533_v40 = vld [vmem:[%s2494_s0 + $0x74] sm:$0xf]  ;;  %v1259_v41 = vld [vmem:[%s2494_s0 + $0x78] sm:$0xf0] }
  0x17   :  { %703 = vmatpush.bf16.msra.mxu1 %v1593_v11  ;;  %1803 = vmatpush.bf16.msra.mxu3 %v1593_v11  ;;  %v1366_v11 = vor.u32 %v1559_v6, %v1363_v7  ;;  %v1382_v35 = vor.u32 %v1563_v30, %v1379_v31  ;;  %v1565_v42 = vld [vmem:[%s2494_s0 + $0x174] sm:$0xf]  ;;  %v1387_v43 = vld [vmem:[%s2494_s0 + $0x178] sm:$0xf0]  ;;  %v1262_v46 = vor.u32 %v1533_v40, %v1259_v41  ;;  %v1535_v52 = vld [vmem:[%s2494_s0 + $0x84] sm:$0xf] }
  0x18   :  { %v1390_v47 = vor.u32 %v1565_v42, %v1387_v43  ;;  %v1267_v53 = vld [vmem:[%s2494_s0 + $0x88] sm:$0xf0]  ;;  %v1567_v54 = vld [vmem:[%s2494_s0 + $0x184] sm:$0xf]  ;;  %v2108_v3 = vld [vmem:[%s2496_s3] ss:$0 sm:$0xff] }
  0x19   :  { %v1395_v55 = vld [vmem:[%s2494_s0 + $0x188] sm:$0xf0]  ;;  %v1270_v59 = vor.u32 %v1535_v52, %v1267_v53  ;;  %v1569_v16 = vld [vmem:[%s2494_s0 + $0x194] sm:$0xf]  ;;  %v1403_v17 = vld [vmem:[%s2494_s0 + $0x198] sm:$0xf0] }
  0x1a   :  { %535 = vmatpush.bf16.msra.mxu0 %v1584_v12  ;;  %1796 = vmatpush.bf16.msra.mxu2 %v1584_v12  ;;  %v1241_v12 = vld [vmem:[%s2494_s0 + $0x50] sm:$0xf]  ;;  %v1406_v29 = vor.u32 %v1569_v16, %v1403_v17  ;;  %v1539_v52 = vld [vmem:[%s2494_s0 + $0xa4] sm:$0xf]  ;;  %v1283_v53 = vld [vmem:[%s2494_s0 + $0xa8] sm:$0xf0] }
  0x1b   :  { %704 = vmatpush.bf16.msra.mxu1 %v1592_v13  ;;  %1804 = vmatpush.bf16.msra.mxu3 %v1592_v13  ;;  %v1530_v13 = vld [vmem:[%s2494_s0 + $0x54] sm:$0xf0] }
  0x1c   :  { %v1242_v20 = vor.u32 %v1530_v13, %v1241_v12  ;;  %v1570_v13 = vld [vmem:[%s2494_s0 + $0x194] sm:$0xf0] }
  0x1e   :  { %536 = vmatpush.bf16.msra.mxu0 %v1583_v14  ;;  %1797 = vmatpush.bf16.msra.mxu2 %v1583_v14  ;;  %v1369_v14 = vld [vmem:[%s2494_s0 + $0x150] sm:$0xf] }
  0x1f   :  { %705 = vmatpush.bf16.msra.mxu1 %v1591_v15  ;;  %1805 = vmatpush.bf16.msra.mxu3 %v1591_v15  ;;  %v1562_v15 = vld [vmem:[%s2494_s0 + $0x154] sm:$0xf0] }
  0x20   :  { %v1370_v21 = vor.u32 %v1562_v15, %v1369_v14  ;;  %v1537_v14 = vld [vmem:[%s2494_s0 + $0x94] sm:$0xf]  ;;  %v1275_v15 = vld [vmem:[%s2494_s0 + $0x98] sm:$0xf0] }
  0x21   :  { %537 = vmatmul.bf16.vlgmr.msra.gmra.mxu0 %v1202_v24  ;;  %617 = vmatmul.bf16.vlgmr.msra.gmra.mxu2 %v1330_v25  ;;  %v1249_v24 = vld [vmem:[%s2494_s0 + $0x60] sm:$0xf]  ;;  %v1532_v25 = vld [vmem:[%s2494_s0 + $0x64] sm:$0xf0] }
  0x22   :  { %706 = vmatmul.bf16.vlgmr.msra.gmra.mxu1 %v1206_v26  ;;  %786 = vmatmul.bf16.vlgmr.msra.gmra.mxu3 %v1334_v27  ;;  %v1377_v26 = vld [vmem:[%s2494_s0 + $0x160] sm:$0xf]  ;;  %v1564_v27 = vld [vmem:[%s2494_s0 + $0x164] sm:$0xf0]  ;;  %v1250_v32 = vor.u32 %v1532_v25, %v1249_v24  ;;  %v1278_v24 = vor.u32 %v1537_v14, %v1275_v15 }
  0x23   :  { %v1378_v33 = vor.u32 %v1564_v27, %v1377_v26 }
  0x31   :  { %542 = vmatmul.bf16.gmra.mxu0 %v1210_v36  ;;  %622 = vmatmul.bf16.gmra.mxu2 %v1338_v37  ;;  %v1257_v36 = vld [vmem:[%s2494_s0 + $0x70] sm:$0xf]  ;;  %v1534_v37 = vld [vmem:[%s2494_s0 + $0x74] sm:$0xf0] }
  0x32   :  { %711 = vmatmul.bf16.gmra.mxu1 %v1214_v38  ;;  %791 = vmatmul.bf16.gmra.mxu3 %v1342_v39  ;;  %v1385_v38 = vld [vmem:[%s2494_s0 + $0x170] sm:$0xf]  ;;  %v1566_v39 = vld [vmem:[%s2494_s0 + $0x174] sm:$0xf0]  ;;  %v1258_v44 = vor.u32 %v1534_v37, %v1257_v36 }
  0x33   :  { %v1386_v45 = vor.u32 %v1566_v39, %v1385_v38 }
  0x41   :  { %547 = vmatmul.bf16.gmra.mxu0 %v1218_v48  ;;  %627 = vmatmul.bf16.gmra.mxu2 %v1346_v49  ;;  %v1265_v48 = vld [vmem:[%s2494_s0 + $0x80] sm:$0xf]  ;;  %v1536_v49 = vld [vmem:[%s2494_s0 + $0x84] sm:$0xf0] }
  0x42   :  { %716 = vmatmul.bf16.gmra.mxu1 %v1222_v50  ;;  %796 = vmatmul.bf16.gmra.mxu3 %v1350_v51  ;;  %v1393_v50 = vld [vmem:[%s2494_s0 + $0x180] sm:$0xf]  ;;  %v1568_v51 = vld [vmem:[%s2494_s0 + $0x184] sm:$0xf0]  ;;  %v1266_v56 = vor.u32 %v1536_v49, %v1265_v48 }
  0x43   :  { %v1394_v57 = vor.u32 %v1568_v51, %v1393_v50  ;;  %v1409_v48 = vld [vmem:[%s2494_s0 + $0x1a0] sm:$0xf]  ;;  %v1572_v51 = vld [vmem:[%s2494_s0 + $0x1a4] sm:$0xf0] }
  0x51   :  { %552 = vmatmul.bf16.gmra.mxu0 %v1226_v60  ;;  %632 = vmatmul.bf16.gmra.mxu2 %v1354_v61  ;;  %v1398_v60 = vor.u32 %v1567_v54, %v1395_v55  ;;  %v1571_v54 = vld [vmem:[%s2494_s0 + $0x1a4] sm:$0xf]  ;;  %v1411_v55 = vld [vmem:[%s2494_s0 + $0x1a8] sm:$0xf0] }
  0x52   :  { %721 = vmatmul.bf16.gmra.mxu1 %v1230_v62  ;;  %801 = vmatmul.bf16.gmra.mxu3 %v1358_v63  ;;  %v2102_v63 = vld [vmem:[%s2495_s2] ss:$0 sm:$0xff] }
  0x61   :  { %557 = vmatmul.bf16.gmra.mxu0 %v1234_v8  ;;  %637 = vmatmul.bf16.gmra.mxu2 %v1362_v9  ;;  %v1273_v8 = vld [vmem:[%s2494_s0 + $0x90] sm:$0xf]  ;;  %v1538_v9 = vld [vmem:[%s2494_s0 + $0x94] sm:$0xf0] }
  0x62   :  { %726 = vmatmul.bf16.gmra.mxu1 %v1238_v10  ;;  %806 = vmatmul.bf16.gmra.mxu3 %v1366_v11  ;;  %v1401_v10 = vld [vmem:[%s2494_s0 + $0x190] sm:$0xf] }
  0x71   :  { %562 = vmatmul.bf16.gmra.mxu0 %v1242_v20  ;;  %642 = vmatmul.bf16.gmra.mxu2 %v1370_v21 }
  0x72   :  { %731 = vmatmul.bf16.gmra.mxu1 %v1246_v22  ;;  %811 = vmatmul.bf16.gmra.mxu3 %v1374_v23  ;;  %v1274_v22 = vor.u32 %v1538_v9, %v1273_v8  ;;  %v1402_v23 = vor.u32 %v1570_v13, %v1401_v10 }
  0x81   :  { %567 = vmatmul.bf16.gmra.mxu0 %v1250_v32  ;;  %647 = vmatmul.bf16.gmra.mxu2 %v1378_v33 }
  0x82   :  { %736 = vmatmul.bf16.gmra.mxu1 %v1254_v34  ;;  %816 = vmatmul.bf16.gmra.mxu3 %v1382_v35 }
  0x91   :  { %572 = vmatmul.bf16.gmra.mxu0 %v1258_v44  ;;  %652 = vmatmul.bf16.gmra.mxu2 %v1386_v45 }
  0x92   :  { %741 = vmatmul.bf16.gmra.mxu1 %v1262_v46  ;;  %821 = vmatmul.bf16.gmra.mxu3 %v1390_v47  ;;  %v1281_v46 = vld [vmem:[%s2494_s0 + $0xa0] sm:$0xf]  ;;  %v1540_v47 = vld [vmem:[%s2494_s0 + $0xa4] sm:$0xf0] }
  0x9e   :  { %v538_v58 = vpop.f32.mrf.mxu0 }
  0x9f   :  { %v707_v61 = vpop.f32.mrf.mxu1 }
  0xa0   :  { %v708_v62 = vadd.f32 %v707_v61, %v538_v58  ;;  %v1410_v61 = vor.u32 %v1572_v51, %v1409_v48 }
  0xa1   :  { %577 = vmatmul.bf16.gmra.mxu0 %v1266_v56  ;;  %657 = vmatmul.bf16.gmra.mxu2 %v1394_v57 }
  0xa2   :  { %746 = vmatmul.bf16.gmra.mxu1 %v1270_v59  ;;  %826 = vmatmul.bf16.gmra.mxu3 %v1398_v60  ;;  %v871_v2 = vmul.f32 %v2102_v63, %v708_v62  ;;  %v1282_v60 = vor.u32 %v1540_v47, %v1281_v46  ;;  %v1286_v62 = vor.u32 %v1539_v52, %v1283_v53 }
  0xa4   :  { %v618_v0 = vpop.f32.mrf.mxu2  ;;  %v939_v11 = vadd.f32 %v2108_v3, %v871_v2 }
  0xa5   :  { %v787_v1 = vpop.f32.mrf.mxu3 }
  0xa6   :  { %v540_v4 = vpop.f32.mrf.mxu0  ;;  %v788_v6 = vadd.f32 %v787_v1, %v618_v0  ;;  %v1003_v25 = vmax.f32 %v939_v11, 0.0 }
  0xa7   :  { %v709_v5 = vpop.f32.mrf.mxu1 }
  0xa8   :  { %v710_v7 = vadd.f32 %v709_v5, %v540_v4  ;;  %v903_v18 = vmul.f32 %v2102_v63, %v788_v6  ;;  %v1414_v5 = vor.u32 %v1571_v54, %v1411_v55 }
  0xaa   :  { %v872_v12 = vmul.f32 %v2102_v63, %v710_v7  ;;  %v971_v31 = vadd.f32 %v2108_v3, %v903_v18 }
  0xac   :  { %v940_v19 = vadd.f32 %v2108_v3, %v872_v12  ;;  %v620_v20 = vpop.f32.mrf.mxu2  ;;  %v1035_v36 = vmax.f32 %v971_v31, 0.0  ;;  %v1419_v31 = vld [vmem:[%s2494_s0 + $0x1b8] sm:$0xf0] }
  0xad   :  { %v789_v21 = vpop.f32.mrf.mxu3 }
  0xae   :  { %v1004_v26 = vmax.f32 %v940_v19, 0.0  ;;  %v790_v27 = vadd.f32 %v789_v21, %v620_v20  ;;  %v543_v28 = vpop.f32.mrf.mxu0 }
  0xaf   :  { %v712_v30 = vpop.f32.mrf.mxu1 }
  0xb0   :  { %v1602_v32 = vpack.c.bf16 %v1004_v26, %v1003_v25  ;;  %v904_v33 = vmul.f32 %v2102_v63, %v790_v27  ;;  %v713_v35 = vadd.f32 %v712_v30, %v543_v28  ;;  %v1574_v27 = vld [vmem:[%s2494_s0 + $0x1b4] sm:$0xf0]  ;;  %v1541_v28 = vld [vmem:[%s2494_s0 + $0xb4] sm:$0xf] }
  0xb1   :  { %582 = vmatmul.bf16.gmra.mxu0 %v1274_v22  ;;  %662 = vmatmul.bf16.gmra.mxu2 %v1402_v23  ;;  %v1289_v22 = vld [vmem:[%s2494_s0 + $0xb0] sm:$0xf]  ;;  %v1542_v23 = vld [vmem:[%s2494_s0 + $0xb4] sm:$0xf0]  ;;  %v1573_v30 = vld [vmem:[%s2494_s0 + $0x1b4] sm:$0xf] }
  0xb2   :  { %1603 = vst [vmem:[%s2497_s4] sm:$0xff] %v1602_v32   ;;  %v972_v34 = vadd.f32 %v2108_v3, %v904_v33  ;;  %751 = vmatmul.bf16.gmra.mxu1 %v1278_v24  ;;  %831 = vmatmul.bf16.gmra.mxu3 %v1406_v29  ;;  %v873_v41 = vmul.f32 %v2102_v63, %v713_v35  ;;  %v1417_v24 = vld [vmem:[%s2494_s0 + $0x1b0] sm:$0xf]  ;;  %v1291_v29 = vld [vmem:[%s2494_s0 + $0xb8] sm:$0xf0] }
  0xb4   :  { %v1036_v37 = vmax.f32 %v972_v34, 0.0  ;;  %v623_v38 = vpop.f32.mrf.mxu2  ;;  %v941_v49 = vadd.f32 %v2108_v3, %v873_v41 }
  0xb5   :  { %v792_v39 = vpop.f32.mrf.mxu3 }
  0xb6   :  { %v1682_v40 = vpack.c.bf16 %v1036_v37, %v1035_v36  ;;  %v545_v42 = vpop.f32.mrf.mxu0  ;;  %v793_v44 = vadd.f32 %v792_v39, %v623_v38  ;;  %v1005_v0 = vmax.f32 %v941_v49, 0.0  ;;  %v1290_v36 = vor.u32 %v1542_v23, %v1289_v22 }
  0xb7   :  { %v714_v43 = vpop.f32.mrf.mxu1  ;;  %v1418_v37 = vor.u32 %v1574_v27, %v1417_v24  ;;  %v1294_v38 = vor.u32 %v1541_v28, %v1291_v29 }
  0xb8   :  { %1774 = vst [vmem:[%s2497_s4 + $0x80] sm:$0xff] %v1682_v40   ;;  %v715_v45 = vadd.f32 %v714_v43, %v545_v42  ;;  %v905_v56 = vmul.f32 %v2102_v63, %v793_v44  ;;  %v1422_v43 = vor.u32 %v1573_v30, %v1419_v31 }
  0xba   :  { %v874_v50 = vmul.f32 %v2102_v63, %v715_v45  ;;  %v973_v7 = vadd.f32 %v2108_v3, %v905_v56 }
  0xbc   :  { %v942_v57 = vadd.f32 %v2108_v3, %v874_v50  ;;  %v625_v58 = vpop.f32.mrf.mxu2  ;;  %v1037_v12 = vmax.f32 %v973_v7, 0.0  ;;  %v1427_v7 = vld [vmem:[%s2494_s0 + $0x1c8] sm:$0xf0] }
  0xbd   :  { %v794_v59 = vpop.f32.mrf.mxu3 }
  0xbe   :  { %v1006_v1 = vmax.f32 %v942_v57, 0.0  ;;  %v795_v2 = vadd.f32 %v794_v59, %v625_v58  ;;  %v548_v4 = vpop.f32.mrf.mxu0 }
  0xbf   :  { %v717_v6 = vpop.f32.mrf.mxu1 }
  0xc0   :  { %v1607_v8 = vpack.c.bf16 %v1006_v1, %v1005_v0  ;;  %v906_v9 = vmul.f32 %v2102_v63, %v795_v2  ;;  %v718_v11 = vadd.f32 %v717_v6, %v548_v4  ;;  %v1576_v2 = vld [vmem:[%s2494_s0 + $0x1c4] sm:$0xf0]  ;;  %v1543_v4 = vld [vmem:[%s2494_s0 + $0xc4] sm:$0xf] }
  0xc1   :  { %587 = vmatmul.bf16.gmra.mxu0 %v1282_v60  ;;  %667 = vmatmul.bf16.gmra.mxu2 %v1410_v61  ;;  %v1297_v60 = vld [vmem:[%s2494_s0 + $0xc0] sm:$0xf]  ;;  %v1544_v61 = vld [vmem:[%s2494_s0 + $0xc4] sm:$0xf0]  ;;  %v1575_v6 = vld [vmem:[%s2494_s0 + $0x1c4] sm:$0xf] }
  0xc2   :  { %1759 = vst [vmem:[%s2497_s4 + $0x8] sm:$0xff] %v1607_v8   ;;  %v974_v10 = vadd.f32 %v2108_v3, %v906_v9  ;;  %756 = vmatmul.bf16.gmra.mxu1 %v1286_v62  ;;  %836 = vmatmul.bf16.gmra.mxu3 %v1414_v5  ;;  %v875_v17 = vmul.f32 %v2102_v63, %v718_v11  ;;  %v1425_v62 = vld [vmem:[%s2494_s0 + $0x1c0] sm:$0xf]  ;;  %v1299_v5 = vld [vmem:[%s2494_s0 + $0xc8] sm:$0xf0] }
  0xc4   :  { %v1038_v13 = vmax.f32 %v974_v10, 0.0  ;;  %v628_v14 = vpop.f32.mrf.mxu2  ;;  %v943_v25 = vadd.f32 %v2108_v3, %v875_v17 }
  0xc5   :  { %v797_v15 = vpop.f32.mrf.mxu3 }
  0xc6   :  { %v1687_v16 = vpack.c.bf16 %v1038_v13, %v1037_v12  ;;  %v550_v18 = vpop.f32.mrf.mxu0  ;;  %v798_v20 = vadd.f32 %v797_v15, %v628_v14  ;;  %v1007_v39 = vmax.f32 %v943_v25, 0.0  ;;  %v1298_v12 = vor.u32 %v1544_v61, %v1297_v60 }
  0xc7   :  { %v719_v19 = vpop.f32.mrf.mxu1  ;;  %v1426_v13 = vor.u32 %v1576_v2, %v1425_v62  ;;  %v1302_v14 = vor.u32 %v1543_v4, %v1299_v5 }
  0xc8   :  { %1775 = vst [vmem:[%s2497_s4 + $0x88] sm:$0xff] %v1687_v16   ;;  %v720_v21 = vadd.f32 %v719_v19, %v550_v18  ;;  %v907_v32 = vmul.f32 %v2102_v63, %v798_v20  ;;  %v1430_v19 = vor.u32 %v1575_v6, %v1427_v7 }
  0xca   :  { %v876_v26 = vmul.f32 %v2102_v63, %v720_v21  ;;  %v975_v45 = vadd.f32 %v2108_v3, %v907_v32 }
  0xcc   :  { %v944_v33 = vadd.f32 %v2108_v3, %v876_v26  ;;  %v630_v34 = vpop.f32.mrf.mxu2  ;;  %v1039_v50 = vmax.f32 %v975_v45, 0.0  ;;  %v1435_v45 = vld [vmem:[%s2494_s0 + $0x1d8] sm:$0xf0] }
  0xcd   :  { %v799_v35 = vpop.f32.mrf.mxu3 }
  0xce   :  { %v1008_v40 = vmax.f32 %v944_v33, 0.0  ;;  %v800_v41 = vadd.f32 %v799_v35, %v630_v34  ;;  %v553_v42 = vpop.f32.mrf.mxu0 }
  0xcf   :  { %v722_v44 = vpop.f32.mrf.mxu1 }
  0xd0   :  { %v1612_v46 = vpack.c.bf16 %v1008_v40, %v1007_v39  ;;  %v908_v47 = vmul.f32 %v2102_v63, %v800_v41  ;;  %v723_v49 = vadd.f32 %v722_v44, %v553_v42  ;;  %v1578_v41 = vld [vmem:[%s2494_s0 + $0x1d4] sm:$0xf0]  ;;  %v1545_v42 = vld [vmem:[%s2494_s0 + $0xd4] sm:$0xf] }
  0xd1   :  { %592 = vmatmul.bf16.gmra.mxu0 %v1290_v36  ;;  %672 = vmatmul.bf16.gmra.mxu2 %v1418_v37  ;;  %v1305_v36 = vld [vmem:[%s2494_s0 + $0xd0] sm:$0xf]  ;;  %v1546_v37 = vld [vmem:[%s2494_s0 + $0xd4] sm:$0xf0]  ;;  %v1577_v44 = vld [vmem:[%s2494_s0 + $0x1d4] sm:$0xf] }
  0xd2   :  { %1760 = vst [vmem:[%s2497_s4 + $0x10] sm:$0xff] %v1612_v46   ;;  %v976_v48 = vadd.f32 %v2108_v3, %v908_v47  ;;  %761 = vmatmul.bf16.gmra.mxu1 %v1294_v38  ;;  %841 = vmatmul.bf16.gmra.mxu3 %v1422_v43  ;;  %v877_v55 = vmul.f32 %v2102_v63, %v723_v49  ;;  %v1433_v38 = vld [vmem:[%s2494_s0 + $0x1d0] sm:$0xf]  ;;  %v1307_v43 = vld [vmem:[%s2494_s0 + $0xd8] sm:$0xf0] }
  0xd4   :  { %v1040_v51 = vmax.f32 %v976_v48, 0.0  ;;  %v633_v52 = vpop.f32.mrf.mxu2  ;;  %v945_v0 = vadd.f32 %v2108_v3, %v877_v55 }
  0xd5   :  { %v802_v53 = vpop.f32.mrf.mxu3 }
  0xd6   :  { %v1692_v54 = vpack.c.bf16 %v1040_v51, %v1039_v50  ;;  %v555_v56 = vpop.f32.mrf.mxu0  ;;  %v803_v58 = vadd.f32 %v802_v53, %v633_v52  ;;  %v1009_v15 = vmax.f32 %v945_v0, 0.0  ;;  %v1306_v50 = vor.u32 %v1546_v37, %v1305_v36 }
  0xd7   :  { %v724_v57 = vpop.f32.mrf.mxu1  ;;  %v1434_v51 = vor.u32 %v1578_v41, %v1433_v38  ;;  %v1310_v52 = vor.u32 %v1545_v42, %v1307_v43 }
  0xd8   :  { %1776 = vst [vmem:[%s2497_s4 + $0x90] sm:$0xff] %v1692_v54   ;;  %v725_v59 = vadd.f32 %v724_v57, %v555_v56  ;;  %v909_v8 = vmul.f32 %v2102_v63, %v803_v58  ;;  %v1438_v57 = vor.u32 %v1577_v44, %v1435_v45 }
  0xda   :  { %v878_v1 = vmul.f32 %v2102_v63, %v725_v59  ;;  %v977_v21 = vadd.f32 %v2108_v3, %v909_v8 }
  0xdc   :  { %v946_v9 = vadd.f32 %v2108_v3, %v878_v1  ;;  %v635_v10 = vpop.f32.mrf.mxu2  ;;  %v1041_v26 = vmax.f32 %v977_v21, 0.0  ;;  %v1443_v21 = vld [vmem:[%s2494_s0 + $0x1e8] sm:$0xf0] }
  0xdd   :  { %v804_v11 = vpop.f32.mrf.mxu3 }
  0xde   :  { %v1010_v16 = vmax.f32 %v946_v9, 0.0  ;;  %v805_v17 = vadd.f32 %v804_v11, %v635_v10  ;;  %v558_v18 = vpop.f32.mrf.mxu0 }
  0xdf   :  { %v727_v20 = vpop.f32.mrf.mxu1 }
  0xe0   :  { %v1617_v22 = vpack.c.bf16 %v1010_v16, %v1009_v15  ;;  %v910_v23 = vmul.f32 %v2102_v63, %v805_v17  ;;  %v728_v25 = vadd.f32 %v727_v20, %v558_v18  ;;  %v1580_v17 = vld [vmem:[%s2494_s0 + $0x1e4] sm:$0xf0]  ;;  %v1547_v18 = vld [vmem:[%s2494_s0 + $0xe4] sm:$0xf] }
  0xe1   :  { %597 = vmatmul.bf16.gmra.mxu0 %v1298_v12  ;;  %677 = vmatmul.bf16.gmra.mxu2 %v1426_v13  ;;  %v1313_v12 = vld [vmem:[%s2494_s0 + $0xe0] sm:$0xf]  ;;  %v1548_v13 = vld [vmem:[%s2494_s0 + $0xe4] sm:$0xf0]  ;;  %v1579_v20 = vld [vmem:[%s2494_s0 + $0x1e4] sm:$0xf] }
  0xe2   :  { %1761 = vst [vmem:[%s2497_s4 + $0x18] sm:$0xff] %v1617_v22   ;;  %v978_v24 = vadd.f32 %v2108_v3, %v910_v23  ;;  %766 = vmatmul.bf16.gmra.mxu1 %v1302_v14  ;;  %846 = vmatmul.bf16.gmra.mxu3 %v1430_v19  ;;  %v879_v31 = vmul.f32 %v2102_v63, %v728_v25  ;;  %v1441_v14 = vld [vmem:[%s2494_s0 + $0x1e0] sm:$0xf]  ;;  %v1315_v19 = vld [vmem:[%s2494_s0 + $0xe8] sm:$0xf0] }
  0xe4   :  { %v1042_v27 = vmax.f32 %v978_v24, 0.0  ;;  %v638_v28 = vpop.f32.mrf.mxu2  ;;  %v947_v39 = vadd.f32 %v2108_v3, %v879_v31 }
  0xe5   :  { %v807_v29 = vpop.f32.mrf.mxu3 }
  0xe6   :  { %v1697_v30 = vpack.c.bf16 %v1042_v27, %v1041_v26  ;;  %v560_v32 = vpop.f32.mrf.mxu0  ;;  %v808_v34 = vadd.f32 %v807_v29, %v638_v28  ;;  %v1011_v53 = vmax.f32 %v947_v39, 0.0  ;;  %v1314_v26 = vor.u32 %v1548_v13, %v1313_v12 }
  0xe7   :  { %v729_v33 = vpop.f32.mrf.mxu1  ;;  %v1442_v27 = vor.u32 %v1580_v17, %v1441_v14  ;;  %v1318_v28 = vor.u32 %v1547_v18, %v1315_v19 }
  0xe8   :  { %1777 = vst [vmem:[%s2497_s4 + $0x98] sm:$0xff] %v1697_v30   ;;  %v730_v35 = vadd.f32 %v729_v33, %v560_v32  ;;  %v911_v46 = vmul.f32 %v2102_v63, %v808_v34  ;;  %v1446_v33 = vor.u32 %v1579_v20, %v1443_v21 }
  0xea   :  { %v880_v40 = vmul.f32 %v2102_v63, %v730_v35  ;;  %v979_v59 = vadd.f32 %v2108_v3, %v911_v46 }
  0xec   :  { %v948_v47 = vadd.f32 %v2108_v3, %v880_v40  ;;  %v640_v48 = vpop.f32.mrf.mxu2  ;;  %v1043_v1 = vmax.f32 %v979_v59, 0.0  ;;  %v1451_v59 = vld [vmem:[%s2494_s0 + $0x1f8] sm:$0xf0] }
  0xed   :  { %v809_v49 = vpop.f32.mrf.mxu3 }
  0xee   :  { %v1012_v54 = vmax.f32 %v948_v47, 0.0  ;;  %v810_v55 = vadd.f32 %v809_v49, %v640_v48  ;;  %v563_v56 = vpop.f32.mrf.mxu0 }
  0xef   :  { %v732_v58 = vpop.f32.mrf.mxu1 }
  0xf0   :  { %v1622_v60 = vpack.c.bf16 %v1012_v54, %v1011_v53  ;;  %v912_v61 = vmul.f32 %v2102_v63, %v810_v55  ;;  %v733_v0 = vadd.f32 %v732_v58, %v563_v56  ;;  %v1582_v55 = vld [vmem:[%s2494_s0 + $0x1f4] sm:$0xf0]  ;;  %v1549_v56 = vld [vmem:[%s2494_s0 + $0xf4] sm:$0xf] }
  0xf1   :  { %602 = vmatmul.bf16.gmra.mxu0 %v1306_v50  ;;  %682 = vmatmul.bf16.gmra.mxu2 %v1434_v51  ;;  %v1321_v50 = vld [vmem:[%s2494_s0 + $0xf0] sm:$0xf]  ;;  %v1550_v51 = vld [vmem:[%s2494_s0 + $0xf4] sm:$0xf0]  ;;  %v1581_v58 = vld [vmem:[%s2494_s0 + $0x1f4] sm:$0xf] }
  0xf2   :  { %1762 = vst [vmem:[%s2497_s4 + $0x20] sm:$0xff] %v1622_v60   ;;  %v980_v62 = vadd.f32 %v2108_v3, %v912_v61  ;;  %771 = vmatmul.bf16.gmra.mxu1 %v1310_v52  ;;  %851 = vmatmul.bf16.gmra.mxu3 %v1438_v57  ;;  %v881_v7 = vmul.f32 %v2102_v63, %v733_v0  ;;  %v1449_v52 = vld [vmem:[%s2494_s0 + $0x1f0] sm:$0xf]  ;;  %v1323_v57 = vld [vmem:[%s2494_s0 + $0xf8] sm:$0xf0] }
  0xf4   :  { %v1044_v2 = vmax.f32 %v980_v62, 0.0  ;;  %v643_v4 = vpop.f32.mrf.mxu2  ;;  %v949_v15 = vadd.f32 %v2108_v3, %v881_v7 }
  0xf5   :  { %v812_v5 = vpop.f32.mrf.mxu3 }
  0xf6   :  { %v1702_v6 = vpack.c.bf16 %v1044_v2, %v1043_v1  ;;  %v565_v8 = vpop.f32.mrf.mxu0  ;;  %v813_v10 = vadd.f32 %v812_v5, %v643_v4  ;;  %v1013_v29 = vmax.f32 %v949_v15, 0.0  ;;  %v1322_v1 = vor.u32 %v1550_v51, %v1321_v50 }
  0xf7   :  { %v734_v9 = vpop.f32.mrf.mxu1  ;;  %v1450_v2 = vor.u32 %v1582_v55, %v1449_v52  ;;  %v1326_v4 = vor.u32 %v1549_v56, %v1323_v57 }
  0xf8   :  { %1778 = vst [vmem:[%s2497_s4 + $0xa0] sm:$0xff] %v1702_v6   ;;  %v735_v11 = vadd.f32 %v734_v9, %v565_v8  ;;  %v913_v22 = vmul.f32 %v2102_v63, %v813_v10  ;;  %v1454_v9 = vor.u32 %v1581_v58, %v1451_v59 }
  0xfa   :  { %v882_v16 = vmul.f32 %v2102_v63, %v735_v11  ;;  %v981_v35 = vadd.f32 %v2108_v3, %v913_v22 }
  0xfc   :  { %v950_v23 = vadd.f32 %v2108_v3, %v882_v16  ;;  %v645_v24 = vpop.f32.mrf.mxu2  ;;  %v1045_v40 = vmax.f32 %v981_v35, 0.0 }
  0xfd   :  { %v814_v25 = vpop.f32.mrf.mxu3 }
  0xfe   :  { %v1014_v30 = vmax.f32 %v950_v23, 0.0  ;;  %v815_v31 = vadd.f32 %v814_v25, %v645_v24  ;;  %v568_v32 = vpop.f32.mrf.mxu0 }
  0xff   :  { %v737_v34 = vpop.f32.mrf.mxu1 }
 0x100   :  { %v1627_v36 = vpack.c.bf16 %v1014_v30, %v1013_v29  ;;  %v914_v37 = vmul.f32 %v2102_v63, %v815_v31  ;;  %v738_v39 = vadd.f32 %v737_v34, %v568_v32 }
 0x101   :  { %607 = vmatmul.bf16.gmra.mxu0 %v1314_v26  ;;  %687 = vmatmul.bf16.gmra.mxu2 %v1442_v27 }
 0x102   :  { %1763 = vst [vmem:[%s2497_s4 + $0x28] sm:$0xff] %v1627_v36   ;;  %v982_v38 = vadd.f32 %v2108_v3, %v914_v37  ;;  %776 = vmatmul.bf16.gmra.mxu1 %v1318_v28  ;;  %856 = vmatmul.bf16.gmra.mxu3 %v1446_v33  ;;  %v883_v45 = vmul.f32 %v2102_v63, %v738_v39 }
 0x104   :  { %v1046_v41 = vmax.f32 %v982_v38, 0.0  ;;  %v648_v42 = vpop.f32.mrf.mxu2  ;;  %v951_v53 = vadd.f32 %v2108_v3, %v883_v45 }
 0x105   :  { %v817_v43 = vpop.f32.mrf.mxu3 }
 0x106   :  { %v1707_v44 = vpack.c.bf16 %v1046_v41, %v1045_v40  ;;  %v570_v46 = vpop.f32.mrf.mxu0  ;;  %v818_v48 = vadd.f32 %v817_v43, %v648_v42  ;;  %v1015_v5 = vmax.f32 %v951_v53, 0.0 }
 0x107   :  { %v739_v47 = vpop.f32.mrf.mxu1 }
 0x108   :  { %1779 = vst [vmem:[%s2497_s4 + $0xa8] sm:$0xff] %v1707_v44   ;;  %v740_v49 = vadd.f32 %v739_v47, %v570_v46  ;;  %v915_v60 = vmul.f32 %v2102_v63, %v818_v48 }
 0x10a   :  { %v884_v54 = vmul.f32 %v2102_v63, %v740_v49  ;;  %v983_v11 = vadd.f32 %v2108_v3, %v915_v60 }
 0x10c   :  { %v952_v61 = vadd.f32 %v2108_v3, %v884_v54  ;;  %v650_v62 = vpop.f32.mrf.mxu2  ;;  %v1047_v16 = vmax.f32 %v983_v11, 0.0 }
 0x10d   :  { %v819_v0 = vpop.f32.mrf.mxu3 }
 0x10e   :  { %v1016_v6 = vmax.f32 %v952_v61, 0.0  ;;  %v820_v7 = vadd.f32 %v819_v0, %v650_v62  ;;  %v573_v8 = vpop.f32.mrf.mxu0 }
 0x10f   :  { %v742_v10 = vpop.f32.mrf.mxu1 }
 0x110   :  { %v1632_v12 = vpack.c.bf16 %v1016_v6, %v1015_v5  ;;  %v916_v13 = vmul.f32 %v2102_v63, %v820_v7  ;;  %v743_v15 = vadd.f32 %v742_v10, %v573_v8 }
 0x111   :  { %612 = vmatmul.bf16.gmra.mxu0 %v1322_v1  ;;  %692 = vmatmul.bf16.gmra.mxu2 %v1450_v2 }
 0x112   :  { %1764 = vst [vmem:[%s2497_s4 + $0x30] sm:$0xff] %v1632_v12   ;;  %v984_v14 = vadd.f32 %v2108_v3, %v916_v13  ;;  %781 = vmatmul.bf16.gmra.mxu1 %v1326_v4  ;;  %861 = vmatmul.bf16.gmra.mxu3 %v1454_v9  ;;  %v885_v21 = vmul.f32 %v2102_v63, %v743_v15 }
 0x114   :  { %v1048_v17 = vmax.f32 %v984_v14, 0.0  ;;  %v653_v18 = vpop.f32.mrf.mxu2  ;;  %v953_v26 = vadd.f32 %v2108_v3, %v885_v21 }
 0x115   :  { %v822_v19 = vpop.f32.mrf.mxu3 }
 0x116   :  { %v1712_v20 = vpack.c.bf16 %v1048_v17, %v1047_v16  ;;  %v575_v22 = vpop.f32.mrf.mxu0  ;;  %v823_v24 = vadd.f32 %v822_v19, %v653_v18  ;;  %v1017_v32 = vmax.f32 %v953_v26, 0.0 }
 0x117   :  { %v744_v23 = vpop.f32.mrf.mxu1 }
 0x118   :  { %1780 = vst [vmem:[%s2497_s4 + $0xb0] sm:$0xff] %v1712_v20   ;;  %v745_v25 = vadd.f32 %v744_v23, %v575_v22  ;;  %v917_v28 = vmul.f32 %v2102_v63, %v823_v24 }
 0x11a   :  { %v886_v27 = vmul.f32 %v2102_v63, %v745_v25  ;;  %v985_v37 = vadd.f32 %v2108_v3, %v917_v28 }
 0x11c   :  { %v954_v29 = vadd.f32 %v2108_v3, %v886_v27  ;;  %v655_v30 = vpop.f32.mrf.mxu2  ;;  %v1049_v42 = vmax.f32 %v985_v37, 0.0 }
 0x11d   :  { %v824_v31 = vpop.f32.mrf.mxu3 }
 0x11e   :  { %v1018_v33 = vmax.f32 %v954_v29, 0.0  ;;  %v825_v34 = vadd.f32 %v824_v31, %v655_v30  ;;  %v578_v35 = vpop.f32.mrf.mxu0 }
 0x11f   :  { %v747_v36 = vpop.f32.mrf.mxu1 }
 0x120   :  { %v1637_v38 = vpack.c.bf16 %v1018_v33, %v1017_v32  ;;  %v918_v39 = vmul.f32 %v2102_v63, %v825_v34  ;;  %v748_v41 = vadd.f32 %v747_v36, %v578_v35 }
 0x122   :  { %1765 = vst [vmem:[%s2497_s4 + $0x38] sm:$0xff] %v1637_v38   ;;  %v986_v40 = vadd.f32 %v2108_v3, %v918_v39  ;;  %v887_v47 = vmul.f32 %v2102_v63, %v748_v41 }
 0x124   :  { %v1050_v43 = vmax.f32 %v986_v40, 0.0  ;;  %v658_v44 = vpop.f32.mrf.mxu2  ;;  %v955_v52 = vadd.f32 %v2108_v3, %v887_v47 }
 0x125   :  { %v827_v45 = vpop.f32.mrf.mxu3 }
 0x126   :  { %v1717_v46 = vpack.c.bf16 %v1050_v43, %v1049_v42  ;;  %v580_v48 = vpop.f32.mrf.mxu0  ;;  %v828_v50 = vadd.f32 %v827_v45, %v658_v44  ;;  %v1019_v58 = vmax.f32 %v955_v52, 0.0 }
 0x127   :  { %v749_v49 = vpop.f32.mrf.mxu1 }
 0x128   :  { %1781 = vst [vmem:[%s2497_s4 + $0xb8] sm:$0xff] %v1717_v46   ;;  %v750_v51 = vadd.f32 %v749_v49, %v580_v48  ;;  %v919_v54 = vmul.f32 %v2102_v63, %v828_v50 }
 0x12a   :  { %v888_v53 = vmul.f32 %v2102_v63, %v750_v51  ;;  %v987_v0 = vadd.f32 %v2108_v3, %v919_v54 }
 0x12c   :  { %v956_v55 = vadd.f32 %v2108_v3, %v888_v53  ;;  %v660_v56 = vpop.f32.mrf.mxu2  ;;  %v1051_v6 = vmax.f32 %v987_v0, 0.0 }
 0x12d   :  { %v829_v57 = vpop.f32.mrf.mxu3 }
 0x12e   :  { %v1020_v59 = vmax.f32 %v956_v55, 0.0  ;;  %v830_v60 = vadd.f32 %v829_v57, %v660_v56  ;;  %v583_v61 = vpop.f32.mrf.mxu0 }
 0x12f   :  { %v752_v62 = vpop.f32.mrf.mxu1 }
 0x130   :  { %v1642_v1 = vpack.c.bf16 %v1020_v59, %v1019_v58  ;;  %v920_v2 = vmul.f32 %v2102_v63, %v830_v60  ;;  %v753_v5 = vadd.f32 %v752_v62, %v583_v61 }
 0x132   :  { %1766 = vst [vmem:[%s2497_s4 + $0x40] sm:$0xff] %v1642_v1   ;;  %v988_v4 = vadd.f32 %v2108_v3, %v920_v2  ;;  %v889_v11 = vmul.f32 %v2102_v63, %v753_v5 }
 0x134   :  { %v1052_v7 = vmax.f32 %v988_v4, 0.0  ;;  %v663_v8 = vpop.f32.mrf.mxu2  ;;  %v957_v16 = vadd.f32 %v2108_v3, %v889_v11 }
 0x135   :  { %v832_v9 = vpop.f32.mrf.mxu3 }
 0x136   :  { %v1722_v10 = vpack.c.bf16 %v1052_v7, %v1051_v6  ;;  %v585_v12 = vpop.f32.mrf.mxu0  ;;  %v833_v14 = vadd.f32 %v832_v9, %v663_v8  ;;  %v1021_v22 = vmax.f32 %v957_v16, 0.0 }
 0x137   :  { %v754_v13 = vpop.f32.mrf.mxu1 }
 0x138   :  { %1782 = vst [vmem:[%s2497_s4 + $0xc0] sm:$0xff] %v1722_v10   ;;  %v755_v15 = vadd.f32 %v754_v13, %v585_v12  ;;  %v921_v18 = vmul.f32 %v2102_v63, %v833_v14 }
 0x13a   :  { %v890_v17 = vmul.f32 %v2102_v63, %v755_v15  ;;  %v989_v27 = vadd.f32 %v2108_v3, %v921_v18 }
 0x13c   :  { %v958_v19 = vadd.f32 %v2108_v3, %v890_v17  ;;  %v665_v20 = vpop.f32.mrf.mxu2  ;;  %v1053_v32 = vmax.f32 %v989_v27, 0.0 }
 0x13d   :  { %v834_v21 = vpop.f32.mrf.mxu3 }
 0x13e   :  { %v1022_v23 = vmax.f32 %v958_v19, 0.0  ;;  %v835_v24 = vadd.f32 %v834_v21, %v665_v20  ;;  %v588_v25 = vpop.f32.mrf.mxu0 }
 0x13f   :  { %v757_v26 = vpop.f32.mrf.mxu1 }
 0x140   :  { %v1647_v28 = vpack.c.bf16 %v1022_v23, %v1021_v22  ;;  %v922_v29 = vmul.f32 %v2102_v63, %v835_v24  ;;  %v758_v31 = vadd.f32 %v757_v26, %v588_v25 }
 0x142   :  { %1767 = vst [vmem:[%s2497_s4 + $0x48] sm:$0xff] %v1647_v28   ;;  %v990_v30 = vadd.f32 %v2108_v3, %v922_v29  ;;  %v891_v37 = vmul.f32 %v2102_v63, %v758_v31 }
 0x144   :  { %v1054_v33 = vmax.f32 %v990_v30, 0.0  ;;  %v668_v34 = vpop.f32.mrf.mxu2  ;;  %v959_v42 = vadd.f32 %v2108_v3, %v891_v37 }
 0x145   :  { %v837_v35 = vpop.f32.mrf.mxu3 }
 0x146   :  { %v1727_v36 = vpack.c.bf16 %v1054_v33, %v1053_v32  ;;  %v590_v38 = vpop.f32.mrf.mxu0  ;;  %v838_v40 = vadd.f32 %v837_v35, %v668_v34  ;;  %v1023_v48 = vmax.f32 %v959_v42, 0.0 }
 0x147   :  { %v759_v39 = vpop.f32.mrf.mxu1 }
 0x148   :  { %1783 = vst [vmem:[%s2497_s4 + $0xc8] sm:$0xff] %v1727_v36   ;;  %v760_v41 = vadd.f32 %v759_v39, %v590_v38  ;;  %v923_v44 = vmul.f32 %v2102_v63, %v838_v40 }
 0x14a   :  { %v892_v43 = vmul.f32 %v2102_v63, %v760_v41  ;;  %v991_v53 = vadd.f32 %v2108_v3, %v923_v44 }
 0x14c   :  { %v960_v45 = vadd.f32 %v2108_v3, %v892_v43  ;;  %v670_v46 = vpop.f32.mrf.mxu2  ;;  %v1055_v58 = vmax.f32 %v991_v53, 0.0 }
 0x14d   :  { %v839_v47 = vpop.f32.mrf.mxu3 }
 0x14e   :  { %v1024_v49 = vmax.f32 %v960_v45, 0.0  ;;  %v840_v50 = vadd.f32 %v839_v47, %v670_v46  ;;  %v593_v51 = vpop.f32.mrf.mxu0 }
 0x14f   :  { %v762_v52 = vpop.f32.mrf.mxu1 }
 0x150   :  { %v1652_v54 = vpack.c.bf16 %v1024_v49, %v1023_v48  ;;  %v924_v55 = vmul.f32 %v2102_v63, %v840_v50  ;;  %v763_v57 = vadd.f32 %v762_v52, %v593_v51 }
 0x152   :  { %1768 = vst [vmem:[%s2497_s4 + $0x50] sm:$0xff] %v1652_v54   ;;  %v992_v56 = vadd.f32 %v2108_v3, %v924_v55  ;;  %v893_v0 = vmul.f32 %v2102_v63, %v763_v57 }
 0x154   :  { %v1056_v59 = vmax.f32 %v992_v56, 0.0  ;;  %v673_v60 = vpop.f32.mrf.mxu2  ;;  %v961_v6 = vadd.f32 %v2108_v3, %v893_v0 }
 0x155   :  { %v842_v61 = vpop.f32.mrf.mxu3 }
 0x156   :  { %v1732_v62 = vpack.c.bf16 %v1056_v59, %v1055_v58  ;;  %v595_v1 = vpop.f32.mrf.mxu0  ;;  %v843_v4 = vadd.f32 %v842_v61, %v673_v60  ;;  %v1025_v12 = vmax.f32 %v961_v6, 0.0 }
 0x157   :  { %v764_v2 = vpop.f32.mrf.mxu1 }
 0x158   :  { %1784 = vst [vmem:[%s2497_s4 + $0xd0] sm:$0xff] %v1732_v62   ;;  %v765_v5 = vadd.f32 %v764_v2, %v595_v1  ;;  %v925_v8 = vmul.f32 %v2102_v63, %v843_v4 }
 0x15a   :  { %v894_v7 = vmul.f32 %v2102_v63, %v765_v5  ;;  %v993_v17 = vadd.f32 %v2108_v3, %v925_v8 }
 0x15c   :  { %v962_v9 = vadd.f32 %v2108_v3, %v894_v7  ;;  %v675_v10 = vpop.f32.mrf.mxu2  ;;  %v1057_v22 = vmax.f32 %v993_v17, 0.0 }
 0x15d   :  { %v844_v11 = vpop.f32.mrf.mxu3 }
 0x15e   :  { %v1026_v13 = vmax.f32 %v962_v9, 0.0  ;;  %v845_v14 = vadd.f32 %v844_v11, %v675_v10  ;;  %v598_v15 = vpop.f32.mrf.mxu0 }
 0x15f   :  { %v767_v16 = vpop.f32.mrf.mxu1 }
 0x160   :  { %v1657_v18 = vpack.c.bf16 %v1026_v13, %v1025_v12  ;;  %v926_v19 = vmul.f32 %v2102_v63, %v845_v14  ;;  %v768_v21 = vadd.f32 %v767_v16, %v598_v15 }
 0x162   :  { %1769 = vst [vmem:[%s2497_s4 + $0x58] sm:$0xff] %v1657_v18   ;;  %v994_v20 = vadd.f32 %v2108_v3, %v926_v19  ;;  %v895_v27 = vmul.f32 %v2102_v63, %v768_v21 }
 0x164   :  { %v1058_v23 = vmax.f32 %v994_v20, 0.0  ;;  %v678_v24 = vpop.f32.mrf.mxu2  ;;  %v963_v32 = vadd.f32 %v2108_v3, %v895_v27 }
 0x165   :  { %v847_v25 = vpop.f32.mrf.mxu3 }
 0x166   :  { %v1737_v26 = vpack.c.bf16 %v1058_v23, %v1057_v22  ;;  %v600_v28 = vpop.f32.mrf.mxu0  ;;  %v848_v30 = vadd.f32 %v847_v25, %v678_v24  ;;  %v1027_v38 = vmax.f32 %v963_v32, 0.0  ;;  %v1808_v23 = vld [vmem:[%s2495_s2] ss:$0 sm:$0xff] }
 0x167   :  { %v769_v29 = vpop.f32.mrf.mxu1 }
 0x168   :  { %1785 = vst [vmem:[%s2497_s4 + $0xd8] sm:$0xff] %v1737_v26   ;;  %v770_v31 = vadd.f32 %v769_v29, %v600_v28  ;;  %v927_v34 = vmul.f32 %v2102_v63, %v848_v30 }
 0x16a   :  { %v896_v33 = vmul.f32 %v2102_v63, %v770_v31  ;;  %v995_v43 = vadd.f32 %v2108_v3, %v927_v34 }
 0x16c   :  { %v964_v35 = vadd.f32 %v2108_v3, %v896_v33  ;;  %v680_v36 = vpop.f32.mrf.mxu2  ;;  %v1059_v48 = vmax.f32 %v995_v43, 0.0 }
 0x16d   :  { %v849_v37 = vpop.f32.mrf.mxu3 }
 0x16e   :  { %v1028_v39 = vmax.f32 %v964_v35, 0.0  ;;  %v850_v40 = vadd.f32 %v849_v37, %v680_v36  ;;  %v603_v41 = vpop.f32.mrf.mxu0 }
 0x16f   :  { %v772_v42 = vpop.f32.mrf.mxu1 }
 0x170   :  { %v1662_v44 = vpack.c.bf16 %v1028_v39, %v1027_v38  ;;  %v928_v45 = vmul.f32 %v2102_v63, %v850_v40  ;;  %v773_v47 = vadd.f32 %v772_v42, %v603_v41 }
 0x172   :  { %1770 = vst [vmem:[%s2497_s4 + $0x60] sm:$0xff] %v1662_v44   ;;  %v996_v46 = vadd.f32 %v2108_v3, %v928_v45  ;;  %v897_v53 = vmul.f32 %v2102_v63, %v773_v47 }
 0x174   :  { %v1060_v49 = vmax.f32 %v996_v46, 0.0  ;;  %v683_v50 = vpop.f32.mrf.mxu2  ;;  %v965_v58 = vadd.f32 %v2108_v3, %v897_v53 }
 0x175   :  { %v852_v51 = vpop.f32.mrf.mxu3 }
 0x176   :  { %v1742_v52 = vpack.c.bf16 %v1060_v49, %v1059_v48  ;;  %v605_v54 = vpop.f32.mrf.mxu0  ;;  %v853_v56 = vadd.f32 %v852_v51, %v683_v50  ;;  %v1029_v1 = vmax.f32 %v965_v58, 0.0 }
 0x177   :  { %v774_v55 = vpop.f32.mrf.mxu1 }
 0x178   :  { %1786 = vst [vmem:[%s2497_s4 + $0xe0] sm:$0xff] %v1742_v52   ;;  %v775_v57 = vadd.f32 %v774_v55, %v605_v54  ;;  %v929_v60 = vmul.f32 %v2102_v63, %v853_v56 }
 0x17a   :  { %v898_v59 = vmul.f32 %v2102_v63, %v775_v57  ;;  %v997_v7 = vadd.f32 %v2108_v3, %v929_v60 }
 0x17c   :  { %v966_v61 = vadd.f32 %v2108_v3, %v898_v59  ;;  %v685_v62 = vpop.f32.mrf.mxu2  ;;  %v1061_v12 = vmax.f32 %v997_v7, 0.0 }
 0x17d   :  { %v854_v0 = vpop.f32.mrf.mxu3 }
 0x17e   :  { %v1030_v2 = vmax.f32 %v966_v61, 0.0  ;;  %v855_v4 = vadd.f32 %v854_v0, %v685_v62  ;;  %v608_v5 = vpop.f32.mrf.mxu0 }
 0x17f   :  { %v777_v6 = vpop.f32.mrf.mxu1 }
 0x180   :  { %v1667_v8 = vpack.c.bf16 %v1030_v2, %v1029_v1  ;;  %v930_v9 = vmul.f32 %v2102_v63, %v855_v4  ;;  %v778_v11 = vadd.f32 %v777_v6, %v608_v5 }
 0x182   :  { %1771 = vst [vmem:[%s2497_s4 + $0x68] sm:$0xff] %v1667_v8   ;;  %v998_v10 = vadd.f32 %v2108_v3, %v930_v9  ;;  %v899_v17 = vmul.f32 %v2102_v63, %v778_v11  ;;  %v1809_v63 = vld [vmem:[%s2496_s3] ss:$0 sm:$0xff] }
 0x184   :  { %v1062_v13 = vmax.f32 %v998_v10, 0.0  ;;  %v688_v14 = vpop.f32.mrf.mxu2  ;;  %v967_v22 = vadd.f32 %v2108_v3, %v899_v17 }
 0x185   :  { %v857_v15 = vpop.f32.mrf.mxu3 }
 0x186   :  { %v1747_v16 = vpack.c.bf16 %v1062_v13, %v1061_v12  ;;  %v610_v18 = vpop.f32.mrf.mxu0  ;;  %v858_v20 = vadd.f32 %v857_v15, %v688_v14  ;;  %v1031_v29 = vmax.f32 %v967_v22, 0.0 }
 0x187   :  { %v779_v19 = vpop.f32.mrf.mxu1 }
 0x188   :  { %1787 = vst [vmem:[%s2497_s4 + $0xe8] sm:$0xff] %v1747_v16   ;;  %v780_v21 = vadd.f32 %v779_v19, %v610_v18  ;;  %v931_v25 = vmul.f32 %v1808_v23, %v858_v20 }
 0x18a   :  { %v900_v24 = vmul.f32 %v1808_v23, %v780_v21  ;;  %v999_v34 = vadd.f32 %v1809_v63, %v931_v25 }
 0x18c   :  { %v968_v26 = vadd.f32 %v1809_v63, %v900_v24  ;;  %v690_v27 = vpop.f32.mrf.mxu2  ;;  %v1063_v38 = vmax.f32 %v999_v34, 0.0 }
 0x18d   :  { %v859_v28 = vpop.f32.mrf.mxu3 }
 0x18e   :  { %v1032_v30 = vmax.f32 %v968_v26, 0.0  ;;  %v860_v31 = vadd.f32 %v859_v28, %v690_v27  ;;  %v613_v32 = vpop.f32.mrf.mxu0 }
 0x18f   :  { %v782_v33 = vpop.f32.mrf.mxu1 }
 0x190   :  { %v1672_v3 = vpack.c.bf16 %v1032_v30, %v1031_v29  ;;  %v932_v35 = vmul.f32 %v1808_v23, %v860_v31  ;;  %v783_v37 = vadd.f32 %v782_v33, %v613_v32 }
 0x192   :  { %1772 = vst [vmem:[%s2497_s4 + $0x70] sm:$0xff] %v1672_v3   ;;  %v1000_v36 = vadd.f32 %v1809_v63, %v932_v35  ;;  %v901_v43 = vmul.f32 %v1808_v23, %v783_v37 }
 0x194   :  { %v1064_v39 = vmax.f32 %v1000_v36, 0.0  ;;  %v693_v40 = vpop.f32.mrf.mxu2  ;;  %v969_v48 = vadd.f32 %v1809_v63, %v901_v43 }
 0x195   :  { %v862_v41 = vpop.f32.mrf.mxu3 }
 0x196   :  { %v1752_v42 = vpack.c.bf16 %v1064_v39, %v1063_v38  ;;  %v615_v44 = vpop.f32.mrf.mxu0  ;;  %v863_v46 = vadd.f32 %v862_v41, %v693_v40  ;;  %v1033_v54 = vmax.f32 %v969_v48, 0.0 }
 0x197   :  { %v784_v45 = vpop.f32.mrf.mxu1 }
 0x198   :  { %1788 = vst [vmem:[%s2497_s4 + $0xf0] sm:$0xff] %v1752_v42   ;;  %v785_v47 = vadd.f32 %v784_v45, %v615_v44  ;;  %v933_v50 = vmul.f32 %v1808_v23, %v863_v46 }
 0x19a   :  { %v902_v49 = vmul.f32 %v1808_v23, %v785_v47  ;;  %v1001_v57 = vadd.f32 %v1809_v63, %v933_v50 }
 0x19c   :  { %v970_v51 = vadd.f32 %v1809_v63, %v902_v49  ;;  %v695_v52 = vpop.f32.mrf.mxu2  ;;  %v1065_v61 = vmax.f32 %v1001_v57, 0.0 }
 0x19d   :  { %v864_v53 = vpop.f32.mrf.mxu3 }
 0x19e   :  { %v1034_v55 = vmax.f32 %v970_v51, 0.0  ;;  %v865_v56 = vadd.f32 %v864_v53, %v695_v52 }
 0x1a0   :  { %v1677_v58 = vpack.c.bf16 %v1034_v55, %v1033_v54  ;;  %v934_v59 = vmul.f32 %v1808_v23, %v865_v56 }
 0x1a2   :  { %1773 = vst [vmem:[%s2497_s4 + $0x78] sm:$0xff] %v1677_v58   ;;  %v1002_v60 = vadd.f32 %v1809_v63, %v934_v59 }
 0x1a4   :  { %v1066_v62 = vmax.f32 %v1002_v60, 0.0 }
 0x1a6   :  { %v1757_v0 = vpack.c.bf16 %v1066_v62, %v1065_v61 }
 0x1a8   :  { %1789 = vst [vmem:[%s2497_s4 + $0xf8] sm:$0xff] %v1757_v0  }

// kernel: resnet_backbone_forward.23
= control target key start
LH: loop header
LB: loop body
LE: loop exit
PB: predicated region body
PF: predicated region fallthrough
CT: control target
= control target key end

     0   :  { %s578_s1 = inlined_call_operand.vmem [shape: bf16[128,128], index: 1, kind: input, shape index: {}]   ;;  %s579_s2 = inlined_call_operand.vmem [shape: f32[1,128], index: 2, kind: input, shape index: {}]   ;;  %s580_s3 = inlined_call_operand.vmem [shape: f32[1,128], index: 3, kind: input, shape index: {}]   ;;  %s581_s0 = inlined_call_operand.vmem [shape: bf16[128,128], index: 0, kind: input, shape index: {}]   ;;  %s582_s4 = inlined_call_operand.vmem [shape: bf16[128,128], index: 4, kind: output, shape index: {}]  }
   0x1   :  { %v365_v0 = vld [vmem:[%s578_s1 + $0x38] sm:$0xff]  ;;  %v364_v1 = vld [vmem:[%s578_s1 + $0x30] sm:$0xff]  ;;  %v363_v2 = vld [vmem:[%s578_s1 + $0x28] sm:$0xff] }
   0x2   :  { %145 = vmatpush.bf16.msra.mxu0 %v365_v0  ;;  %413 = vmatpush.bf16.msra.mxu1 %v365_v0  ;;  %v362_v3 = vld [vmem:[%s578_s1 + $0x20] sm:$0xff]  ;;  %v361_v4 = vld [vmem:[%s578_s1 + $0x18] sm:$0xff]  ;;  %v360_v5 = vld [vmem:[%s578_s1 + $0x10] sm:$0xff] }
   0x3   :  { %414 = vmatpush.bf16.msra.mxu2 %v365_v0  ;;  %415 = vmatpush.bf16.msra.mxu3 %v365_v0  ;;  %v359_v6 = vld [vmem:[%s578_s1 + $0x8] sm:$0xff]  ;;  %v358_v7 = vld [vmem:[%s578_s1] sm:$0xff]  ;;  %v352_v9 = vld [vmem:[%s581_s0 + $0x10] sm:$0xff] }
   0x4   :  { %v350_v8 = vld [vmem:[%s581_s0] sm:$0xff]  ;;  %v356_v11 = vld [vmem:[%s581_s0 + $0x30] sm:$0xff]  ;;  %v351_v12 = vld [vmem:[%s581_s0 + $0x8] sm:$0xff] }
   0x5   :  { %v354_v10 = vld [vmem:[%s581_s0 + $0x20] sm:$0xff]  ;;  %v353_v13 = vld [vmem:[%s581_s0 + $0x18] sm:$0xff]  ;;  %v355_v14 = vld [vmem:[%s581_s0 + $0x28] sm:$0xff] }
   0x6   :  { %146 = vmatpush.bf16.msra.mxu0 %v364_v1  ;;  %416 = vmatpush.bf16.msra.mxu1 %v364_v1  ;;  %v357_v15 = vld [vmem:[%s581_s0 + $0x38] sm:$0xff]  ;;  %v515_v18 = vld [vmem:[%s579_s2] ss:$0 sm:$0xff] }
   0x7   :  { %417 = vmatpush.bf16.msra.mxu2 %v364_v1  ;;  %418 = vmatpush.bf16.msra.mxu3 %v364_v1  ;;  %v521_v20 = vld [vmem:[%s580_s3] ss:$0 sm:$0xff] }
   0xa   :  { %147 = vmatpush.bf16.msra.mxu0 %v363_v2  ;;  %419 = vmatpush.bf16.msra.mxu1 %v363_v2 }
   0xb   :  { %420 = vmatpush.bf16.msra.mxu2 %v363_v2  ;;  %421 = vmatpush.bf16.msra.mxu3 %v363_v2 }
   0xe   :  { %148 = vmatpush.bf16.msra.mxu0 %v362_v3  ;;  %422 = vmatpush.bf16.msra.mxu1 %v362_v3 }
   0xf   :  { %423 = vmatpush.bf16.msra.mxu2 %v362_v3  ;;  %424 = vmatpush.bf16.msra.mxu3 %v362_v3 }
  0x12   :  { %149 = vmatpush.bf16.msra.mxu0 %v361_v4  ;;  %425 = vmatpush.bf16.msra.mxu1 %v361_v4 }
  0x13   :  { %426 = vmatpush.bf16.msra.mxu2 %v361_v4  ;;  %427 = vmatpush.bf16.msra.mxu3 %v361_v4 }
  0x16   :  { %150 = vmatpush.bf16.msra.mxu0 %v360_v5  ;;  %428 = vmatpush.bf16.msra.mxu1 %v360_v5 }
  0x17   :  { %429 = vmatpush.bf16.msra.mxu2 %v360_v5  ;;  %430 = vmatpush.bf16.msra.mxu3 %v360_v5 }
  0x1a   :  { %151 = vmatpush.bf16.msra.mxu0 %v359_v6  ;;  %431 = vmatpush.bf16.msra.mxu1 %v359_v6 }
  0x1b   :  { %432 = vmatpush.bf16.msra.mxu2 %v359_v6  ;;  %433 = vmatpush.bf16.msra.mxu3 %v359_v6 }
  0x1e   :  { %152 = vmatpush.bf16.msra.mxu0 %v358_v7  ;;  %434 = vmatpush.bf16.msra.mxu1 %v358_v7 }
  0x1f   :  { %435 = vmatpush.bf16.msra.mxu2 %v358_v7  ;;  %436 = vmatpush.bf16.msra.mxu3 %v358_v7 }
  0x21   :  { %153 = vmatmul.bf16.vlgmr.msra.gmra.mxu0 %v350_v8  ;;  %163 = vmatmul.bf16.vlgmr.msra.gmra.mxu1 %v352_v9 }
  0x22   :  { %173 = vmatmul.bf16.vlgmr.msra.gmra.mxu2 %v354_v10  ;;  %183 = vmatmul.bf16.vlgmr.msra.gmra.mxu3 %v356_v11 }
  0x31   :  { %158 = vmatmul.bf16.gmra.mxu0 %v351_v12  ;;  %168 = vmatmul.bf16.gmra.mxu1 %v353_v13 }
  0x32   :  { %178 = vmatmul.bf16.gmra.mxu2 %v355_v14  ;;  %188 = vmatmul.bf16.gmra.mxu3 %v357_v15 }
  0x9e   :  { %v154_v16 = vpop.f32.mrf.mxu0  ;;  %v164_v17 = vpop.f32.mrf.mxu1 }
  0x9f   :  { %v198_v19 = vmul.f32 %v515_v18, %v154_v16  ;;  %v202_v21 = vmul.f32 %v515_v18, %v164_v17 }
  0xa1   :  { %v218_v26 = vadd.f32 %v521_v20, %v198_v19  ;;  %v222_v27 = vadd.f32 %v521_v20, %v202_v21 }
  0xa3   :  { %v234_v34 = vmax.f32 %v218_v26, 0.0  ;;  %v238_v35 = vmax.f32 %v222_v27, 0.0 }
  0xa5   :  { %v174_v22 = vpop.f32.mrf.mxu2  ;;  %v184_v23 = vpop.f32.mrf.mxu3 }
  0xa6   :  { %v156_v24 = vpop.f32.mrf.mxu0  ;;  %v166_v25 = vpop.f32.mrf.mxu1  ;;  %v206_v32 = vmul.f32 %v515_v18, %v174_v22  ;;  %v210_v33 = vmul.f32 %v515_v18, %v184_v23 }
  0xa7   :  { %v199_v28 = vmul.f32 %v515_v18, %v156_v24  ;;  %v203_v29 = vmul.f32 %v515_v18, %v166_v25 }
  0xa8   :  { %v226_v42 = vadd.f32 %v521_v20, %v206_v32  ;;  %v230_v43 = vadd.f32 %v521_v20, %v210_v33 }
  0xa9   :  { %v219_v30 = vadd.f32 %v521_v20, %v199_v28  ;;  %v223_v31 = vadd.f32 %v521_v20, %v203_v29 }
  0xaa   :  { %v242_v50 = vmax.f32 %v226_v42, 0.0  ;;  %v246_v51 = vmax.f32 %v230_v43, 0.0 }
  0xab   :  { %v235_v36 = vmax.f32 %v219_v30, 0.0  ;;  %v239_v37 = vmax.f32 %v223_v31, 0.0 }
  0xad   :  { %v369_v38 = vpack.c.bf16 %v235_v36, %v234_v34  ;;  %v379_v39 = vpack.c.bf16 %v239_v37, %v238_v35  ;;  %v176_v40 = vpop.f32.mrf.mxu2  ;;  %v186_v41 = vpop.f32.mrf.mxu3 }
  0xae   :  { %v207_v44 = vmul.f32 %v515_v18, %v176_v40  ;;  %v211_v45 = vmul.f32 %v515_v18, %v186_v41  ;;  %v159_v46 = vpop.f32.mrf.mxu0  ;;  %v169_v47 = vpop.f32.mrf.mxu1 }
  0xaf   :  { %370 = vst [vmem:[%s582_s4] sm:$0xff] %v369_v38   ;;  %v200_v54 = vmul.f32 %v515_v18, %v159_v46  ;;  %v204_v55 = vmul.f32 %v515_v18, %v169_v47 }
  0xb0   :  { %407 = vst [vmem:[%s582_s4 + $0x10] sm:$0xff] %v379_v39   ;;  %v227_v48 = vadd.f32 %v521_v20, %v207_v44  ;;  %v231_v49 = vadd.f32 %v521_v20, %v211_v45 }
  0xb1   :  { %v220_v62 = vadd.f32 %v521_v20, %v200_v54  ;;  %v224_v63 = vadd.f32 %v521_v20, %v204_v55 }
  0xb2   :  { %v243_v52 = vmax.f32 %v227_v48, 0.0  ;;  %v247_v53 = vmax.f32 %v231_v49, 0.0 }
  0xb3   :  { %v236_v6 = vmax.f32 %v220_v62, 0.0  ;;  %v240_v7 = vmax.f32 %v224_v63, 0.0 }
  0xb4   :  { %v389_v56 = vpack.c.bf16 %v243_v52, %v242_v50  ;;  %v399_v57 = vpack.c.bf16 %v247_v53, %v246_v51 }
  0xb5   :  { %v179_v58 = vpop.f32.mrf.mxu2  ;;  %v189_v59 = vpop.f32.mrf.mxu3 }
  0xb6   :  { %409 = vst [vmem:[%s582_s4 + $0x20] sm:$0xff] %v389_v56   ;;  %v161_v60 = vpop.f32.mrf.mxu0  ;;  %v171_v61 = vpop.f32.mrf.mxu1  ;;  %v208_v4 = vmul.f32 %v515_v18, %v179_v58  ;;  %v212_v5 = vmul.f32 %v515_v18, %v189_v59 }
  0xb7   :  { %411 = vst [vmem:[%s582_s4 + $0x30] sm:$0xff] %v399_v57   ;;  %v201_v0 = vmul.f32 %v515_v18, %v161_v60  ;;  %v205_v1 = vmul.f32 %v515_v18, %v171_v61 }
  0xb8   :  { %v228_v14 = vadd.f32 %v521_v20, %v208_v4  ;;  %v232_v15 = vadd.f32 %v521_v20, %v212_v5 }
  0xb9   :  { %v221_v2 = vadd.f32 %v521_v20, %v201_v0  ;;  %v225_v3 = vadd.f32 %v521_v20, %v205_v1 }
  0xba   :  { %v244_v22 = vmax.f32 %v228_v14, 0.0  ;;  %v248_v23 = vmax.f32 %v232_v15, 0.0 }
  0xbb   :  { %v237_v8 = vmax.f32 %v221_v2, 0.0  ;;  %v241_v9 = vmax.f32 %v225_v3, 0.0 }
  0xbd   :  { %v374_v10 = vpack.c.bf16 %v237_v8, %v236_v6  ;;  %v384_v11 = vpack.c.bf16 %v241_v9, %v240_v7  ;;  %v181_v12 = vpop.f32.mrf.mxu2  ;;  %v191_v13 = vpop.f32.mrf.mxu3 }
  0xbe   :  { %v209_v16 = vmul.f32 %v515_v18, %v181_v12  ;;  %v213_v17 = vmul.f32 %v515_v18, %v191_v13 }
  0xbf   :  { %406 = vst [vmem:[%s582_s4 + $0x8] sm:$0xff] %v374_v10  }
  0xc0   :  { %408 = vst [vmem:[%s582_s4 + $0x18] sm:$0xff] %v384_v11   ;;  %v229_v19 = vadd.f32 %v521_v20, %v209_v16  ;;  %v233_v21 = vadd.f32 %v521_v20, %v213_v17 }
  0xc2   :  { %v245_v24 = vmax.f32 %v229_v19, 0.0  ;;  %v249_v25 = vmax.f32 %v233_v21, 0.0 }
  0xc4   :  { %v394_v26 = vpack.c.bf16 %v245_v24, %v244_v22  ;;  %v404_v27 = vpack.c.bf16 %v249_v25, %v248_v23 }
  0xc6   :  { %410 = vst [vmem:[%s582_s4 + $0x28] sm:$0xff] %v394_v26  }
  0xc7   :  { %412 = vst [vmem:[%s582_s4 + $0x38] sm:$0xff] %v404_v27  }

// kernel: resnet_backbone_forward.24
= control target key start
LH: loop header
LB: loop body
LE: loop exit
PB: predicated region body
PF: predicated region fallthrough
CT: control target
= control target key end

     0   :  { %s697_s1 = inlined_call_operand.vmem [shape: bf16[128,128], index: 1, kind: input, shape index: {}]   ;;  %s698_s2 = inlined_call_operand.vmem [shape: f32[1,128], index: 2, kind: input, shape index: {}]   ;;  %s699_s3 = inlined_call_operand.vmem [shape: f32[1,128], index: 3, kind: input, shape index: {}]   ;;  %s700_s0 = inlined_call_operand.vmem [shape: bf16[128,128], index: 0, kind: input, shape index: {}]   ;;  %s701_s4 = inlined_call_operand.vmem [shape: bf16[128,128], index: 4, kind: input, shape index: {}]   ;;  %s702_s5 = inlined_call_operand.vmem [shape: bf16[128,128], index: 5, kind: output, shape index: {}]  }
   0x1   :  { %v416_v0 = vld [vmem:[%s697_s1 + $0x38] sm:$0xff]  ;;  %v415_v1 = vld [vmem:[%s697_s1 + $0x30] sm:$0xff]  ;;  %v414_v2 = vld [vmem:[%s697_s1 + $0x28] sm:$0xff] }
   0x2   :  { %148 = vmatpush.bf16.msra.mxu0 %v416_v0  ;;  %503 = vmatpush.bf16.msra.mxu1 %v416_v0  ;;  %v413_v3 = vld [vmem:[%s697_s1 + $0x20] sm:$0xff]  ;;  %v412_v4 = vld [vmem:[%s697_s1 + $0x18] sm:$0xff]  ;;  %v411_v5 = vld [vmem:[%s697_s1 + $0x10] sm:$0xff] }
   0x3   :  { %504 = vmatpush.bf16.msra.mxu2 %v416_v0  ;;  %505 = vmatpush.bf16.msra.mxu3 %v416_v0  ;;  %v410_v6 = vld [vmem:[%s697_s1 + $0x8] sm:$0xff]  ;;  %v409_v7 = vld [vmem:[%s697_s1] sm:$0xff]  ;;  %v403_v9 = vld [vmem:[%s700_s0 + $0x10] sm:$0xff] }
   0x4   :  { %v401_v8 = vld [vmem:[%s700_s0] sm:$0xff]  ;;  %v407_v11 = vld [vmem:[%s700_s0 + $0x30] sm:$0xff]  ;;  %v402_v12 = vld [vmem:[%s700_s0 + $0x8] sm:$0xff] }
   0x5   :  { %v405_v10 = vld [vmem:[%s700_s0 + $0x20] sm:$0xff]  ;;  %v404_v13 = vld [vmem:[%s700_s0 + $0x18] sm:$0xff]  ;;  %v406_v14 = vld [vmem:[%s700_s0 + $0x28] sm:$0xff] }
   0x6   :  { %149 = vmatpush.bf16.msra.mxu0 %v415_v1  ;;  %506 = vmatpush.bf16.msra.mxu1 %v415_v1  ;;  %v408_v15 = vld [vmem:[%s700_s0 + $0x38] sm:$0xff]  ;;  %v610_v16 = vld [vmem:[%s698_s2] ss:$0 sm:$0xff]  ;;  %v490_v23 = vld [vmem:[%s701_s4 + $0x10] sm:$0xff]  }
   0x7   :  { %507 = vmatpush.bf16.msra.mxu2 %v415_v1  ;;  %508 = vmatpush.bf16.msra.mxu3 %v415_v1  ;;  %v616_v20 = vld [vmem:[%s699_s3] ss:$0 sm:$0xff]  ;;  %v427_v27 = vunpack.c.l.bf16 %v490_v23  ;;  %v428_v35 = vunpack.c.h.bf16 %v490_v23  ;;  %v494_v41 = vld [vmem:[%s701_s4 + $0x30] sm:$0xff]  }
   0x8   :  { %v418_v22 = vld [vmem:[%s701_s4] sm:$0xff]   ;;  %v443_v49 = vunpack.c.l.bf16 %v494_v41  ;;  %v444_v59 = vunpack.c.h.bf16 %v494_v41 }
   0x9   :  { %v419_v25 = vunpack.c.l.bf16 %v418_v22  ;;  %v420_v33 = vunpack.c.h.bf16 %v418_v22  ;;  %v492_v40 = vld [vmem:[%s701_s4 + $0x20] sm:$0xff]  }
   0xa   :  { %150 = vmatpush.bf16.msra.mxu0 %v414_v2  ;;  %509 = vmatpush.bf16.msra.mxu1 %v414_v2  ;;  %v435_v47 = vunpack.c.l.bf16 %v492_v40  ;;  %v436_v57 = vunpack.c.h.bf16 %v492_v40 }
   0xb   :  { %510 = vmatpush.bf16.msra.mxu2 %v414_v2  ;;  %511 = vmatpush.bf16.msra.mxu3 %v414_v2 }
   0xe   :  { %151 = vmatpush.bf16.msra.mxu0 %v413_v3  ;;  %512 = vmatpush.bf16.msra.mxu1 %v413_v3 }
   0xf   :  { %513 = vmatpush.bf16.msra.mxu2 %v413_v3  ;;  %514 = vmatpush.bf16.msra.mxu3 %v413_v3 }
  0x12   :  { %152 = vmatpush.bf16.msra.mxu0 %v412_v4  ;;  %515 = vmatpush.bf16.msra.mxu1 %v412_v4 }
  0x13   :  { %516 = vmatpush.bf16.msra.mxu2 %v412_v4  ;;  %517 = vmatpush.bf16.msra.mxu3 %v412_v4 }
  0x16   :  { %153 = vmatpush.bf16.msra.mxu0 %v411_v5  ;;  %518 = vmatpush.bf16.msra.mxu1 %v411_v5 }
  0x17   :  { %519 = vmatpush.bf16.msra.mxu2 %v411_v5  ;;  %520 = vmatpush.bf16.msra.mxu3 %v411_v5 }
  0x1a   :  { %154 = vmatpush.bf16.msra.mxu0 %v410_v6  ;;  %521 = vmatpush.bf16.msra.mxu1 %v410_v6 }
  0x1b   :  { %522 = vmatpush.bf16.msra.mxu2 %v410_v6  ;;  %523 = vmatpush.bf16.msra.mxu3 %v410_v6 }
  0x1e   :  { %155 = vmatpush.bf16.msra.mxu0 %v409_v7  ;;  %524 = vmatpush.bf16.msra.mxu1 %v409_v7 }
  0x1f   :  { %525 = vmatpush.bf16.msra.mxu2 %v409_v7  ;;  %526 = vmatpush.bf16.msra.mxu3 %v409_v7 }
  0x21   :  { %156 = vmatmul.bf16.vlgmr.msra.gmra.mxu0 %v401_v8  ;;  %166 = vmatmul.bf16.vlgmr.msra.gmra.mxu1 %v403_v9  ;;  %v489_v8 = vld [vmem:[%s701_s4 + $0x8] sm:$0xff]   ;;  %v491_v9 = vld [vmem:[%s701_s4 + $0x18] sm:$0xff]  }
  0x22   :  { %176 = vmatmul.bf16.vlgmr.msra.gmra.mxu2 %v405_v10  ;;  %186 = vmatmul.bf16.vlgmr.msra.gmra.mxu3 %v407_v11 }
  0x31   :  { %161 = vmatmul.bf16.gmra.mxu0 %v402_v12  ;;  %171 = vmatmul.bf16.gmra.mxu1 %v404_v13 }
  0x32   :  { %181 = vmatmul.bf16.gmra.mxu2 %v406_v14  ;;  %191 = vmatmul.bf16.gmra.mxu3 %v408_v15  ;;  %v423_v15 = vunpack.c.l.bf16 %v489_v8 }
  0x9e   :  { %v157_v17 = vpop.f32.mrf.mxu0  ;;  %v167_v18 = vpop.f32.mrf.mxu1 }
  0x9f   :  { %v201_v19 = vmul.f32 %v610_v16, %v157_v17  ;;  %v205_v21 = vmul.f32 %v610_v16, %v167_v18  ;;  %v431_v18 = vunpack.c.l.bf16 %v491_v9 }
  0xa1   :  { %v221_v24 = vadd.f32 %v616_v20, %v201_v19  ;;  %v225_v26 = vadd.f32 %v616_v20, %v205_v21 }
  0xa3   :  { %v269_v38 = vadd.f32 %v419_v25, %v221_v24  ;;  %v273_v39 = vadd.f32 %v427_v27, %v225_v26  ;;  %v424_v27 = vunpack.c.h.bf16 %v489_v8 }
  0xa5   :  { %v177_v28 = vpop.f32.mrf.mxu2  ;;  %v187_v29 = vpop.f32.mrf.mxu3  ;;  %v285_v50 = vmax.f32 %v269_v38, 0.0  ;;  %v289_v51 = vmax.f32 %v273_v39, 0.0 }
  0xa6   :  { %v159_v30 = vpop.f32.mrf.mxu0  ;;  %v169_v31 = vpop.f32.mrf.mxu1  ;;  %v209_v36 = vmul.f32 %v610_v16, %v177_v28  ;;  %v213_v37 = vmul.f32 %v610_v16, %v187_v29  ;;  %v432_v29 = vunpack.c.h.bf16 %v491_v9 }
  0xa7   :  { %v202_v32 = vmul.f32 %v610_v16, %v159_v30  ;;  %v206_v34 = vmul.f32 %v610_v16, %v169_v31 }
  0xa8   :  { %v229_v46 = vadd.f32 %v616_v20, %v209_v36  ;;  %v233_v48 = vadd.f32 %v616_v20, %v213_v37 }
  0xa9   :  { %v222_v42 = vadd.f32 %v616_v20, %v202_v32  ;;  %v226_v43 = vadd.f32 %v616_v20, %v206_v34  ;;  %v493_v34 = vld [vmem:[%s701_s4 + $0x28] sm:$0xff]  }
  0xaa   :  { %v277_v0 = vadd.f32 %v435_v47, %v229_v46  ;;  %v281_v1 = vadd.f32 %v443_v49, %v233_v48  ;;  %v439_v41 = vunpack.c.l.bf16 %v493_v34 }
  0xab   :  { %v270_v44 = vadd.f32 %v420_v33, %v222_v42  ;;  %v274_v45 = vadd.f32 %v428_v35, %v226_v43  ;;  %v495_v35 = vld [vmem:[%s701_s4 + $0x38] sm:$0xff]  }
  0xac   :  { %v293_v10 = vmax.f32 %v277_v0, 0.0  ;;  %v297_v11 = vmax.f32 %v281_v1, 0.0  ;;  %v447_v43 = vunpack.c.l.bf16 %v495_v35 }
  0xad   :  { %v286_v52 = vmax.f32 %v270_v44, 0.0  ;;  %v290_v53 = vmax.f32 %v274_v45, 0.0  ;;  %v179_v54 = vpop.f32.mrf.mxu2  ;;  %v189_v55 = vpop.f32.mrf.mxu3 }
  0xae   :  { %v210_v56 = vmul.f32 %v610_v16, %v179_v54  ;;  %v214_v58 = vmul.f32 %v610_v16, %v189_v55  ;;  %v162_v60 = vpop.f32.mrf.mxu0  ;;  %v172_v61 = vpop.f32.mrf.mxu1 }
  0xaf   :  { %v452_v62 = vpack.c.bf16 %v286_v52, %v285_v50  ;;  %v462_v63 = vpack.c.bf16 %v290_v53, %v289_v51  ;;  %v203_v4 = vmul.f32 %v610_v16, %v162_v60  ;;  %v207_v5 = vmul.f32 %v610_v16, %v172_v61 }
  0xb0   :  { %v230_v2 = vadd.f32 %v616_v20, %v210_v56  ;;  %v234_v3 = vadd.f32 %v616_v20, %v214_v58  ;;  %v440_v51 = vunpack.c.h.bf16 %v493_v34  ;;  %v448_v53 = vunpack.c.h.bf16 %v495_v35 }
  0xb1   :  { %453 = vst [vmem:[%s702_s5] sm:$0xff] %v452_v62   ;;  %v223_v14 = vadd.f32 %v616_v20, %v203_v4  ;;  %v227_v17 = vadd.f32 %v616_v20, %v207_v5 }
  0xb2   :  { %497 = vst [vmem:[%s702_s5 + $0x10] sm:$0xff] %v462_v63   ;;  %v278_v6 = vadd.f32 %v436_v57, %v230_v2  ;;  %v282_v7 = vadd.f32 %v444_v59, %v234_v3 }
  0xb3   :  { %v271_v32 = vadd.f32 %v423_v15, %v223_v14  ;;  %v275_v33 = vadd.f32 %v431_v18, %v227_v17 }
  0xb4   :  { %v294_v12 = vmax.f32 %v278_v6, 0.0  ;;  %v298_v13 = vmax.f32 %v282_v7, 0.0 }
  0xb5   :  { %v182_v19 = vpop.f32.mrf.mxu2  ;;  %v192_v21 = vpop.f32.mrf.mxu3  ;;  %v287_v44 = vmax.f32 %v271_v32, 0.0  ;;  %v291_v45 = vmax.f32 %v275_v33, 0.0 }
  0xb6   :  { %v472_v22 = vpack.c.bf16 %v294_v12, %v293_v10  ;;  %v482_v23 = vpack.c.bf16 %v298_v13, %v297_v11  ;;  %v164_v24 = vpop.f32.mrf.mxu0  ;;  %v174_v25 = vpop.f32.mrf.mxu1  ;;  %v211_v30 = vmul.f32 %v610_v16, %v182_v19  ;;  %v215_v31 = vmul.f32 %v610_v16, %v192_v21 }
  0xb7   :  { %v204_v26 = vmul.f32 %v610_v16, %v164_v24  ;;  %v208_v28 = vmul.f32 %v610_v16, %v174_v25 }
  0xb8   :  { %499 = vst [vmem:[%s702_s5 + $0x20] sm:$0xff] %v472_v22   ;;  %v231_v40 = vadd.f32 %v616_v20, %v211_v30  ;;  %v235_v42 = vadd.f32 %v616_v20, %v215_v31 }
  0xb9   :  { %501 = vst [vmem:[%s702_s5 + $0x30] sm:$0xff] %v482_v23   ;;  %v224_v36 = vadd.f32 %v616_v20, %v204_v26  ;;  %v228_v37 = vadd.f32 %v616_v20, %v208_v28 }
  0xba   :  { %v279_v56 = vadd.f32 %v439_v41, %v231_v40  ;;  %v283_v57 = vadd.f32 %v447_v43, %v235_v42 }
  0xbb   :  { %v272_v38 = vadd.f32 %v424_v27, %v224_v36  ;;  %v276_v39 = vadd.f32 %v432_v29, %v228_v37 }
  0xbc   :  { %v299_v62 = vmax.f32 %v283_v57, 0.0 }
  0xbd   :  { %v288_v46 = vmax.f32 %v272_v38, 0.0  ;;  %v292_v47 = vmax.f32 %v276_v39, 0.0  ;;  %v184_v48 = vpop.f32.mrf.mxu2  ;;  %v194_v49 = vpop.f32.mrf.mxu3 }
  0xbe   :  { %v212_v50 = vmul.f32 %v610_v16, %v184_v48  ;;  %v216_v52 = vmul.f32 %v610_v16, %v194_v49  ;;  %v295_v16 = vmax.f32 %v279_v56, 0.0 }
  0xbf   :  { %v457_v54 = vpack.c.bf16 %v288_v46, %v287_v44  ;;  %v467_v55 = vpack.c.bf16 %v292_v47, %v291_v45 }
  0xc0   :  { %v232_v58 = vadd.f32 %v616_v20, %v212_v50  ;;  %v236_v59 = vadd.f32 %v616_v20, %v216_v52 }
  0xc1   :  { %496 = vst [vmem:[%s702_s5 + $0x8] sm:$0xff] %v457_v54  }
  0xc2   :  { %498 = vst [vmem:[%s702_s5 + $0x18] sm:$0xff] %v467_v55   ;;  %v280_v60 = vadd.f32 %v440_v51, %v232_v58  ;;  %v284_v61 = vadd.f32 %v448_v53, %v236_v59 }
  0xc4   :  { %v296_v63 = vmax.f32 %v280_v60, 0.0  ;;  %v300_v0 = vmax.f32 %v284_v61, 0.0 }
  0xc6   :  { %v477_v1 = vpack.c.bf16 %v296_v63, %v295_v16  ;;  %v487_v2 = vpack.c.bf16 %v300_v0, %v299_v62 }
  0xc8   :  { %500 = vst [vmem:[%s702_s5 + $0x28] sm:$0xff] %v477_v1  }
  0xc9   :  { %502 = vst [vmem:[%s702_s5 + $0x38] sm:$0xff] %v487_v2  }

// kernel: resnet_backbone_forward.27
= control target key start
LH: loop header
LB: loop body
LE: loop exit
PB: predicated region body
PF: predicated region fallthrough
CT: control target
= control target key end

     0   :  { %s286_s1 = inlined_call_operand.vmem [shape: bf16[128,128], index: 1, kind: input, shape index: {}]   ;;  %s287_s2 = inlined_call_operand.vmem [shape: f32[1,128], index: 2, kind: input, shape index: {}]   ;;  %s288_s3 = inlined_call_operand.vmem [shape: f32[1,128], index: 3, kind: input, shape index: {}]   ;;  %s289_s0 = inlined_call_operand.vmem [shape: bf16[32,128], index: 0, kind: input, shape index: {}]   ;;  %s290_s4 = inlined_call_operand.vmem [shape: bf16[32,128], index: 4, kind: output, shape index: {}]  }
   0x1   :  { %v197_v0 = vld [vmem:[%s286_s1 + $0x38] sm:$0xff]  ;;  %v196_v1 = vld [vmem:[%s286_s1 + $0x30] sm:$0xff]  ;;  %v195_v2 = vld [vmem:[%s286_s1 + $0x28] sm:$0xff] }
   0x2   :  { %97 = vmatpush.bf16.msra.mxu0 %v197_v0  ;;  %209 = vmatpush.bf16.msra.mxu1 %v197_v0  ;;  %v194_v3 = vld [vmem:[%s286_s1 + $0x20] sm:$0xff]  ;;  %v193_v4 = vld [vmem:[%s286_s1 + $0x18] sm:$0xff]  ;;  %v192_v5 = vld [vmem:[%s286_s1 + $0x10] sm:$0xff] }
   0x3   :  { %v191_v6 = vld [vmem:[%s286_s1 + $0x8] sm:$0xff]  ;;  %v190_v7 = vld [vmem:[%s286_s1] sm:$0xff] }
   0x4   :  { %v188_v8 = vld [vmem:[%s289_s0] sm:$0xff]  ;;  %v189_v9 = vld [vmem:[%s289_s0 + $0x8] sm:$0xff] }
   0x5   :  { %v217_v12 = vld [vmem:[%s287_s2] ss:$0 sm:$0xff] }
   0x6   :  { %98 = vmatpush.bf16.msra.mxu0 %v196_v1  ;;  %210 = vmatpush.bf16.msra.mxu1 %v196_v1  ;;  %v218_v14 = vld [vmem:[%s288_s3] ss:$0 sm:$0xff] }
   0xa   :  { %99 = vmatpush.bf16.msra.mxu0 %v195_v2  ;;  %211 = vmatpush.bf16.msra.mxu1 %v195_v2 }
   0xe   :  { %100 = vmatpush.bf16.msra.mxu0 %v194_v3  ;;  %212 = vmatpush.bf16.msra.mxu1 %v194_v3 }
  0x12   :  { %101 = vmatpush.bf16.msra.mxu0 %v193_v4  ;;  %213 = vmatpush.bf16.msra.mxu1 %v193_v4 }
  0x16   :  { %102 = vmatpush.bf16.msra.mxu0 %v192_v5  ;;  %214 = vmatpush.bf16.msra.mxu1 %v192_v5 }
  0x1a   :  { %103 = vmatpush.bf16.msra.mxu0 %v191_v6  ;;  %215 = vmatpush.bf16.msra.mxu1 %v191_v6 }
  0x1e   :  { %104 = vmatpush.bf16.msra.mxu0 %v190_v7  ;;  %216 = vmatpush.bf16.msra.mxu1 %v190_v7 }
  0x21   :  { %105 = vmatmul.bf16.vlgmr.msra.gmra.mxu0 %v188_v8  ;;  %110 = vmatmul.bf16.vlgmr.msra.gmra.mxu1 %v189_v9 }
  0x9e   :  { %v106_v10 = vpop.f32.mrf.mxu0  ;;  %v111_v11 = vpop.f32.mrf.mxu1 }
  0x9f   :  { %v120_v13 = vmul.f32 %v217_v12, %v106_v10  ;;  %v122_v15 = vmul.f32 %v217_v12, %v111_v11 }
  0xa1   :  { %v128_v18 = vadd.f32 %v218_v14, %v120_v13  ;;  %v130_v19 = vadd.f32 %v218_v14, %v122_v15 }
  0xa3   :  { %v132_v24 = vmax.f32 %v128_v18, 0.0  ;;  %v134_v25 = vmax.f32 %v130_v19, 0.0 }
  0xa6   :  { %v108_v16 = vpop.f32.mrf.mxu0  ;;  %v113_v17 = vpop.f32.mrf.mxu1 }
  0xa7   :  { %v121_v20 = vmul.f32 %v217_v12, %v108_v16  ;;  %v123_v21 = vmul.f32 %v217_v12, %v113_v17 }
  0xa9   :  { %v129_v22 = vadd.f32 %v218_v14, %v121_v20  ;;  %v131_v23 = vadd.f32 %v218_v14, %v123_v21 }
  0xab   :  { %v133_v26 = vmax.f32 %v129_v22, 0.0  ;;  %v135_v27 = vmax.f32 %v131_v23, 0.0 }
  0xad   :  { %v201_v28 = vpack.c.bf16 %v133_v26, %v132_v24  ;;  %v206_v29 = vpack.c.bf16 %v135_v27, %v134_v25 }
  0xaf   :  { %202 = vst [vmem:[%s290_s4] sm:$0xff] %v201_v28  }
  0xb0   :  { %208 = vst [vmem:[%s290_s4 + $0x8] sm:$0xff] %v206_v29  }

// kernel: resnet_backbone_forward.30
= control target key start
LH: loop header
LB: loop body
LE: loop exit
PB: predicated region body
PF: predicated region fallthrough
CT: control target
= control target key end

     0   :  { %s477_s1 = inlined_call_operand.vmem [shape: bf16[256,128], index: 1, kind: input, shape index: {}]   ;;  %s478_s0 = inlined_call_operand.vmem [shape: bf16[32,256], index: 0, kind: input, shape index: {}]   ;;  %s479_s2 = inlined_call_operand.vmem [shape: f32[1,128], index: 2, kind: input, shape index: {}]   ;;  %s480_s3 = inlined_call_operand.vmem [shape: f32[1,128], index: 3, kind: input, shape index: {}]   ;;  %s481_s4 = inlined_call_operand.vmem [shape: bf16[32,128], index: 4, kind: output, shape index: {}]  }
   0x1   :  { %v330_v0 = vld [vmem:[%s477_s1 + $0x38] sm:$0xff]  ;;  %v329_v2 = vld [vmem:[%s477_s1 + $0x30] sm:$0xff]  ;;  %v328_v4 = vld [vmem:[%s477_s1 + $0x28] sm:$0xff] }
   0x2   :  { %v338_v1 = vld [vmem:[%s477_s1 + $0x78] sm:$0xff]  ;;  %169 = vmatpush.bf16.msra.mxu0 %v330_v0  ;;  %350 = vmatpush.bf16.msra.mxu2 %v330_v0  ;;  %v337_v3 = vld [vmem:[%s477_s1 + $0x70] sm:$0xff]  ;;  %v336_v5 = vld [vmem:[%s477_s1 + $0x68] sm:$0xff] }
   0x3   :  { %188 = vmatpush.bf16.msra.mxu1 %v338_v1  ;;  %358 = vmatpush.bf16.msra.mxu3 %v338_v1  ;;  %v327_v6 = vld [vmem:[%s477_s1 + $0x20] sm:$0xff]  ;;  %v326_v8 = vld [vmem:[%s477_s1 + $0x18] sm:$0xff]  ;;  %v325_v10 = vld [vmem:[%s477_s1 + $0x10] sm:$0xff] }
   0x4   :  { %v335_v7 = vld [vmem:[%s477_s1 + $0x60] sm:$0xff]  ;;  %v334_v9 = vld [vmem:[%s477_s1 + $0x58] sm:$0xff]  ;;  %v333_v11 = vld [vmem:[%s477_s1 + $0x50] sm:$0xff] }
   0x5   :  { %v324_v12 = vld [vmem:[%s477_s1 + $0x8] sm:$0xff]  ;;  %v323_v14 = vld [vmem:[%s477_s1] sm:$0xff]  ;;  %v249_v18 = vld [vmem:[%s478_s0 + $0x10] sm:$0xf] }
   0x6   :  { %170 = vmatpush.bf16.msra.mxu0 %v329_v2  ;;  %351 = vmatpush.bf16.msra.mxu2 %v329_v2  ;;  %v332_v13 = vld [vmem:[%s477_s1 + $0x48] sm:$0xff]  ;;  %v331_v15 = vld [vmem:[%s477_s1 + $0x40] sm:$0xff]  ;;  %v322_v19 = vld [vmem:[%s478_s0 + $0x14] sm:$0xf0] }
   0x7   :  { %189 = vmatpush.bf16.msra.mxu1 %v337_v3  ;;  %359 = vmatpush.bf16.msra.mxu3 %v337_v3  ;;  %v241_v16 = vld [vmem:[%s478_s0] sm:$0xf]  ;;  %v320_v17 = vld [vmem:[%s478_s0 + $0x4] sm:$0xf0]  ;;  %v319_v20 = vld [vmem:[%s478_s0 + $0x4] sm:$0xf]  ;;  %v250_v25 = vor.u32 %v322_v19, %v249_v18 }
   0x8   :  { %v243_v21 = vld [vmem:[%s478_s0 + $0x8] sm:$0xf0]  ;;  %v321_v22 = vld [vmem:[%s478_s0 + $0x14] sm:$0xf]  ;;  %v251_v23 = vld [vmem:[%s478_s0 + $0x18] sm:$0xf0]  ;;  %v242_v24 = vor.u32 %v320_v17, %v241_v16 }
   0x9   :  { %v246_v26 = vor.u32 %v319_v20, %v243_v21  ;;  %v254_v27 = vor.u32 %v321_v22, %v251_v23  ;;  %v366_v31 = vld [vmem:[%s479_s2] ss:$0 sm:$0xff] }
   0xa   :  { %171 = vmatpush.bf16.msra.mxu0 %v328_v4  ;;  %352 = vmatpush.bf16.msra.mxu2 %v328_v4  ;;  %v367_v35 = vld [vmem:[%s480_s3] ss:$0 sm:$0xff] }
   0xb   :  { %190 = vmatpush.bf16.msra.mxu1 %v336_v5  ;;  %360 = vmatpush.bf16.msra.mxu3 %v336_v5 }
   0xe   :  { %172 = vmatpush.bf16.msra.mxu0 %v327_v6  ;;  %353 = vmatpush.bf16.msra.mxu2 %v327_v6 }
   0xf   :  { %191 = vmatpush.bf16.msra.mxu1 %v335_v7  ;;  %361 = vmatpush.bf16.msra.mxu3 %v335_v7 }
  0x12   :  { %173 = vmatpush.bf16.msra.mxu0 %v326_v8  ;;  %354 = vmatpush.bf16.msra.mxu2 %v326_v8 }
  0x13   :  { %192 = vmatpush.bf16.msra.mxu1 %v334_v9  ;;  %362 = vmatpush.bf16.msra.mxu3 %v334_v9 }
  0x16   :  { %174 = vmatpush.bf16.msra.mxu0 %v325_v10  ;;  %355 = vmatpush.bf16.msra.mxu2 %v325_v10 }
  0x17   :  { %193 = vmatpush.bf16.msra.mxu1 %v333_v11  ;;  %363 = vmatpush.bf16.msra.mxu3 %v333_v11 }
  0x1a   :  { %175 = vmatpush.bf16.msra.mxu0 %v324_v12  ;;  %356 = vmatpush.bf16.msra.mxu2 %v324_v12 }
  0x1b   :  { %194 = vmatpush.bf16.msra.mxu1 %v332_v13  ;;  %364 = vmatpush.bf16.msra.mxu3 %v332_v13 }
  0x1e   :  { %176 = vmatpush.bf16.msra.mxu0 %v323_v14  ;;  %357 = vmatpush.bf16.msra.mxu2 %v323_v14 }
  0x1f   :  { %195 = vmatpush.bf16.msra.mxu1 %v331_v15  ;;  %365 = vmatpush.bf16.msra.mxu3 %v331_v15 }
  0x21   :  { %177 = vmatmul.bf16.vlgmr.msra.gmra.mxu0 %v242_v24  ;;  %182 = vmatmul.bf16.vlgmr.msra.gmra.mxu2 %v250_v25 }
  0x22   :  { %196 = vmatmul.bf16.vlgmr.msra.gmra.mxu1 %v246_v26  ;;  %201 = vmatmul.bf16.vlgmr.msra.gmra.mxu3 %v254_v27 }
  0x9e   :  { %v178_v28 = vpop.f32.mrf.mxu0 }
  0x9f   :  { %v197_v29 = vpop.f32.mrf.mxu1 }
  0xa0   :  { %v198_v30 = vadd.f32 %v197_v29, %v178_v28 }
  0xa2   :  { %v211_v34 = vmul.f32 %v366_v31, %v198_v30 }
  0xa4   :  { %v183_v32 = vpop.f32.mrf.mxu2  ;;  %v219_v40 = vadd.f32 %v367_v35, %v211_v34 }
  0xa5   :  { %v202_v33 = vpop.f32.mrf.mxu3 }
  0xa6   :  { %v180_v36 = vpop.f32.mrf.mxu0  ;;  %v203_v38 = vadd.f32 %v202_v33, %v183_v32  ;;  %v223_v46 = vmax.f32 %v219_v40, 0.0 }
  0xa7   :  { %v199_v37 = vpop.f32.mrf.mxu1 }
  0xa8   :  { %v200_v39 = vadd.f32 %v199_v37, %v180_v36  ;;  %v213_v42 = vmul.f32 %v366_v31, %v203_v38 }
  0xaa   :  { %v212_v41 = vmul.f32 %v366_v31, %v200_v39  ;;  %v221_v49 = vadd.f32 %v367_v35, %v213_v42 }
  0xac   :  { %v220_v43 = vadd.f32 %v367_v35, %v212_v41  ;;  %v185_v44 = vpop.f32.mrf.mxu2  ;;  %v225_v53 = vmax.f32 %v221_v49, 0.0 }
  0xad   :  { %v204_v45 = vpop.f32.mrf.mxu3 }
  0xae   :  { %v224_v47 = vmax.f32 %v220_v43, 0.0  ;;  %v205_v48 = vadd.f32 %v204_v45, %v185_v44 }
  0xb0   :  { %v342_v50 = vpack.c.bf16 %v224_v47, %v223_v46  ;;  %v214_v51 = vmul.f32 %v366_v31, %v205_v48 }
  0xb2   :  { %343 = vst [vmem:[%s481_s4] sm:$0xff] %v342_v50   ;;  %v222_v52 = vadd.f32 %v367_v35, %v214_v51 }
  0xb4   :  { %v226_v54 = vmax.f32 %v222_v52, 0.0 }
  0xb6   :  { %v347_v55 = vpack.c.bf16 %v226_v54, %v225_v53 }
  0xb8   :  { %349 = vst [vmem:[%s481_s4 + $0x8] sm:$0xff] %v347_v55  }

// kernel: resnet_backbone_forward.28
= control target key start
LH: loop header
LB: loop body
LE: loop exit
PB: predicated region body
PF: predicated region fallthrough
CT: control target
= control target key end

     0   :  { %s282_s1 = inlined_call_operand.vmem [shape: bf16[128,128], index: 1, kind: input, shape index: {}]   ;;  %s283_s2 = inlined_call_operand.vmem [shape: f32[1,128], index: 2, kind: input, shape index: {}]   ;;  %s284_s3 = inlined_call_operand.vmem [shape: f32[1,128], index: 3, kind: input, shape index: {}]   ;;  %s285_s0 = inlined_call_operand.vmem [shape: bf16[32,128], index: 0, kind: input, shape index: {}]   ;;  %s286_s4 = inlined_call_operand.vmem [shape: bf16[32,128], index: 4, kind: output, shape index: {}]  }
   0x1   :  { %v193_v0 = vld [vmem:[%s282_s1 + $0x38] sm:$0xff]  ;;  %v192_v1 = vld [vmem:[%s282_s1 + $0x30] sm:$0xff]  ;;  %v191_v2 = vld [vmem:[%s282_s1 + $0x28] sm:$0xff] }
   0x2   :  { %97 = vmatpush.bf16.msra.mxu0 %v193_v0  ;;  %205 = vmatpush.bf16.msra.mxu1 %v193_v0  ;;  %v190_v3 = vld [vmem:[%s282_s1 + $0x20] sm:$0xff]  ;;  %v189_v4 = vld [vmem:[%s282_s1 + $0x18] sm:$0xff]  ;;  %v188_v5 = vld [vmem:[%s282_s1 + $0x10] sm:$0xff] }
   0x3   :  { %v187_v6 = vld [vmem:[%s282_s1 + $0x8] sm:$0xff]  ;;  %v186_v7 = vld [vmem:[%s282_s1] sm:$0xff] }
   0x4   :  { %v184_v8 = vld [vmem:[%s285_s0] sm:$0xff]  ;;  %v185_v9 = vld [vmem:[%s285_s0 + $0x8] sm:$0xff] }
   0x5   :  { %v213_v12 = vld [vmem:[%s283_s2] ss:$0 sm:$0xff] }
   0x6   :  { %98 = vmatpush.bf16.msra.mxu0 %v192_v1  ;;  %206 = vmatpush.bf16.msra.mxu1 %v192_v1  ;;  %v214_v14 = vld [vmem:[%s284_s3] ss:$0 sm:$0xff] }
   0xa   :  { %99 = vmatpush.bf16.msra.mxu0 %v191_v2  ;;  %207 = vmatpush.bf16.msra.mxu1 %v191_v2 }
   0xe   :  { %100 = vmatpush.bf16.msra.mxu0 %v190_v3  ;;  %208 = vmatpush.bf16.msra.mxu1 %v190_v3 }
  0x12   :  { %101 = vmatpush.bf16.msra.mxu0 %v189_v4  ;;  %209 = vmatpush.bf16.msra.mxu1 %v189_v4 }
  0x16   :  { %102 = vmatpush.bf16.msra.mxu0 %v188_v5  ;;  %210 = vmatpush.bf16.msra.mxu1 %v188_v5 }
  0x1a   :  { %103 = vmatpush.bf16.msra.mxu0 %v187_v6  ;;  %211 = vmatpush.bf16.msra.mxu1 %v187_v6 }
  0x1e   :  { %104 = vmatpush.bf16.msra.mxu0 %v186_v7  ;;  %212 = vmatpush.bf16.msra.mxu1 %v186_v7 }
  0x21   :  { %105 = vmatmul.bf16.vlgmr.msra.gmra.mxu0 %v184_v8  ;;  %110 = vmatmul.bf16.vlgmr.msra.gmra.mxu1 %v185_v9 }
  0x9e   :  { %v106_v10 = vpop.f32.mrf.mxu0  ;;  %v111_v11 = vpop.f32.mrf.mxu1 }
  0x9f   :  { %v120_v13 = vmul.f32 %v213_v12, %v106_v10  ;;  %v122_v15 = vmul.f32 %v213_v12, %v111_v11 }
  0xa1   :  { %v128_v20 = vadd.f32 %v214_v14, %v120_v13  ;;  %v130_v21 = vadd.f32 %v214_v14, %v122_v15 }
  0xa6   :  { %v108_v16 = vpop.f32.mrf.mxu0  ;;  %v113_v17 = vpop.f32.mrf.mxu1 }
  0xa7   :  { %v121_v18 = vmul.f32 %v213_v12, %v108_v16  ;;  %v123_v19 = vmul.f32 %v213_v12, %v113_v17 }
  0xa9   :  { %v129_v22 = vadd.f32 %v214_v14, %v121_v18  ;;  %v131_v23 = vadd.f32 %v214_v14, %v123_v19 }
  0xab   :  { %v197_v24 = vpack.c.bf16 %v129_v22, %v128_v20  ;;  %v202_v25 = vpack.c.bf16 %v131_v23, %v130_v21 }
  0xad   :  { %198 = vst [vmem:[%s286_s4] sm:$0xff] %v197_v24  }
  0xae   :  { %204 = vst [vmem:[%s286_s4 + $0x8] sm:$0xff] %v202_v25  }

// kernel: resnet_backbone_forward.29
= control target key start
LH: loop header
LB: loop body
LE: loop exit
PB: predicated region body
PF: predicated region fallthrough
CT: control target
= control target key end

     0   :  { %s512_s1 = inlined_call_operand.vmem [shape: bf16[256,128], index: 1, kind: input, shape index: {}]   ;;  %s513_s0 = inlined_call_operand.vmem [shape: bf16[32,256], index: 0, kind: input, shape index: {}]   ;;  %s514_s2 = inlined_call_operand.vmem [shape: f32[1,128], index: 2, kind: input, shape index: {}]   ;;  %s515_s3 = inlined_call_operand.vmem [shape: f32[1,128], index: 3, kind: input, shape index: {}]   ;;  %s516_s4 = inlined_call_operand.vmem [shape: bf16[32,128], index: 4, kind: input, shape index: {}]   ;;  %s517_s5 = inlined_call_operand.vmem [shape: bf16[32,128], index: 5, kind: output, shape index: {}]  }
   0x1   :  { %v345_v0 = vld [vmem:[%s512_s1 + $0x38] sm:$0xff]  ;;  %v344_v2 = vld [vmem:[%s512_s1 + $0x30] sm:$0xff]  ;;  %v343_v4 = vld [vmem:[%s512_s1 + $0x28] sm:$0xff] }
   0x2   :  { %v353_v1 = vld [vmem:[%s512_s1 + $0x78] sm:$0xff]  ;;  %172 = vmatpush.bf16.msra.mxu0 %v345_v0  ;;  %374 = vmatpush.bf16.msra.mxu2 %v345_v0  ;;  %v352_v3 = vld [vmem:[%s512_s1 + $0x70] sm:$0xff]  ;;  %v351_v5 = vld [vmem:[%s512_s1 + $0x68] sm:$0xff] }
   0x3   :  { %191 = vmatpush.bf16.msra.mxu1 %v353_v1  ;;  %382 = vmatpush.bf16.msra.mxu3 %v353_v1  ;;  %v342_v6 = vld [vmem:[%s512_s1 + $0x20] sm:$0xff]  ;;  %v341_v8 = vld [vmem:[%s512_s1 + $0x18] sm:$0xff]  ;;  %v340_v10 = vld [vmem:[%s512_s1 + $0x10] sm:$0xff] }
   0x4   :  { %v350_v7 = vld [vmem:[%s512_s1 + $0x60] sm:$0xff]  ;;  %v349_v9 = vld [vmem:[%s512_s1 + $0x58] sm:$0xff]  ;;  %v348_v11 = vld [vmem:[%s512_s1 + $0x50] sm:$0xff] }
   0x5   :  { %v339_v12 = vld [vmem:[%s512_s1 + $0x8] sm:$0xff]  ;;  %v338_v14 = vld [vmem:[%s512_s1] sm:$0xff]  ;;  %v264_v18 = vld [vmem:[%s513_s0 + $0x10] sm:$0xf] }
   0x6   :  { %173 = vmatpush.bf16.msra.mxu0 %v344_v2  ;;  %375 = vmatpush.bf16.msra.mxu2 %v344_v2  ;;  %v347_v13 = vld [vmem:[%s512_s1 + $0x48] sm:$0xff]  ;;  %v346_v15 = vld [vmem:[%s512_s1 + $0x40] sm:$0xff]  ;;  %v337_v19 = vld [vmem:[%s513_s0 + $0x14] sm:$0xf0] }
   0x7   :  { %192 = vmatpush.bf16.msra.mxu1 %v352_v3  ;;  %383 = vmatpush.bf16.msra.mxu3 %v352_v3  ;;  %v256_v16 = vld [vmem:[%s513_s0] sm:$0xf]  ;;  %v335_v17 = vld [vmem:[%s513_s0 + $0x4] sm:$0xf0]  ;;  %v334_v20 = vld [vmem:[%s513_s0 + $0x4] sm:$0xf]  ;;  %v265_v25 = vor.u32 %v337_v19, %v264_v18 }
   0x8   :  { %v258_v21 = vld [vmem:[%s513_s0 + $0x8] sm:$0xf0]  ;;  %v336_v22 = vld [vmem:[%s513_s0 + $0x14] sm:$0xf]  ;;  %v266_v23 = vld [vmem:[%s513_s0 + $0x18] sm:$0xf0]  ;;  %v257_v24 = vor.u32 %v335_v17, %v256_v16 }
   0x9   :  { %v261_v26 = vor.u32 %v334_v20, %v258_v21  ;;  %v269_v27 = vor.u32 %v336_v22, %v266_v23  ;;  %v390_v31 = vld [vmem:[%s514_s2] ss:$0 sm:$0xff]  ;;  %v372_v46 = vld [vmem:[%s516_s4 + $0x8] sm:$0xff]  }
   0xa   :  { %174 = vmatpush.bf16.msra.mxu0 %v343_v4  ;;  %376 = vmatpush.bf16.msra.mxu2 %v343_v4  ;;  %v391_v33 = vld [vmem:[%s515_s3] ss:$0 sm:$0xff]  ;;  %v360_v52 = vunpack.c.l.bf16 %v372_v46  ;;  %v361_v58 = vunpack.c.h.bf16 %v372_v46 }
   0xb   :  { %193 = vmatpush.bf16.msra.mxu1 %v351_v5  ;;  %384 = vmatpush.bf16.msra.mxu3 %v351_v5  ;;  %v355_v35 = vld [vmem:[%s516_s4] sm:$0xff]  }
   0xc   :  { %v356_v41 = vunpack.c.l.bf16 %v355_v35  ;;  %v357_v45 = vunpack.c.h.bf16 %v355_v35 }
   0xe   :  { %175 = vmatpush.bf16.msra.mxu0 %v342_v6  ;;  %377 = vmatpush.bf16.msra.mxu2 %v342_v6 }
   0xf   :  { %194 = vmatpush.bf16.msra.mxu1 %v350_v7  ;;  %385 = vmatpush.bf16.msra.mxu3 %v350_v7 }
  0x12   :  { %176 = vmatpush.bf16.msra.mxu0 %v341_v8  ;;  %378 = vmatpush.bf16.msra.mxu2 %v341_v8 }
  0x13   :  { %195 = vmatpush.bf16.msra.mxu1 %v349_v9  ;;  %386 = vmatpush.bf16.msra.mxu3 %v349_v9 }
  0x16   :  { %177 = vmatpush.bf16.msra.mxu0 %v340_v10  ;;  %379 = vmatpush.bf16.msra.mxu2 %v340_v10 }
  0x17   :  { %196 = vmatpush.bf16.msra.mxu1 %v348_v11  ;;  %387 = vmatpush.bf16.msra.mxu3 %v348_v11 }
  0x1a   :  { %178 = vmatpush.bf16.msra.mxu0 %v339_v12  ;;  %380 = vmatpush.bf16.msra.mxu2 %v339_v12 }
  0x1b   :  { %197 = vmatpush.bf16.msra.mxu1 %v347_v13  ;;  %388 = vmatpush.bf16.msra.mxu3 %v347_v13 }
  0x1e   :  { %179 = vmatpush.bf16.msra.mxu0 %v338_v14  ;;  %381 = vmatpush.bf16.msra.mxu2 %v338_v14 }
  0x1f   :  { %198 = vmatpush.bf16.msra.mxu1 %v346_v15  ;;  %389 = vmatpush.bf16.msra.mxu3 %v346_v15 }
  0x21   :  { %180 = vmatmul.bf16.vlgmr.msra.gmra.mxu0 %v257_v24  ;;  %185 = vmatmul.bf16.vlgmr.msra.gmra.mxu2 %v265_v25 }
  0x22   :  { %199 = vmatmul.bf16.vlgmr.msra.gmra.mxu1 %v261_v26  ;;  %204 = vmatmul.bf16.vlgmr.msra.gmra.mxu3 %v269_v27 }
  0x9e   :  { %v181_v28 = vpop.f32.mrf.mxu0 }
  0x9f   :  { %v200_v29 = vpop.f32.mrf.mxu1 }
  0xa0   :  { %v201_v30 = vadd.f32 %v200_v29, %v181_v28 }
  0xa2   :  { %v214_v32 = vmul.f32 %v390_v31, %v201_v30 }
  0xa4   :  { %v186_v34 = vpop.f32.mrf.mxu2  ;;  %v222_v40 = vadd.f32 %v391_v33, %v214_v32 }
  0xa5   :  { %v205_v36 = vpop.f32.mrf.mxu3 }
  0xa6   :  { %v206_v37 = vadd.f32 %v205_v36, %v186_v34  ;;  %v183_v38 = vpop.f32.mrf.mxu0  ;;  %v234_v47 = vadd.f32 %v356_v41, %v222_v40 }
  0xa7   :  { %v202_v39 = vpop.f32.mrf.mxu1 }
  0xa8   :  { %v203_v42 = vadd.f32 %v202_v39, %v183_v38  ;;  %v216_v43 = vmul.f32 %v390_v31, %v206_v37  ;;  %v238_v55 = vmax.f32 %v234_v47, 0.0 }
  0xaa   :  { %v215_v44 = vmul.f32 %v390_v31, %v203_v42  ;;  %v224_v51 = vadd.f32 %v391_v33, %v216_v43 }
  0xac   :  { %v223_v48 = vadd.f32 %v391_v33, %v215_v44  ;;  %v188_v49 = vpop.f32.mrf.mxu2  ;;  %v236_v59 = vadd.f32 %v360_v52, %v224_v51 }
  0xad   :  { %v207_v50 = vpop.f32.mrf.mxu3 }
  0xae   :  { %v235_v53 = vadd.f32 %v357_v45, %v223_v48  ;;  %v208_v54 = vadd.f32 %v207_v50, %v188_v49  ;;  %v240_v63 = vmax.f32 %v236_v59, 0.0 }
  0xb0   :  { %v239_v56 = vmax.f32 %v235_v53, 0.0  ;;  %v217_v57 = vmul.f32 %v390_v31, %v208_v54 }
  0xb2   :  { %v365_v60 = vpack.c.bf16 %v239_v56, %v238_v55  ;;  %v225_v61 = vadd.f32 %v391_v33, %v217_v57 }
  0xb4   :  { %366 = vst [vmem:[%s517_s5] sm:$0xff] %v365_v60   ;;  %v237_v62 = vadd.f32 %v361_v58, %v225_v61 }
  0xb6   :  { %v241_v0 = vmax.f32 %v237_v62, 0.0 }
  0xb8   :  { %v370_v1 = vpack.c.bf16 %v241_v0, %v240_v63 }
  0xba   :  { %373 = vst [vmem:[%s517_s5 + $0x8] sm:$0xff] %v370_v1  }

// kernel: resnet_backbone_forward.32
= control target key start
LH: loop header
LB: loop body
LE: loop exit
PB: predicated region body
PF: predicated region fallthrough
CT: control target
= control target key end

     0   :  { %s398_s1 = inlined_call_operand.vmem [shape: bf16[256,128], index: 1, kind: input, shape index: {}]   ;;  %s399_s0 = inlined_call_operand.vmem [shape: bf16[16,256], index: 0, kind: input, shape index: {}]   ;;  %s400_s2 = inlined_call_operand.vmem [shape: f32[1,128], index: 2, kind: input, shape index: {}]   ;;  %s401_s3 = inlined_call_operand.vmem [shape: f32[1,128], index: 3, kind: input, shape index: {}]   ;;  %s402_s4 = inlined_call_operand.vmem [shape: bf16[16,128], index: 4, kind: output, shape index: {}]  }
   0x1   :  { %v288_v0 = vld [vmem:[%s398_s1 + $0x38] sm:$0xff]  ;;  %v287_v2 = vld [vmem:[%s398_s1 + $0x30] sm:$0xff]  ;;  %v286_v4 = vld [vmem:[%s398_s1 + $0x28] sm:$0xff] }
   0x2   :  { %v296_v1 = vld [vmem:[%s398_s1 + $0x78] sm:$0xff]  ;;  %157 = vmatpush.bf16.msra.mxu0 %v288_v0  ;;  %v295_v3 = vld [vmem:[%s398_s1 + $0x70] sm:$0xff]  ;;  %v294_v5 = vld [vmem:[%s398_s1 + $0x68] sm:$0xff] }
   0x3   :  { %171 = vmatpush.bf16.msra.mxu1 %v296_v1  ;;  %v285_v6 = vld [vmem:[%s398_s1 + $0x20] sm:$0xff]  ;;  %v284_v8 = vld [vmem:[%s398_s1 + $0x18] sm:$0xff]  ;;  %v283_v10 = vld [vmem:[%s398_s1 + $0x10] sm:$0xff] }
   0x4   :  { %v293_v7 = vld [vmem:[%s398_s1 + $0x60] sm:$0xff]  ;;  %v292_v9 = vld [vmem:[%s398_s1 + $0x58] sm:$0xff]  ;;  %v291_v11 = vld [vmem:[%s398_s1 + $0x50] sm:$0xff] }
   0x5   :  { %v282_v12 = vld [vmem:[%s398_s1 + $0x8] sm:$0xff]  ;;  %v281_v14 = vld [vmem:[%s398_s1] sm:$0xff] }
   0x6   :  { %158 = vmatpush.bf16.msra.mxu0 %v287_v2  ;;  %v290_v13 = vld [vmem:[%s398_s1 + $0x48] sm:$0xff]  ;;  %v289_v15 = vld [vmem:[%s398_s1 + $0x40] sm:$0xff] }
   0x7   :  { %172 = vmatpush.bf16.msra.mxu1 %v295_v3  ;;  %v209_v16 = vld [vmem:[%s399_s0] sm:$0xf]  ;;  %v280_v17 = vld [vmem:[%s399_s0 + $0x4] sm:$0xf0]  ;;  %v279_v18 = vld [vmem:[%s399_s0 + $0x4] sm:$0xf] }
   0x8   :  { %v211_v19 = vld [vmem:[%s399_s0 + $0x8] sm:$0xf0]  ;;  %v210_v20 = vor.u32 %v280_v17, %v209_v16  ;;  %v302_v25 = vld [vmem:[%s400_s2] ss:$0 sm:$0xff] }
   0x9   :  { %v214_v21 = vor.u32 %v279_v18, %v211_v19  ;;  %v303_v27 = vld [vmem:[%s401_s3] ss:$0 sm:$0xff] }
   0xa   :  { %159 = vmatpush.bf16.msra.mxu0 %v286_v4 }
   0xb   :  { %173 = vmatpush.bf16.msra.mxu1 %v294_v5 }
   0xe   :  { %160 = vmatpush.bf16.msra.mxu0 %v285_v6 }
   0xf   :  { %174 = vmatpush.bf16.msra.mxu1 %v293_v7 }
  0x12   :  { %161 = vmatpush.bf16.msra.mxu0 %v284_v8 }
  0x13   :  { %175 = vmatpush.bf16.msra.mxu1 %v292_v9 }
  0x16   :  { %162 = vmatpush.bf16.msra.mxu0 %v283_v10 }
  0x17   :  { %176 = vmatpush.bf16.msra.mxu1 %v291_v11 }
  0x1a   :  { %163 = vmatpush.bf16.msra.mxu0 %v282_v12 }
  0x1b   :  { %177 = vmatpush.bf16.msra.mxu1 %v290_v13 }
  0x1e   :  { %164 = vmatpush.bf16.msra.mxu0 %v281_v14 }
  0x1f   :  { %178 = vmatpush.bf16.msra.mxu1 %v289_v15 }
  0x21   :  { %165 = vmatmul.bf16.vlgmr.msra.gmra.mxu0 %v210_v20 }
  0x22   :  { %179 = vmatmul.bf16.vlgmr.msra.gmra.mxu1 %v214_v21 }
  0x9e   :  { %v166_v22 = vpop.f32.mrf.mxu0 }
  0x9f   :  { %v180_v23 = vpop.f32.mrf.mxu1 }
  0xa0   :  { %v181_v24 = vadd.f32 %v180_v23, %v166_v22 }
  0xa2   :  { %v189_v26 = vmul.f32 %v302_v25, %v181_v24 }
  0xa4   :  { %v195_v31 = vadd.f32 %v303_v27, %v189_v26 }
  0xa6   :  { %v168_v28 = vpop.f32.mrf.mxu0  ;;  %v197_v34 = vmax.f32 %v195_v31, 0.0 }
  0xa7   :  { %v182_v29 = vpop.f32.mrf.mxu1 }
  0xa8   :  { %v183_v30 = vadd.f32 %v182_v29, %v168_v28 }
  0xaa   :  { %v190_v32 = vmul.f32 %v302_v25, %v183_v30 }
  0xac   :  { %v196_v33 = vadd.f32 %v303_v27, %v190_v32 }
  0xae   :  { %v198_v35 = vmax.f32 %v196_v33, 0.0 }
  0xb0   :  { %v300_v36 = vpack.c.bf16 %v198_v35, %v197_v34 }
  0xb2   :  { %301 = vst [vmem:[%s402_s4] sm:$0xff] %v300_v36  }

// kernel: resnet_backbone_forward.33
= control target key start
LH: loop header
LB: loop body
LE: loop exit
PB: predicated region body
PF: predicated region fallthrough
CT: control target
= control target key end

     0   :  { %s236_s1 = inlined_call_operand.vmem [shape: bf16[128,128], index: 1, kind: input, shape index: {}]   ;;  %s237_s2 = inlined_call_operand.vmem [shape: f32[1,128], index: 2, kind: input, shape index: {}]   ;;  %s238_s3 = inlined_call_operand.vmem [shape: f32[1,128], index: 3, kind: input, shape index: {}]   ;;  %s239_s0 = inlined_call_operand.vmem [shape: bf16[16,128], index: 0, kind: input, shape index: {}]   ;;  %s240_s4 = inlined_call_operand.vmem [shape: bf16[16,128], index: 4, kind: output, shape index: {}]  }
   0x1   :  { %v167_v0 = vld [vmem:[%s236_s1 + $0x38] sm:$0xff]  ;;  %v166_v1 = vld [vmem:[%s236_s1 + $0x30] sm:$0xff]  ;;  %v165_v2 = vld [vmem:[%s236_s1 + $0x28] sm:$0xff] }
   0x2   :  { %89 = vmatpush.bf16.msra.mxu0 %v167_v0  ;;  %v164_v3 = vld [vmem:[%s236_s1 + $0x20] sm:$0xff]  ;;  %v163_v4 = vld [vmem:[%s236_s1 + $0x18] sm:$0xff]  ;;  %v162_v5 = vld [vmem:[%s236_s1 + $0x10] sm:$0xff] }
   0x3   :  { %v161_v6 = vld [vmem:[%s236_s1 + $0x8] sm:$0xff]  ;;  %v160_v7 = vld [vmem:[%s236_s1] sm:$0xff] }
   0x4   :  { %v159_v8 = vld [vmem:[%s239_s0] sm:$0xff] }
   0x5   :  { %v173_v10 = vld [vmem:[%s237_s2] ss:$0 sm:$0xff] }
   0x6   :  { %90 = vmatpush.bf16.msra.mxu0 %v166_v1  ;;  %v174_v12 = vld [vmem:[%s238_s3] ss:$0 sm:$0xff] }
   0xa   :  { %91 = vmatpush.bf16.msra.mxu0 %v165_v2 }
   0xe   :  { %92 = vmatpush.bf16.msra.mxu0 %v164_v3 }
  0x12   :  { %93 = vmatpush.bf16.msra.mxu0 %v163_v4 }
  0x16   :  { %94 = vmatpush.bf16.msra.mxu0 %v162_v5 }
  0x1a   :  { %95 = vmatpush.bf16.msra.mxu0 %v161_v6 }
  0x1e   :  { %96 = vmatpush.bf16.msra.mxu0 %v160_v7 }
  0x21   :  { %97 = vmatmul.bf16.vlgmr.msra.gmra.mxu0 %v159_v8 }
  0x9e   :  { %v98_v9 = vpop.f32.mrf.mxu0 }
  0x9f   :  { %v107_v11 = vmul.f32 %v173_v10, %v98_v9 }
  0xa1   :  { %v113_v15 = vadd.f32 %v174_v12, %v107_v11 }
  0xa6   :  { %v100_v13 = vpop.f32.mrf.mxu0 }
  0xa7   :  { %v108_v14 = vmul.f32 %v173_v10, %v100_v13 }
  0xa9   :  { %v114_v16 = vadd.f32 %v174_v12, %v108_v14 }
  0xab   :  { %v171_v17 = vpack.c.bf16 %v114_v16, %v113_v15 }
  0xad   :  { %172 = vst [vmem:[%s240_s4] sm:$0xff] %v171_v17  }

// kernel: resnet_backbone_forward.34
= control target key start
LH: loop header
LB: loop body
LE: loop exit
PB: predicated region body
PF: predicated region fallthrough
CT: control target
= control target key end

     0   :  { %s580_s1 = inlined_call_operand.vmem [shape: bf16[384,128], index: 1, kind: input, shape index: {}]   ;;  %s581_s0 = inlined_call_operand.vmem [shape: bf16[16,384], index: 0, kind: input, shape index: {}]   ;;  %s582_s2 = inlined_call_operand.vmem [shape: f32[1,128], index: 2, kind: input, shape index: {}]   ;;  %s583_s3 = inlined_call_operand.vmem [shape: f32[1,128], index: 3, kind: input, shape index: {}]   ;;  %s584_s4 = inlined_call_operand.vmem [shape: bf16[16,128], index: 4, kind: input, shape index: {}]   ;;  %s585_s5 = inlined_call_operand.vmem [shape: bf16[16,128], index: 5, kind: output, shape index: {}]  }
   0x1   :  { %v420_v0 = vld [vmem:[%s580_s1 + $0x38] sm:$0xff]  ;;  %v419_v3 = vld [vmem:[%s580_s1 + $0x30] sm:$0xff]  ;;  %v418_v6 = vld [vmem:[%s580_s1 + $0x28] sm:$0xff] }
   0x2   :  { %v428_v1 = vld [vmem:[%s580_s1 + $0x78] sm:$0xff]  ;;  %232 = vmatpush.bf16.msra.mxu0 %v420_v0  ;;  %v427_v4 = vld [vmem:[%s580_s1 + $0x70] sm:$0xff]  ;;  %v426_v7 = vld [vmem:[%s580_s1 + $0x68] sm:$0xff] }
   0x3   :  { %v436_v2 = vld [vmem:[%s580_s1 + $0xb8] sm:$0xff]  ;;  %246 = vmatpush.bf16.msra.mxu1 %v428_v1  ;;  %v435_v5 = vld [vmem:[%s580_s1 + $0xb0] sm:$0xff]  ;;  %v434_v8 = vld [vmem:[%s580_s1 + $0xa8] sm:$0xff] }
   0x4   :  { %260 = vmatpush.bf16.msra.mxu2 %v436_v2  ;;  %v417_v9 = vld [vmem:[%s580_s1 + $0x20] sm:$0xff]  ;;  %v416_v12 = vld [vmem:[%s580_s1 + $0x18] sm:$0xff]  ;;  %v415_v15 = vld [vmem:[%s580_s1 + $0x10] sm:$0xff] }
   0x5   :  { %v425_v10 = vld [vmem:[%s580_s1 + $0x60] sm:$0xff]  ;;  %v424_v13 = vld [vmem:[%s580_s1 + $0x58] sm:$0xff]  ;;  %v423_v16 = vld [vmem:[%s580_s1 + $0x50] sm:$0xff] }
   0x6   :  { %233 = vmatpush.bf16.msra.mxu0 %v419_v3  ;;  %v433_v11 = vld [vmem:[%s580_s1 + $0xa0] sm:$0xff]  ;;  %v432_v14 = vld [vmem:[%s580_s1 + $0x98] sm:$0xff]  ;;  %v431_v17 = vld [vmem:[%s580_s1 + $0x90] sm:$0xff] }
   0x7   :  { %247 = vmatpush.bf16.msra.mxu1 %v427_v4  ;;  %v414_v18 = vld [vmem:[%s580_s1 + $0x8] sm:$0xff]  ;;  %v413_v21 = vld [vmem:[%s580_s1] sm:$0xff]  ;;  %v306_v26 = vld [vmem:[%s581_s0 + $0xc] sm:$0xf0] }
   0x8   :  { %261 = vmatpush.bf16.msra.mxu2 %v435_v5  ;;  %v422_v19 = vld [vmem:[%s580_s1 + $0x48] sm:$0xff]  ;;  %v421_v22 = vld [vmem:[%s580_s1 + $0x40] sm:$0xff]  ;;  %v412_v29 = vld [vmem:[%s581_s0 + $0x10] sm:$0xf0] }
   0x9   :  { %v430_v20 = vld [vmem:[%s580_s1 + $0x88] sm:$0xff]  ;;  %v304_v23 = vld [vmem:[%s581_s0] sm:$0xf]  ;;  %v410_v25 = vld [vmem:[%s581_s0 + $0x4] sm:$0xf] }
   0xa   :  { %234 = vmatpush.bf16.msra.mxu0 %v418_v6  ;;  %v411_v24 = vld [vmem:[%s581_s0 + $0x8] sm:$0xf0]  ;;  %v429_v27 = vld [vmem:[%s580_s1 + $0x80] sm:$0xff]  ;;  %v312_v28 = vld [vmem:[%s581_s0 + $0x8] sm:$0xf]  ;;  %v309_v31 = vor.u32 %v410_v25, %v306_v26 }
   0xb   :  { %248 = vmatpush.bf16.msra.mxu1 %v426_v7  ;;  %v305_v30 = vor.u32 %v411_v24, %v304_v23  ;;  %v313_v32 = vor.u32 %v412_v29, %v312_v28  ;;  %v446_v38 = vld [vmem:[%s582_s2] ss:$0 sm:$0xff] }
   0xc   :  { %262 = vmatpush.bf16.msra.mxu2 %v434_v8  ;;  %v447_v42 = vld [vmem:[%s583_s3] ss:$0 sm:$0xff] }
   0xd   :  { %v438_v43 = vld [vmem:[%s584_s4] sm:$0xff]  }
   0xe   :  { %235 = vmatpush.bf16.msra.mxu0 %v417_v9  ;;  %v439_v47 = vunpack.c.l.bf16 %v438_v43  ;;  %v440_v50 = vunpack.c.h.bf16 %v438_v43 }
   0xf   :  { %249 = vmatpush.bf16.msra.mxu1 %v425_v10 }
  0x10   :  { %263 = vmatpush.bf16.msra.mxu2 %v433_v11 }
  0x12   :  { %236 = vmatpush.bf16.msra.mxu0 %v416_v12 }
  0x13   :  { %250 = vmatpush.bf16.msra.mxu1 %v424_v13 }
  0x14   :  { %264 = vmatpush.bf16.msra.mxu2 %v432_v14 }
  0x16   :  { %237 = vmatpush.bf16.msra.mxu0 %v415_v15 }
  0x17   :  { %251 = vmatpush.bf16.msra.mxu1 %v423_v16 }
  0x18   :  { %265 = vmatpush.bf16.msra.mxu2 %v431_v17 }
  0x1a   :  { %238 = vmatpush.bf16.msra.mxu0 %v414_v18 }
  0x1b   :  { %252 = vmatpush.bf16.msra.mxu1 %v422_v19 }
  0x1c   :  { %266 = vmatpush.bf16.msra.mxu2 %v430_v20 }
  0x1e   :  { %239 = vmatpush.bf16.msra.mxu0 %v413_v21 }
  0x1f   :  { %253 = vmatpush.bf16.msra.mxu1 %v421_v22 }
  0x20   :  { %267 = vmatpush.bf16.msra.mxu2 %v429_v27 }
  0x21   :  { %240 = vmatmul.bf16.vlgmr.msra.gmra.mxu0 %v305_v30 }
  0x22   :  { %254 = vmatmul.bf16.vlgmr.msra.gmra.mxu1 %v309_v31 }
  0x23   :  { %268 = vmatmul.bf16.vlgmr.msra.gmra.mxu2 %v313_v32 }
  0x9e   :  { %v241_v33 = vpop.f32.mrf.mxu0 }
  0x9f   :  { %v255_v34 = vpop.f32.mrf.mxu1 }
  0xa0   :  { %v256_v35 = vadd.f32 %v255_v34, %v241_v33 }
  0xa6   :  { %v269_v36 = vpop.f32.mrf.mxu2  ;;  %v243_v39 = vpop.f32.mrf.mxu0 }
  0xa7   :  { %v270_v37 = vadd.f32 %v269_v36, %v256_v35  ;;  %v257_v40 = vpop.f32.mrf.mxu1 }
  0xa8   :  { %v258_v44 = vadd.f32 %v257_v40, %v243_v39 }
  0xa9   :  { %v278_v41 = vmul.f32 %v446_v38, %v270_v37 }
  0xab   :  { %v284_v46 = vadd.f32 %v447_v42, %v278_v41 }
  0xad   :  { %v290_v51 = vadd.f32 %v439_v47, %v284_v46 }
  0xae   :  { %v271_v45 = vpop.f32.mrf.mxu2 }
  0xaf   :  { %v272_v48 = vadd.f32 %v271_v45, %v258_v44  ;;  %v292_v54 = vmax.f32 %v290_v51, 0.0 }
  0xb1   :  { %v279_v49 = vmul.f32 %v446_v38, %v272_v48 }
  0xb3   :  { %v285_v52 = vadd.f32 %v447_v42, %v279_v49 }
  0xb5   :  { %v291_v53 = vadd.f32 %v440_v50, %v285_v52 }
  0xb7   :  { %v293_v55 = vmax.f32 %v291_v53, 0.0 }
  0xb9   :  { %v444_v56 = vpack.c.bf16 %v293_v55, %v292_v54 }
  0xbb   :  { %445 = vst [vmem:[%s585_s5] sm:$0xff] %v444_v56  }

// kernel: resnet_backbone_forward.35
= control target key start
LH: loop header
LB: loop body
LE: loop exit
PB: predicated region body
PF: predicated region fallthrough
CT: control target
= control target key end

     0   :  { %s559_s1 = inlined_call_operand.vmem [shape: bf16[384,128], index: 1, kind: input, shape index: {}]   ;;  %s560_s0 = inlined_call_operand.vmem [shape: bf16[16,384], index: 0, kind: input, shape index: {}]   ;;  %s561_s2 = inlined_call_operand.vmem [shape: f32[1,128], index: 2, kind: input, shape index: {}]   ;;  %s562_s3 = inlined_call_operand.vmem [shape: f32[1,128], index: 3, kind: input, shape index: {}]   ;;  %s563_s4 = inlined_call_operand.vmem [shape: bf16[16,128], index: 4, kind: output, shape index: {}]  }
   0x1   :  { %v411_v0 = vld [vmem:[%s559_s1 + $0x38] sm:$0xff]  ;;  %v410_v3 = vld [vmem:[%s559_s1 + $0x30] sm:$0xff]  ;;  %v409_v6 = vld [vmem:[%s559_s1 + $0x28] sm:$0xff] }
   0x2   :  { %v419_v1 = vld [vmem:[%s559_s1 + $0x78] sm:$0xff]  ;;  %229 = vmatpush.bf16.msra.mxu0 %v411_v0  ;;  %v418_v4 = vld [vmem:[%s559_s1 + $0x70] sm:$0xff]  ;;  %v417_v7 = vld [vmem:[%s559_s1 + $0x68] sm:$0xff] }
   0x3   :  { %v427_v2 = vld [vmem:[%s559_s1 + $0xb8] sm:$0xff]  ;;  %243 = vmatpush.bf16.msra.mxu1 %v419_v1  ;;  %v426_v5 = vld [vmem:[%s559_s1 + $0xb0] sm:$0xff]  ;;  %v425_v8 = vld [vmem:[%s559_s1 + $0xa8] sm:$0xff] }
   0x4   :  { %257 = vmatpush.bf16.msra.mxu2 %v427_v2  ;;  %v408_v9 = vld [vmem:[%s559_s1 + $0x20] sm:$0xff]  ;;  %v407_v12 = vld [vmem:[%s559_s1 + $0x18] sm:$0xff]  ;;  %v406_v15 = vld [vmem:[%s559_s1 + $0x10] sm:$0xff] }
   0x5   :  { %v416_v10 = vld [vmem:[%s559_s1 + $0x60] sm:$0xff]  ;;  %v415_v13 = vld [vmem:[%s559_s1 + $0x58] sm:$0xff]  ;;  %v414_v16 = vld [vmem:[%s559_s1 + $0x50] sm:$0xff] }
   0x6   :  { %230 = vmatpush.bf16.msra.mxu0 %v410_v3  ;;  %v424_v11 = vld [vmem:[%s559_s1 + $0xa0] sm:$0xff]  ;;  %v423_v14 = vld [vmem:[%s559_s1 + $0x98] sm:$0xff]  ;;  %v422_v17 = vld [vmem:[%s559_s1 + $0x90] sm:$0xff] }
   0x7   :  { %244 = vmatpush.bf16.msra.mxu1 %v418_v4  ;;  %v405_v18 = vld [vmem:[%s559_s1 + $0x8] sm:$0xff]  ;;  %v404_v21 = vld [vmem:[%s559_s1] sm:$0xff]  ;;  %v297_v26 = vld [vmem:[%s560_s0 + $0xc] sm:$0xf0] }
   0x8   :  { %258 = vmatpush.bf16.msra.mxu2 %v426_v5  ;;  %v413_v19 = vld [vmem:[%s559_s1 + $0x48] sm:$0xff]  ;;  %v412_v22 = vld [vmem:[%s559_s1 + $0x40] sm:$0xff]  ;;  %v403_v29 = vld [vmem:[%s560_s0 + $0x10] sm:$0xf0] }
   0x9   :  { %v421_v20 = vld [vmem:[%s559_s1 + $0x88] sm:$0xff]  ;;  %v295_v23 = vld [vmem:[%s560_s0] sm:$0xf]  ;;  %v401_v25 = vld [vmem:[%s560_s0 + $0x4] sm:$0xf] }
   0xa   :  { %231 = vmatpush.bf16.msra.mxu0 %v409_v6  ;;  %v402_v24 = vld [vmem:[%s560_s0 + $0x8] sm:$0xf0]  ;;  %v420_v27 = vld [vmem:[%s559_s1 + $0x80] sm:$0xff]  ;;  %v303_v28 = vld [vmem:[%s560_s0 + $0x8] sm:$0xf]  ;;  %v300_v31 = vor.u32 %v401_v25, %v297_v26 }
   0xb   :  { %245 = vmatpush.bf16.msra.mxu1 %v417_v7  ;;  %v296_v30 = vor.u32 %v402_v24, %v295_v23  ;;  %v304_v32 = vor.u32 %v403_v29, %v303_v28  ;;  %v433_v38 = vld [vmem:[%s561_s2] ss:$0 sm:$0xff] }
   0xc   :  { %259 = vmatpush.bf16.msra.mxu2 %v425_v8  ;;  %v434_v42 = vld [vmem:[%s562_s3] ss:$0 sm:$0xff] }
   0xe   :  { %232 = vmatpush.bf16.msra.mxu0 %v408_v9 }
   0xf   :  { %246 = vmatpush.bf16.msra.mxu1 %v416_v10 }
  0x10   :  { %260 = vmatpush.bf16.msra.mxu2 %v424_v11 }
  0x12   :  { %233 = vmatpush.bf16.msra.mxu0 %v407_v12 }
  0x13   :  { %247 = vmatpush.bf16.msra.mxu1 %v415_v13 }
  0x14   :  { %261 = vmatpush.bf16.msra.mxu2 %v423_v14 }
  0x16   :  { %234 = vmatpush.bf16.msra.mxu0 %v406_v15 }
  0x17   :  { %248 = vmatpush.bf16.msra.mxu1 %v414_v16 }
  0x18   :  { %262 = vmatpush.bf16.msra.mxu2 %v422_v17 }
  0x1a   :  { %235 = vmatpush.bf16.msra.mxu0 %v405_v18 }
  0x1b   :  { %249 = vmatpush.bf16.msra.mxu1 %v413_v19 }
  0x1c   :  { %263 = vmatpush.bf16.msra.mxu2 %v421_v20 }
  0x1e   :  { %236 = vmatpush.bf16.msra.mxu0 %v404_v21 }
  0x1f   :  { %250 = vmatpush.bf16.msra.mxu1 %v412_v22 }
  0x20   :  { %264 = vmatpush.bf16.msra.mxu2 %v420_v27 }
  0x21   :  { %237 = vmatmul.bf16.vlgmr.msra.gmra.mxu0 %v296_v30 }
  0x22   :  { %251 = vmatmul.bf16.vlgmr.msra.gmra.mxu1 %v300_v31 }
  0x23   :  { %265 = vmatmul.bf16.vlgmr.msra.gmra.mxu2 %v304_v32 }
  0x9e   :  { %v238_v33 = vpop.f32.mrf.mxu0 }
  0x9f   :  { %v252_v34 = vpop.f32.mrf.mxu1 }
  0xa0   :  { %v253_v35 = vadd.f32 %v252_v34, %v238_v33 }
  0xa6   :  { %v266_v36 = vpop.f32.mrf.mxu2  ;;  %v240_v39 = vpop.f32.mrf.mxu0 }
  0xa7   :  { %v267_v37 = vadd.f32 %v266_v36, %v253_v35  ;;  %v254_v40 = vpop.f32.mrf.mxu1 }
  0xa8   :  { %v255_v43 = vadd.f32 %v254_v40, %v240_v39 }
  0xa9   :  { %v275_v41 = vmul.f32 %v433_v38, %v267_v37 }
  0xab   :  { %v281_v46 = vadd.f32 %v434_v42, %v275_v41 }
  0xad   :  { %v283_v49 = vmax.f32 %v281_v46, 0.0 }
  0xae   :  { %v268_v44 = vpop.f32.mrf.mxu2 }
  0xaf   :  { %v269_v45 = vadd.f32 %v268_v44, %v255_v43 }
  0xb1   :  { %v276_v47 = vmul.f32 %v433_v38, %v269_v45 }
  0xb3   :  { %v282_v48 = vadd.f32 %v434_v42, %v276_v47 }
  0xb5   :  { %v284_v50 = vmax.f32 %v282_v48, 0.0 }
  0xb7   :  { %v431_v51 = vpack.c.bf16 %v284_v50, %v283_v49 }
  0xb9   :  { %432 = vst [vmem:[%s563_s4] sm:$0xff] %v431_v51  }

// kernel: resnet_backbone_forward.39
= control target key start
LH: loop header
LB: loop body
LE: loop exit
PB: predicated region body
PF: predicated region fallthrough
CT: control target
= control target key end

     0   :  { %s898_s1 = inlined_call_operand.vmem [shape: bf16[640,128], index: 1, kind: input, shape index: {}]   ;;  %s899_s0 = inlined_call_operand.vmem [shape: bf16[16,640], index: 0, kind: input, shape index: {}]   ;;  %s900_s2 = inlined_call_operand.vmem [shape: f32[1,128], index: 2, kind: input, shape index: {}]   ;;  %s901_s3 = inlined_call_operand.vmem [shape: f32[1,128], index: 3, kind: input, shape index: {}]   ;;  %s902_s4 = inlined_call_operand.vmem [shape: bf16[16,128], index: 4, kind: input, shape index: {}]   ;;  %s903_s5 = inlined_call_operand.vmem [shape: bf16[16,128], index: 5, kind: output, shape index: {}]  }
   0x1   :  { %v662_v0 = vld [vmem:[%s898_s1 + $0x38] sm:$0xff]  ;;  %v661_v4 = vld [vmem:[%s898_s1 + $0x30] sm:$0xff]  ;;  %v660_v8 = vld [vmem:[%s898_s1 + $0x28] sm:$0xff] }
   0x2   :  { %v678_v1 = vld [vmem:[%s898_s1 + $0xb8] sm:$0xff]  ;;  %372 = vmatpush.bf16.msra.mxu0 %v662_v0  ;;  %v677_v5 = vld [vmem:[%s898_s1 + $0xb0] sm:$0xff]  ;;  %v676_v9 = vld [vmem:[%s898_s1 + $0xa8] sm:$0xff] }
   0x3   :  { %v686_v2 = vld [vmem:[%s898_s1 + $0xf8] sm:$0xff]  ;;  %400 = vmatpush.bf16.msra.mxu2 %v678_v1  ;;  %v685_v6 = vld [vmem:[%s898_s1 + $0xf0] sm:$0xff]  ;;  %v684_v10 = vld [vmem:[%s898_s1 + $0xe8] sm:$0xff] }
   0x4   :  { %v670_v3 = vld [vmem:[%s898_s1 + $0x78] sm:$0xff]  ;;  %414 = vmatpush.bf16.msra.mxu3 %v686_v2  ;;  %v669_v7 = vld [vmem:[%s898_s1 + $0x70] sm:$0xff]  ;;  %v668_v11 = vld [vmem:[%s898_s1 + $0x68] sm:$0xff] }
   0x5   :  { %386 = vmatpush.bf16.msra.mxu1 %v670_v3  ;;  %v659_v12 = vld [vmem:[%s898_s1 + $0x20] sm:$0xff]  ;;  %v658_v16 = vld [vmem:[%s898_s1 + $0x18] sm:$0xff]  ;;  %v657_v20 = vld [vmem:[%s898_s1 + $0x10] sm:$0xff] }
   0x6   :  { %373 = vmatpush.bf16.msra.mxu0 %v661_v4  ;;  %v675_v13 = vld [vmem:[%s898_s1 + $0xa0] sm:$0xff]  ;;  %v674_v17 = vld [vmem:[%s898_s1 + $0x98] sm:$0xff]  ;;  %v673_v21 = vld [vmem:[%s898_s1 + $0x90] sm:$0xff] }
   0x7   :  { %401 = vmatpush.bf16.msra.mxu2 %v677_v5  ;;  %v683_v14 = vld [vmem:[%s898_s1 + $0xe0] sm:$0xff]  ;;  %v682_v18 = vld [vmem:[%s898_s1 + $0xd8] sm:$0xff]  ;;  %v681_v22 = vld [vmem:[%s898_s1 + $0xd0] sm:$0xff] }
   0x8   :  { %415 = vmatpush.bf16.msra.mxu3 %v685_v6  ;;  %v667_v15 = vld [vmem:[%s898_s1 + $0x60] sm:$0xff]  ;;  %v666_v19 = vld [vmem:[%s898_s1 + $0x58] sm:$0xff]  ;;  %v665_v23 = vld [vmem:[%s898_s1 + $0x50] sm:$0xff] }
   0x9   :  { %387 = vmatpush.bf16.msra.mxu1 %v669_v7  ;;  %v656_v24 = vld [vmem:[%s898_s1 + $0x8] sm:$0xff]  ;;  %v655_v28 = vld [vmem:[%s898_s1] sm:$0xff]  ;;  %v694_v30 = vld [vmem:[%s898_s1 + $0x138] sm:$0xff] }
   0xa   :  { %374 = vmatpush.bf16.msra.mxu0 %v660_v8  ;;  %v672_v25 = vld [vmem:[%s898_s1 + $0x88] sm:$0xff]  ;;  %v671_v29 = vld [vmem:[%s898_s1 + $0x80] sm:$0xff]  ;;  %v653_v32 = vld [vmem:[%s899_s0 + $0x18] sm:$0xf0] }
   0xb   :  { %402 = vmatpush.bf16.msra.mxu2 %v676_v9  ;;  %v680_v26 = vld [vmem:[%s898_s1 + $0xc8] sm:$0xff]  ;;  %v472_v33 = vld [vmem:[%s899_s0] sm:$0xf]  ;;  %v652_v34 = vld [vmem:[%s899_s0 + $0x10] sm:$0xf0] }
   0xc   :  { %416 = vmatpush.bf16.msra.mxu3 %v684_v10  ;;  %v664_v27 = vld [vmem:[%s898_s1 + $0x48] sm:$0xff]  ;;  %v679_v35 = vld [vmem:[%s898_s1 + $0xc0] sm:$0xff]  ;;  %v474_v40 = vld [vmem:[%s899_s0 + $0x14] sm:$0xf0]  ;;  %v473_v42 = vor.u32 %v652_v34, %v472_v33 }
   0xd   :  { %388 = vmatpush.bf16.msra.mxu1 %v668_v11  ;;  %v480_v31 = vld [vmem:[%s899_s0 + $0x8] sm:$0xf]  ;;  %v651_v36 = vld [vmem:[%s899_s0 + $0xc] sm:$0xf]  ;;  %v482_v37 = vld [vmem:[%s899_s0 + $0x1c] sm:$0xf0] }
   0xe   :  { %375 = vmatpush.bf16.msra.mxu0 %v659_v12  ;;  %v663_v38 = vld [vmem:[%s898_s1 + $0x40] sm:$0xff]  ;;  %v481_v41 = vor.u32 %v653_v32, %v480_v31  ;;  %v485_v43 = vor.u32 %v651_v36, %v482_v37  ;;  %v693_v44 = vld [vmem:[%s898_s1 + $0x130] sm:$0xff]  ;;  %v692_v46 = vld [vmem:[%s898_s1 + $0x128] sm:$0xff] }
   0xf   :  { %403 = vmatpush.bf16.msra.mxu2 %v675_v13  ;;  %v650_v39 = vld [vmem:[%s899_s0 + $0x4] sm:$0xf]  ;;  %v690_v48 = vld [vmem:[%s898_s1 + $0x118] sm:$0xff]  ;;  %v689_v49 = vld [vmem:[%s898_s1 + $0x110] sm:$0xff] }
  0x10   :  { %417 = vmatpush.bf16.msra.mxu3 %v683_v14  ;;  %v477_v45 = vor.u32 %v650_v39, %v474_v40  ;;  %v691_v47 = vld [vmem:[%s898_s1 + $0x120] sm:$0xff]  ;;  %v688_v50 = vld [vmem:[%s898_s1 + $0x108] sm:$0xff]  ;;  %v488_v52 = vld [vmem:[%s899_s0 + $0x10] sm:$0xf] }
  0x11   :  { %389 = vmatpush.bf16.msra.mxu1 %v667_v15  ;;  %v687_v51 = vld [vmem:[%s898_s1 + $0x100] sm:$0xff] }
  0x12   :  { %376 = vmatpush.bf16.msra.mxu0 %v658_v16  ;;  %v654_v53 = vld [vmem:[%s899_s0 + $0x20] sm:$0xf0]  ;;  %v704_v4 = vld [vmem:[%s900_s2] ss:$0 sm:$0xff] }
  0x13   :  { %404 = vmatpush.bf16.msra.mxu2 %v674_v17  ;;  %v489_v54 = vor.u32 %v654_v53, %v488_v52  ;;  %v705_v8 = vld [vmem:[%s901_s3] ss:$0 sm:$0xff] }
  0x14   :  { %418 = vmatpush.bf16.msra.mxu3 %v682_v18  ;;  %v696_v9 = vld [vmem:[%s902_s4] sm:$0xff]  }
  0x15   :  { %390 = vmatpush.bf16.msra.mxu1 %v666_v19  ;;  %v697_v13 = vunpack.c.l.bf16 %v696_v9  ;;  %v698_v16 = vunpack.c.h.bf16 %v696_v9 }
  0x16   :  { %377 = vmatpush.bf16.msra.mxu0 %v657_v20 }
  0x17   :  { %405 = vmatpush.bf16.msra.mxu2 %v673_v21 }
  0x18   :  { %419 = vmatpush.bf16.msra.mxu3 %v681_v22 }
  0x19   :  { %391 = vmatpush.bf16.msra.mxu1 %v665_v23 }
  0x1a   :  { %378 = vmatpush.bf16.msra.mxu0 %v656_v24 }
  0x1b   :  { %406 = vmatpush.bf16.msra.mxu2 %v672_v25 }
  0x1c   :  { %420 = vmatpush.bf16.msra.mxu3 %v680_v26 }
  0x1d   :  { %392 = vmatpush.bf16.msra.mxu1 %v664_v27 }
  0x1e   :  { %379 = vmatpush.bf16.msra.mxu0 %v655_v28 }
  0x1f   :  { %407 = vmatpush.bf16.msra.mxu2 %v671_v29 }
  0x20   :  { %421 = vmatpush.bf16.msra.mxu3 %v679_v35 }
  0x21   :  { %393 = vmatpush.bf16.msra.mxu1 %v663_v38  ;;  %380 = vmatmul.bf16.vlgmr.msra.gmra.mxu0 %v473_v42 }
  0x22   :  { %428 = vmatpush.bf16.msrb.mxu0 %v694_v30  ;;  %408 = vmatmul.bf16.vlgmr.msra.gmra.mxu2 %v481_v41 }
  0x23   :  { %422 = vmatmul.bf16.vlgmr.msra.gmra.mxu3 %v485_v43 }
  0x24   :  { %394 = vmatmul.bf16.vlgmr.msra.gmra.mxu1 %v477_v45 }
  0x26   :  { %429 = vmatpush.bf16.msrb.mxu0 %v693_v44 }
  0x2a   :  { %430 = vmatpush.bf16.msrb.mxu0 %v692_v46 }
  0x2e   :  { %431 = vmatpush.bf16.msrb.mxu0 %v691_v47 }
  0x32   :  { %432 = vmatpush.bf16.msrb.mxu0 %v690_v48 }
  0x36   :  { %433 = vmatpush.bf16.msrb.mxu0 %v689_v49 }
  0x3a   :  { %434 = vmatpush.bf16.msrb.mxu0 %v688_v50 }
  0x3e   :  { %435 = vmatpush.bf16.msrb.mxu0 %v687_v51 }
  0x41   :  { %436 = vmatmul.bf16.vlgmr.msrb.gmra.mxu0 %v489_v54 }
  0x9e   :  { %v381_v55 = vpop.f32.mrf.mxu0 }
  0xa1   :  { %v395_v56 = vpop.f32.mrf.mxu1 }
  0xa2   :  { %v396_v58 = vadd.f32 %v395_v56, %v381_v55 }
  0xa5   :  { %v409_v57 = vpop.f32.mrf.mxu2 }
  0xa6   :  { %v383_v59 = vpop.f32.mrf.mxu0  ;;  %v423_v60 = vpop.f32.mrf.mxu3  ;;  %v410_v61 = vadd.f32 %v409_v57, %v396_v58 }
  0xa8   :  { %v424_v63 = vadd.f32 %v423_v60, %v410_v61 }
  0xa9   :  { %v397_v62 = vpop.f32.mrf.mxu1 }
  0xaa   :  { %v398_v0 = vadd.f32 %v397_v62, %v383_v59 }
  0xad   :  { %v411_v1 = vpop.f32.mrf.mxu2 }
  0xae   :  { %v412_v5 = vadd.f32 %v411_v1, %v398_v0  ;;  %v425_v6 = vpop.f32.mrf.mxu3 }
  0xb0   :  { %v426_v10 = vadd.f32 %v425_v6, %v412_v5 }
  0xbe   :  { %v437_v2 = vpop.f32.mrf.mxu0 }
  0xbf   :  { %v438_v3 = vadd.f32 %v437_v2, %v424_v63 }
  0xc1   :  { %v446_v7 = vmul.f32 %v704_v4, %v438_v3 }
  0xc3   :  { %v452_v12 = vadd.f32 %v705_v8, %v446_v7 }
  0xc5   :  { %v458_v17 = vadd.f32 %v697_v13, %v452_v12 }
  0xc6   :  { %v439_v11 = vpop.f32.mrf.mxu0 }
  0xc7   :  { %v440_v14 = vadd.f32 %v439_v11, %v426_v10  ;;  %v460_v20 = vmax.f32 %v458_v17, 0.0 }
  0xc9   :  { %v447_v15 = vmul.f32 %v704_v4, %v440_v14 }
  0xcb   :  { %v453_v18 = vadd.f32 %v705_v8, %v447_v15 }
  0xcd   :  { %v459_v19 = vadd.f32 %v698_v16, %v453_v18 }
  0xcf   :  { %v461_v21 = vmax.f32 %v459_v19, 0.0 }
  0xd1   :  { %v702_v22 = vpack.c.bf16 %v461_v21, %v460_v20 }
  0xd3   :  { %703 = vst [vmem:[%s903_s5] sm:$0xff] %v702_v22  }

// kernel: resnet_backbone_forward.40
= control target key start
LH: loop header
LB: loop body
LE: loop exit
PB: predicated region body
PF: predicated region fallthrough
CT: control target
= control target key end

     0   :  { %s877_s1 = inlined_call_operand.vmem [shape: bf16[640,128], index: 1, kind: input, shape index: {}]   ;;  %s878_s0 = inlined_call_operand.vmem [shape: bf16[16,640], index: 0, kind: input, shape index: {}]   ;;  %s879_s2 = inlined_call_operand.vmem [shape: f32[1,128], index: 2, kind: input, shape index: {}]   ;;  %s880_s3 = inlined_call_operand.vmem [shape: f32[1,128], index: 3, kind: input, shape index: {}]   ;;  %s881_s4 = inlined_call_operand.vmem [shape: bf16[16,128], index: 4, kind: output, shape index: {}]  }
   0x1   :  { %v653_v0 = vld [vmem:[%s877_s1 + $0x38] sm:$0xff]  ;;  %v652_v4 = vld [vmem:[%s877_s1 + $0x30] sm:$0xff]  ;;  %v651_v8 = vld [vmem:[%s877_s1 + $0x28] sm:$0xff] }
   0x2   :  { %v669_v1 = vld [vmem:[%s877_s1 + $0xb8] sm:$0xff]  ;;  %369 = vmatpush.bf16.msra.mxu0 %v653_v0  ;;  %v668_v5 = vld [vmem:[%s877_s1 + $0xb0] sm:$0xff]  ;;  %v667_v9 = vld [vmem:[%s877_s1 + $0xa8] sm:$0xff] }
   0x3   :  { %v677_v2 = vld [vmem:[%s877_s1 + $0xf8] sm:$0xff]  ;;  %397 = vmatpush.bf16.msra.mxu2 %v669_v1  ;;  %v676_v6 = vld [vmem:[%s877_s1 + $0xf0] sm:$0xff]  ;;  %v675_v10 = vld [vmem:[%s877_s1 + $0xe8] sm:$0xff] }
   0x4   :  { %v661_v3 = vld [vmem:[%s877_s1 + $0x78] sm:$0xff]  ;;  %411 = vmatpush.bf16.msra.mxu3 %v677_v2  ;;  %v660_v7 = vld [vmem:[%s877_s1 + $0x70] sm:$0xff]  ;;  %v659_v11 = vld [vmem:[%s877_s1 + $0x68] sm:$0xff] }
   0x5   :  { %383 = vmatpush.bf16.msra.mxu1 %v661_v3  ;;  %v650_v12 = vld [vmem:[%s877_s1 + $0x20] sm:$0xff]  ;;  %v649_v16 = vld [vmem:[%s877_s1 + $0x18] sm:$0xff]  ;;  %v648_v20 = vld [vmem:[%s877_s1 + $0x10] sm:$0xff] }
   0x6   :  { %370 = vmatpush.bf16.msra.mxu0 %v652_v4  ;;  %v666_v13 = vld [vmem:[%s877_s1 + $0xa0] sm:$0xff]  ;;  %v665_v17 = vld [vmem:[%s877_s1 + $0x98] sm:$0xff]  ;;  %v664_v21 = vld [vmem:[%s877_s1 + $0x90] sm:$0xff] }
   0x7   :  { %398 = vmatpush.bf16.msra.mxu2 %v668_v5  ;;  %v674_v14 = vld [vmem:[%s877_s1 + $0xe0] sm:$0xff]  ;;  %v673_v18 = vld [vmem:[%s877_s1 + $0xd8] sm:$0xff]  ;;  %v672_v22 = vld [vmem:[%s877_s1 + $0xd0] sm:$0xff] }
   0x8   :  { %412 = vmatpush.bf16.msra.mxu3 %v676_v6  ;;  %v658_v15 = vld [vmem:[%s877_s1 + $0x60] sm:$0xff]  ;;  %v657_v19 = vld [vmem:[%s877_s1 + $0x58] sm:$0xff]  ;;  %v656_v23 = vld [vmem:[%s877_s1 + $0x50] sm:$0xff] }
   0x9   :  { %384 = vmatpush.bf16.msra.mxu1 %v660_v7  ;;  %v647_v24 = vld [vmem:[%s877_s1 + $0x8] sm:$0xff]  ;;  %v646_v28 = vld [vmem:[%s877_s1] sm:$0xff]  ;;  %v685_v30 = vld [vmem:[%s877_s1 + $0x138] sm:$0xff] }
   0xa   :  { %371 = vmatpush.bf16.msra.mxu0 %v651_v8  ;;  %v663_v25 = vld [vmem:[%s877_s1 + $0x88] sm:$0xff]  ;;  %v662_v29 = vld [vmem:[%s877_s1 + $0x80] sm:$0xff]  ;;  %v644_v32 = vld [vmem:[%s878_s0 + $0x18] sm:$0xf0] }
   0xb   :  { %399 = vmatpush.bf16.msra.mxu2 %v667_v9  ;;  %v671_v26 = vld [vmem:[%s877_s1 + $0xc8] sm:$0xff]  ;;  %v463_v33 = vld [vmem:[%s878_s0] sm:$0xf]  ;;  %v643_v34 = vld [vmem:[%s878_s0 + $0x10] sm:$0xf0] }
   0xc   :  { %413 = vmatpush.bf16.msra.mxu3 %v675_v10  ;;  %v655_v27 = vld [vmem:[%s877_s1 + $0x48] sm:$0xff]  ;;  %v670_v35 = vld [vmem:[%s877_s1 + $0xc0] sm:$0xff]  ;;  %v465_v40 = vld [vmem:[%s878_s0 + $0x14] sm:$0xf0]  ;;  %v464_v42 = vor.u32 %v643_v34, %v463_v33 }
   0xd   :  { %385 = vmatpush.bf16.msra.mxu1 %v659_v11  ;;  %v471_v31 = vld [vmem:[%s878_s0 + $0x8] sm:$0xf]  ;;  %v642_v36 = vld [vmem:[%s878_s0 + $0xc] sm:$0xf]  ;;  %v473_v37 = vld [vmem:[%s878_s0 + $0x1c] sm:$0xf0] }
   0xe   :  { %372 = vmatpush.bf16.msra.mxu0 %v650_v12  ;;  %v654_v38 = vld [vmem:[%s877_s1 + $0x40] sm:$0xff]  ;;  %v472_v41 = vor.u32 %v644_v32, %v471_v31  ;;  %v476_v43 = vor.u32 %v642_v36, %v473_v37  ;;  %v684_v44 = vld [vmem:[%s877_s1 + $0x130] sm:$0xff]  ;;  %v683_v46 = vld [vmem:[%s877_s1 + $0x128] sm:$0xff] }
   0xf   :  { %400 = vmatpush.bf16.msra.mxu2 %v666_v13  ;;  %v641_v39 = vld [vmem:[%s878_s0 + $0x4] sm:$0xf]  ;;  %v681_v48 = vld [vmem:[%s877_s1 + $0x118] sm:$0xff]  ;;  %v680_v49 = vld [vmem:[%s877_s1 + $0x110] sm:$0xff] }
  0x10   :  { %414 = vmatpush.bf16.msra.mxu3 %v674_v14  ;;  %v468_v45 = vor.u32 %v641_v39, %v465_v40  ;;  %v682_v47 = vld [vmem:[%s877_s1 + $0x120] sm:$0xff]  ;;  %v679_v50 = vld [vmem:[%s877_s1 + $0x108] sm:$0xff]  ;;  %v479_v52 = vld [vmem:[%s878_s0 + $0x10] sm:$0xf] }
  0x11   :  { %386 = vmatpush.bf16.msra.mxu1 %v658_v15  ;;  %v678_v51 = vld [vmem:[%s877_s1 + $0x100] sm:$0xff] }
  0x12   :  { %373 = vmatpush.bf16.msra.mxu0 %v649_v16  ;;  %v645_v53 = vld [vmem:[%s878_s0 + $0x20] sm:$0xf0]  ;;  %v691_v5 = vld [vmem:[%s879_s2] ss:$0 sm:$0xff] }
  0x13   :  { %401 = vmatpush.bf16.msra.mxu2 %v665_v17  ;;  %v480_v54 = vor.u32 %v645_v53, %v479_v52  ;;  %v692_v9 = vld [vmem:[%s880_s3] ss:$0 sm:$0xff] }
  0x14   :  { %415 = vmatpush.bf16.msra.mxu3 %v673_v18 }
  0x15   :  { %387 = vmatpush.bf16.msra.mxu1 %v657_v19 }
  0x16   :  { %374 = vmatpush.bf16.msra.mxu0 %v648_v20 }
  0x17   :  { %402 = vmatpush.bf16.msra.mxu2 %v664_v21 }
  0x18   :  { %416 = vmatpush.bf16.msra.mxu3 %v672_v22 }
  0x19   :  { %388 = vmatpush.bf16.msra.mxu1 %v656_v23 }
  0x1a   :  { %375 = vmatpush.bf16.msra.mxu0 %v647_v24 }
  0x1b   :  { %403 = vmatpush.bf16.msra.mxu2 %v663_v25 }
  0x1c   :  { %417 = vmatpush.bf16.msra.mxu3 %v671_v26 }
  0x1d   :  { %389 = vmatpush.bf16.msra.mxu1 %v655_v27 }
  0x1e   :  { %376 = vmatpush.bf16.msra.mxu0 %v646_v28 }
  0x1f   :  { %404 = vmatpush.bf16.msra.mxu2 %v662_v29 }
  0x20   :  { %418 = vmatpush.bf16.msra.mxu3 %v670_v35 }
  0x21   :  { %390 = vmatpush.bf16.msra.mxu1 %v654_v38  ;;  %377 = vmatmul.bf16.vlgmr.msra.gmra.mxu0 %v464_v42 }
  0x22   :  { %425 = vmatpush.bf16.msrb.mxu0 %v685_v30  ;;  %405 = vmatmul.bf16.vlgmr.msra.gmra.mxu2 %v472_v41 }
  0x23   :  { %419 = vmatmul.bf16.vlgmr.msra.gmra.mxu3 %v476_v43 }
  0x24   :  { %391 = vmatmul.bf16.vlgmr.msra.gmra.mxu1 %v468_v45 }
  0x26   :  { %426 = vmatpush.bf16.msrb.mxu0 %v684_v44 }
  0x2a   :  { %427 = vmatpush.bf16.msrb.mxu0 %v683_v46 }
  0x2e   :  { %428 = vmatpush.bf16.msrb.mxu0 %v682_v47 }
  0x32   :  { %429 = vmatpush.bf16.msrb.mxu0 %v681_v48 }
  0x36   :  { %430 = vmatpush.bf16.msrb.mxu0 %v680_v49 }
  0x3a   :  { %431 = vmatpush.bf16.msrb.mxu0 %v679_v50 }
  0x3e   :  { %432 = vmatpush.bf16.msrb.mxu0 %v678_v51 }
  0x41   :  { %433 = vmatmul.bf16.vlgmr.msrb.gmra.mxu0 %v480_v54 }
  0x9e   :  { %v378_v55 = vpop.f32.mrf.mxu0 }
  0xa1   :  { %v392_v56 = vpop.f32.mrf.mxu1 }
  0xa2   :  { %v393_v59 = vadd.f32 %v392_v56, %v378_v55 }
  0xa5   :  { %v406_v57 = vpop.f32.mrf.mxu2 }
  0xa6   :  { %v380_v58 = vpop.f32.mrf.mxu0  ;;  %v420_v60 = vpop.f32.mrf.mxu3  ;;  %v407_v62 = vadd.f32 %v406_v57, %v393_v59 }
  0xa8   :  { %v421_v2 = vadd.f32 %v420_v60, %v407_v62 }
  0xa9   :  { %v394_v61 = vpop.f32.mrf.mxu1 }
  0xaa   :  { %v395_v63 = vadd.f32 %v394_v61, %v380_v58 }
  0xad   :  { %v408_v0 = vpop.f32.mrf.mxu2 }
  0xae   :  { %v409_v3 = vadd.f32 %v408_v0, %v395_v63  ;;  %v422_v6 = vpop.f32.mrf.mxu3 }
  0xb0   :  { %v423_v7 = vadd.f32 %v422_v6, %v409_v3 }
  0xbe   :  { %v434_v1 = vpop.f32.mrf.mxu0 }
  0xbf   :  { %v435_v4 = vadd.f32 %v434_v1, %v421_v2 }
  0xc1   :  { %v443_v8 = vmul.f32 %v691_v5, %v435_v4 }
  0xc3   :  { %v449_v12 = vadd.f32 %v692_v9, %v443_v8 }
  0xc5   :  { %v451_v15 = vmax.f32 %v449_v12, 0.0 }
  0xc6   :  { %v436_v10 = vpop.f32.mrf.mxu0 }
  0xc7   :  { %v437_v11 = vadd.f32 %v436_v10, %v423_v7 }
  0xc9   :  { %v444_v13 = vmul.f32 %v691_v5, %v437_v11 }
  0xcb   :  { %v450_v14 = vadd.f32 %v692_v9, %v444_v13 }
  0xcd   :  { %v452_v16 = vmax.f32 %v450_v14, 0.0 }
  0xcf   :  { %v689_v17 = vpack.c.bf16 %v452_v16, %v451_v15 }
  0xd1   :  { %690 = vst [vmem:[%s881_s4] sm:$0xff] %v689_v17  }

</bundles_post_ra>
